<compile_context>
chip_gen: v7x
topology: tpu7x:2x2x1
jax: 0.10.0
libtpu: 0.0.40
codegen_flags: <defaults>
</compile_context>

<pallas_src>
import jax
import jax.numpy as jnp
from jax.experimental import pallas as pl
from jax.experimental.pallas import tpu as pltpu


LANE = 128          # lane width: feature / hidden / class / hyperedge dims padded to this
MAX_ROW_TILE = 512  # upper bound on the node-row tile (review: 256-512)
_VMEM_LIMIT = 48 * 1024 * 1024   # <= v7x's 64 MiB physical VMEM; plenty of headroom on v5e/v6e


def _round_up(n, m):
    return ((n + m - 1) // m) * m


def _pad2(a, rows, cols):
    return jnp.pad(a, ((0, rows - a.shape[0]), (0, cols - a.shape[1])))


def _choose_row_tile(vp, max_tile=MAX_ROW_TILE):
    """Largest multiple-of-LANE divisor of vp that is <= max_tile (vp is a LANE multiple)."""
    best = LANE
    t = LANE
    while t <= min(vp, max_tile):
        if vp % t == 0:
            best = t
        t += LANE
    return best


# --------------------- Buffered(1) support probe (robust fallback) ---------------------

_BUFFERED_ONE_OK = None


def _supports_buffered_one():
    """Probe whether pipeline_mode=pl.Buffered(1) compiles/runs on this jax/libtpu build."""
    if not hasattr(pl, "Buffered"):
        return False
    try:
        def _k(x_ref, o_ref):
            o_ref[...] = x_ref[...] + 1.0

        spec = pl.BlockSpec((8, 128), lambda i: (0, 0), pipeline_mode=pl.Buffered(1))
        out = pl.pallas_call(
            _k,
            out_shape=jax.ShapeDtypeStruct((8, 128), jnp.float32),
            grid=(2,),
            in_specs=[spec],
            out_specs=pl.BlockSpec((8, 128), lambda i: (0, 0)),
        )(jnp.zeros((8, 128), jnp.float32))
        jax.block_until_ready(out)
        return True
    except Exception:
        return False


def _buffered_one_ok():
    global _BUFFERED_ONE_OK
    if _BUFFERED_ONE_OK is None:
        _BUFFERED_ONE_OK = _supports_buffered_one()
    return _BUFFERED_ONE_OK


def _const_spec(arr):
    """VMEM-resident operand (same block every grid step); single-buffered when supported."""
    if _buffered_one_ok():
        return pl.BlockSpec(arr.shape, lambda k: (0, 0), pipeline_mode=pl.Buffered(1))
    return pl.BlockSpec(arr.shape, lambda k: (0, 0))


# ------------------------------------ fused kernel -------------------------------------

def _make_layer_kernel(n_enc_v2e, n_dec_v2e, n_enc_e2v, n_dec_e2v, n_cls):
    """One fused SetGNN layer.

    Grid axis = reduction over node-row tiles:
      every step : acc[E,H] += A_v2e[:, tile_k] @ relu(enc_v2e(x[tile_k]))
      last step  : z   = relu(enc_e2v(relu(dec_v2e(acc))))
                   out = classifier(relu(dec_e2v(A_e2v @ z)))        (classifier on last layer)
    All matmul operands are bf16 (MXU), accumulation / bias / ReLU are f32 (VPU).
    """
    n_params = 2 * (n_enc_v2e + n_dec_v2e + n_enc_e2v + n_dec_e2v + n_cls)

    def kernel(*refs):
        x_ref, av_ref, ae_ref = refs[0], refs[1], refs[2]
        p = refs[3:3 + n_params]
        o_ref = refs[3 + n_params]
        acc_ref = refs[4 + n_params]
        k = pl.program_id(0)

        @pl.when(k == 0)
        def _init():
            acc_ref[...] = jnp.zeros_like(acc_ref)
            o_ref[...] = jnp.zeros_like(o_ref)   # defensive init of the resident output block

        # --- V2E node-side encoder MLP on this node-row tile (ReLU after every Linear) ---
        h = x_ref[...]
        idx = 0
        for _ in range(n_enc_v2e):
            w, b = p[idx], p[idx + 1]
            idx += 2
            h = jnp.dot(h.astype(jnp.bfloat16), w[...],
                        preferred_element_type=jnp.float32) + b[...]
            h = jnp.maximum(h, 0.0)

        # --- V2E scatter-add (aggr='add') as a partial dense matmul; f32 accumulator ---
        acc_ref[...] += jnp.dot(av_ref[...], h.astype(jnp.bfloat16),
                                preferred_element_type=jnp.float32)

        @pl.when(k == pl.num_programs(0) - 1)
        def _finalize():
            ii = idx
            # V2E decoder (+ SetGNN's outer ReLU, idempotent) then the E2V encoder of the
            # same layer, on the VMEM-resident hyperedge rows.
            z = acc_ref[...]
            for _ in range(n_dec_v2e + n_enc_e2v):
                w, b = p[ii], p[ii + 1]
                ii += 2
                z = jnp.maximum(
                    jnp.dot(z.astype(jnp.bfloat16), w[...],
                            preferred_element_type=jnp.float32) + b[...], 0.0)
            # E2V scatter-add back to nodes (all hyperedge rows are VMEM-resident).
            m = jnp.dot(ae_ref[...], z.astype(jnp.bfloat16),
                        preferred_element_type=jnp.float32)
            # E2V decoder (+ outer ReLU) and, on the last layer, the classifier MLP
            # (ReLU between classifier layers only, no ReLU on the logits).
            for _ in range(n_dec_e2v):
                w, b = p[ii], p[ii + 1]
                ii += 2
                m = jnp.maximum(
                    jnp.dot(m.astype(jnp.bfloat16), w[...],
                            preferred_element_type=jnp.float32) + b[...], 0.0)
            for j in range(n_cls):
                w, b = p[ii], p[ii + 1]
                ii += 2
                m = jnp.dot(m.astype(jnp.bfloat16), w[...],
                            preferred_element_type=jnp.float32) + b[...]
                if j < n_cls - 1:
                    m = jnp.maximum(m, 0.0)
            o_ref[...] = m.astype(o_ref.dtype)

    return kernel


# ----------------------------------- pallas wrapper -------------------------------------

def _flatten(params_lists):
    flat = []
    for params in params_lists:
        for w, b in params:
            flat += [w, b]
    return flat


def setgnn_layer_fused(x_p, a_v2e_p, a_e2v_p, enc_v2e, dec_v2e, enc_e2v, dec_e2v,
                       cls_params=None, *, out_dtype=jnp.float32, tm=None):
    """One fused SetGNN layer on padded tensors -> [V_pad, out_pad] (f32 logits / bf16 feats).

    NOTE: padded output *rows* (beyond the true node count) are NOT zero (zero A rows feed
    relu(bias) through the decoder); callers must slice before any reduction over rows.
    """
    Vp, Fp = x_p.shape
    Ep = a_v2e_p.shape[0]
    assert a_v2e_p.shape == (Ep, Vp) and a_e2v_p.shape == (Vp, Ep)
    cls_params = list(cls_params) if cls_params else []
    flat = _flatten([enc_v2e, dec_v2e, enc_e2v, dec_e2v, cls_params])
    H_enc = enc_v2e[-1][0].shape[1]
    out_dim = (cls_params[-1][0].shape[1] if cls_params else dec_e2v[-1][0].shape[1])
    tm = tm or _choose_row_tile(Vp)
    assert Vp % tm == 0

    kernel = _make_layer_kernel(len(enc_v2e), len(dec_v2e), len(enc_e2v),
                                len(dec_e2v), len(cls_params))

    flops = (sum(2 * Vp * w.shape[0] * w.shape[1] for w, _ in enc_v2e)
             + 2 * Ep * Vp * H_enc
             + sum(2 * Ep * w.shape[0] * w.shape[1] for w, _ in dec_v2e + enc_e2v)
             + 2 * Vp * Ep * enc_e2v[-1][0].shape[1]
             + sum(2 * Vp * w.shape[0] * w.shape[1] for w, _ in dec_e2v + cls_params))
    bytes_accessed = (sum(int(a.size) * a.dtype.itemsize
                          for a in [x_p, a_v2e_p, a_e2v_p] + flat)
                      + Vp * out_dim * jnp.dtype(out_dtype).itemsize)

    grid_spec = pltpu.PrefetchScalarGridSpec(
        num_scalar_prefetch=0,
        grid=(Vp // tm,),                                        # reduction over node tiles
        in_specs=[pl.BlockSpec((tm, Fp), lambda k: (k, 0)),      # node-row tile of x (bf16)
                  pl.BlockSpec((Ep, tm), lambda k: (0, k)),      # matching column block of A_v2e
                  _const_spec(a_e2v_p)]                          # full A_e2v, VMEM-resident
                 + [_const_spec(a) for a in flat],               # weights (bf16) / biases (f32)
        out_specs=pl.BlockSpec((Vp, out_dim), lambda k: (0, 0)), # resident across reduction
        scratch_shapes=[pltpu.VMEM((Ep, H_enc), jnp.float32)],   # f32 hyperedge accumulator
    )
    return pl.pallas_call(
        kernel,
        out_shape=jax.ShapeDtypeStruct((Vp, out_dim), out_dtype),
        grid_spec=grid_spec,
        compiler_params=pltpu.CompilerParams(
            dimension_semantics=("arbitrary",),                  # reduction axis
            vmem_limit_bytes=_VMEM_LIMIT),
        cost_estimate=pl.CostEstimate(flops=flops, transcendentals=0,
                                      bytes_accessed=bytes_accessed),
    )(x_p, a_v2e_p, a_e2v_p, *flat)


# -------------------------------------- model glue --------------------------------------

def init_mlp(key, dims):
    """dims = [in, hidden, ..., out]; returns list of (W, b) at *true* (unpadded) sizes."""
    params = []
    for i in range(len(dims) - 1):
        key, kw = jax.random.split(key)
        w = jax.random.normal(kw, (dims[i], dims[i + 1]), jnp.float32) / jnp.sqrt(dims[i])
        b = jnp.zeros((dims[i + 1],), jnp.float32)
        params.append((w, b))
    return params, key


def pad_mlp(params):
    """Zero-pad W to [K_pad, N_pad] (multiples of 128, bf16) and b to [1, N_pad] (f32)."""
    out = []
    for w, b in params:
        kp = _round_up(w.shape[0], LANE)
        npad = _round_up(w.shape[1], LANE)
        out.append((_pad2(w, kp, npad).astype(jnp.bfloat16),
                    _pad2(b.reshape(1, -1), 1, npad)))           # bias stays f32 (f32 epilogue)
    return out


def init_setgnn(key, num_features, mlp_hidden, classifier_hidden, num_classes,
                all_num_layers, mlp_num_layers, classifier_num_layers):
    params = {"V2E": [], "E2V": []}
    in_dim = num_features
    for _ in range(all_num_layers):
        enc, key = init_mlp(key, [in_dim] + [mlp_hidden] * mlp_num_layers)
        dec, key = init_mlp(key, [mlp_hidden] * (mlp_num_layers + 1))
        params["V2E"].append((enc, dec))
        enc, key = init_mlp(key, [mlp_hidden] * (mlp_num_layers + 1))
        dec, key = init_mlp(key, [mlp_hidden] * (mlp_num_layers + 1))
        params["E2V"].append((enc, dec))
        in_dim = mlp_hidden
    cls_dims = [mlp_hidden] + [classifier_hidden] * (classifier_num_layers - 1) + [num_classes]
    params["classifier"], key = init_mlp(key, cls_dims)
    return params, key


def setgnn_forward(params, x_p, a_v2e_p, a_e2v_p):
    """Eval-mode forward on padded tensors (dropout = identity).  Returns padded logits."""
    # TODO(synk): All_num_layers == 0 (classifier-only) path not needed for this config.
    num_layers = len(params["V2E"])
    h = x_p
    for layer in range(num_layers):
        enc_v2e, dec_v2e = params["V2E"][layer]
        enc_e2v, dec_e2v = params["E2V"][layer]
        last = layer == num_layers - 1
        h = setgnn_layer_fused(
            h, a_v2e_p, a_e2v_p, enc_v2e, dec_v2e, enc_e2v, dec_e2v,
            params["classifier"] if last else None,
            out_dtype=jnp.float32 if last else jnp.bfloat16)     # bf16 features between layers
    return h


# ---------------------------------- pure-JAX reference ----------------------------------

def _mlp_ref(h, params, relu_last=True):
    for i, (w, b) in enumerate(params):
        h = jnp.dot(h.astype(jnp.bfloat16), w, preferred_element_type=jnp.float32) + b
        if relu_last or i < len(params) - 1:
            h = jnp.maximum(h, 0.0)
    return h


def setgnn_reference(params, x_p, a_v2e_p, a_e2v_p):
    """Pure-JAX mirror of the kernel math (same bf16 operand casts, f32 accumulation)."""
    num_layers = len(params["V2E"])
    h = x_p.astype(jnp.float32)
    for layer in range(num_layers):
        enc_v2e, dec_v2e = params["V2E"][layer]
        enc_e2v, dec_e2v = params["E2V"][layer]
        h = _mlp_ref(h, enc_v2e)
        z = jnp.dot(a_v2e_p, h.astype(jnp.bfloat16), preferred_element_type=jnp.float32)
        z = _mlp_ref(_mlp_ref(z, dec_v2e), enc_e2v)
        m = jnp.dot(a_e2v_p, z.astype(jnp.bfloat16), preferred_element_type=jnp.float32)
        m = _mlp_ref(m, dec_e2v)
        if layer == num_layers - 1:
            m = _mlp_ref(m, params["classifier"], relu_last=False)
        else:
            m = m.astype(jnp.bfloat16).astype(jnp.float32)   # kernel emits bf16 between layers
        h = m
    return h


# ---------------------------------------- driver ----------------------------------------

if __name__ == "__main__":
    key = jax.random.PRNGKey(0)

    # synthetic hypergraph / config (small, matching the reference module's non-GPR path)
    num_nodes = 300
    num_hyperedges = 96
    num_incidences = 800
    num_features = 32
    mlp_hidden = 32
    classifier_hidden = 32
    num_classes = 4
    all_num_layers = 1
    mlp_num_layers = 2
    classifier_num_layers = 2

    key, kx, ks, kd = jax.random.split(key, 4)
    x = jax.random.normal(kx, (num_nodes, num_features), jnp.float32)
    src = jax.random.randint(ks, (num_incidences,), 0, num_nodes)        # edge_index[0]
    dst = jax.random.randint(kd, (num_incidences,), 0, num_hyperedges)   # edge_index[1]
    norm = jnp.ones((num_incidences,), jnp.float32)
    dst = dst - jnp.min(dst)                                             # cidx shift (reference)

    # dense weighted incidence matrices (aggr='add'); stored bf16 for the MXU
    # TODO(synk): for large hypergraphs replace with scalar-prefetch gather / block-sparse A.
    a_v2e = jnp.zeros((num_hyperedges, num_nodes), jnp.float32).at[dst, src].add(norm)
    a_e2v = jnp.zeros((num_nodes, num_hyperedges), jnp.float32).at[src, dst].add(norm)

    params, key = init_setgnn(
        key, num_features, mlp_hidden, classifier_hidden, num_classes,
        all_num_layers, mlp_num_layers, classifier_num_layers,
    )

    # padding: node rows AND all lane dims (features/hidden/classes/hyperedges) -> 128 multiples
    Vp = _round_up(num_nodes, LANE)        # 384 -> single 384-row tile (grid of 1 per layer)
    Ep = _round_up(num_hyperedges, LANE)   # 128 -> lane-dense A blocks, full-width MXU K passes
    Fp = _round_up(num_features, LANE)
    x_p = _pad2(x, Vp, Fp).astype(jnp.bfloat16)
    a_v2e_p = _pad2(a_v2e, Ep, Vp).astype(jnp.bfloat16)
    a_e2v_p = _pad2(a_e2v, Vp, Ep).astype(jnp.bfloat16)
    padded_params = {
        "V2E": [(pad_mlp(e), pad_mlp(d)) for e, d in params["V2E"]],
        "E2V": [(pad_mlp(e), pad_mlp(d)) for e, d in params["E2V"]],
        "classifier": pad_mlp(params["classifier"]),
    }

    _buffered_one_ok()   # eager one-time probe of pipeline_mode=pl.Buffered(1) support

    fwd = jax.jit(setgnn_forward)
    out_padded = fwd(padded_params, x_p, a_v2e_p, a_e2v_p)
    jax.block_until_ready(out_padded)

    out = out_padded[:num_nodes, :num_classes]   # slice padded rows/lanes back
    ref = setgnn_reference(padded_params, x_p, a_v2e_p, a_e2v_p)[:num_nodes, :num_classes]

    assert out.shape == (num_nodes, num_classes)
    assert bool(jnp.all(jnp.isfinite(out)))
    assert bool(jnp.allclose(out, ref, rtol=1e-2, atol=1e-2)), \
        float(jnp.max(jnp.abs(out - ref)))
    print("KERNEL_OK")
</pallas_src>

<mosaic_0001>
module attributes {stable_mosaic.version = 11 : i64} {
  func.func @_k(%arg0: i32, %arg1: memref<8x128xf32, #tpu.memory_space<vmem>>, %arg2: memref<8x128xf32, #tpu.memory_space<vmem>>) attributes {dimension_semantics = [#tpu.dimension_semantics<arbitrary>], iteration_bounds = array<i64: 2>, scalar_prefetch = 0 : i64, scratch_operands = 0 : i64, tpu.core_type = #tpu.core_type<tc>, window_params = [{pipeline_mode = #tpu.pipeline_mode<synchronous>, transform_indices = @transform_0, window_bounds = array<i64: 8, 128>}, {pipeline_mode = #tpu.pipeline_mode<synchronous>, transform_indices = @transform_1, window_bounds = array<i64: 8, 128>}]} {
    %c0 = arith.constant 0 : index
    %c0_0 = arith.constant 0 : index
    %0 = vector.load %arg1[%c0, %c0_0] : memref<8x128xf32, #tpu.memory_space<vmem>>, vector<8x128xf32>
    %cst = arith.constant 1.000000e+00 : f32
    %1 = vector.broadcast %cst : f32 to vector<8x128xf32>
    %2 = arith.addf %0, %1 : vector<8x128xf32>
    %c0_1 = arith.constant 0 : index
    %c0_2 = arith.constant 0 : index
    %3 = vector.load %arg2[%c0_1, %c0_2] : memref<8x128xf32, #tpu.memory_space<vmem>>, vector<8x128xf32>
    tpu.vector_store %arg2[%c0_1, %c0_2], %2 {strides = array<i32>} : memref<8x128xf32, #tpu.memory_space<vmem>>, vector<8x128xf32>,
    return
  }
  func.func @transform_0(%arg0: i32) -> (i32, i32) {
    %c0_i32 = arith.constant 0 : i32
    %c0_i32_0 = arith.constant 0 : i32
    %c0_i32_1 = arith.constant 0 : i32
    return %c0_i32, %c0_i32_0 : i32, i32
  }
  func.func @transform_1(%arg0: i32) -> (i32, i32) {
    %c0_i32 = arith.constant 0 : i32
    %c0_i32_0 = arith.constant 0 : i32
    %c0_i32_1 = arith.constant 0 : i32
    return %c0_i32, %c0_i32_0 : i32, i32
  }
}

module attributes {stable_mosaic.version = 11 : i64} {
  func.func @kernel(%arg0: i32, %arg1: memref<384x128xbf16, #tpu.memory_space<vmem>>, %arg2: memref<128x384xbf16, #tpu.memory_space<vmem>>, %arg3: memref<384x128xbf16, #tpu.memory_space<vmem>>, %arg4: memref<128x128xbf16, #tpu.memory_space<vmem>>, %arg5: memref<1x128xf32, #tpu.memory_space<vmem>>, %arg6: memref<128x128xbf16, #tpu.memory_space<vmem>>, %arg7: memref<1x128xf32, #tpu.memory_space<vmem>>, %arg8: memref<128x128xbf16, #tpu.memory_space<vmem>>, %arg9: memref<1x128xf32, #tpu.memory_space<vmem>>, %arg10: memref<128x128xbf16, #tpu.memory_space<vmem>>, %arg11: memref<1x128xf32, #tpu.memory_space<vmem>>, %arg12: memref<128x128xbf16, #tpu.memory_space<vmem>>, %arg13: memref<1x128xf32, #tpu.memory_space<vmem>>, %arg14: memref<128x128xbf16, #tpu.memory_space<vmem>>, %arg15: memref<1x128xf32, #tpu.memory_space<vmem>>, %arg16: memref<128x128xbf16, #tpu.memory_space<vmem>>, %arg17: memref<1x128xf32, #tpu.memory_space<vmem>>, %arg18: memref<128x128xbf16, #tpu.memory_space<vmem>>, %arg19: memref<1x128xf32, #tpu.memory_space<vmem>>, %arg20: memref<128x128xbf16, #tpu.memory_space<vmem>>, %arg21: memref<1x128xf32, #tpu.memory_space<vmem>>, %arg22: memref<128x128xbf16, #tpu.memory_space<vmem>>, %arg23: memref<1x128xf32, #tpu.memory_space<vmem>>, %arg24: memref<384x128xf32, #tpu.memory_space<vmem>>, %arg25: memref<128x128xf32, #tpu.memory_space<vmem>>) attributes {dimension_semantics = [#tpu.dimension_semantics<arbitrary>], iteration_bounds = array<i64: 1>, scalar_prefetch = 0 : i64, scratch_operands = 1 : i64, tpu.core_type = #tpu.core_type<tc>, window_params = [{transform_indices = @transform_0, window_bounds = array<i64: 384, 128>}, {transform_indices = @transform_1, window_bounds = array<i64: 128, 384>}, {pipeline_mode = #tpu.pipeline_mode<synchronous>, transform_indices = @transform_2, window_bounds = array<i64: 384, 128>}, {pipeline_mode = #tpu.pipeline_mode<synchronous>, transform_indices = @transform_3, window_bounds = array<i64: 128, 128>}, {pipeline_mode = #tpu.pipeline_mode<synchronous>, transform_indices = @transform_4, window_bounds = array<i64: 1, 128>}, {pipeline_mode = #tpu.pipeline_mode<synchronous>, transform_indices = @transform_5, window_bounds = array<i64: 128, 128>}, {pipeline_mode = #tpu.pipeline_mode<synchronous>, transform_indices = @transform_6, window_bounds = array<i64: 1, 128>}, {pipeline_mode = #tpu.pipeline_mode<synchronous>, transform_indices = @transform_7, window_bounds = array<i64: 128, 128>}, {pipeline_mode = #tpu.pipeline_mode<synchronous>, transform_indices = @transform_8, window_bounds = array<i64: 1, 128>}, {pipeline_mode = #tpu.pipeline_mode<synchronous>, transform_indices = @transform_9, window_bounds = array<i64: 128, 128>}, {pipeline_mode = #tpu.pipeline_mode<synchronous>, transform_indices = @transform_10, window_bounds = array<i64: 1, 128>}, {pipeline_mode = #tpu.pipeline_mode<synchronous>, transform_indices = @transform_11, window_bounds = array<i64: 128, 128>}, {pipeline_mode = #tpu.pipeline_mode<synchronous>, transform_indices = @transform_12, window_bounds = array<i64: 1, 128>}, {pipeline_mode = #tpu.pipeline_mode<synchronous>, transform_indices = @transform_13, window_bounds = array<i64: 128, 128>}, {pipeline_mode = #tpu.pipeline_mode<synchronous>, transform_indices = @transform_14, window_bounds = array<i64: 1, 128>}, {pipeline_mode = #tpu.pipeline_mode<synchronous>, transform_indices = @transform_15, window_bounds = array<i64: 128, 128>}, {pipeline_mode = #tpu.pipeline_mode<synchronous>, transform_indices = @transform_16, window_bounds = array<i64: 1, 128>}, {pipeline_mode = #tpu.pipeline_mode<synchronous>, transform_indices = @transform_17, window_bounds = array<i64: 128, 128>}, {pipeline_mode = #tpu.pipeline_mode<synchronous>, transform_indices = @transform_18, window_bounds = array<i64: 1, 128>}, {pipeline_mode = #tpu.pipeline_mode<synchronous>, transform_indices = @transform_19, window_bounds = array<i64: 128, 128>}, {pipeline_mode = #tpu.pipeline_mode<synchronous>, transform_indices = @transform_20, window_bounds = array<i64: 1, 128>}, {pipeline_mode = #tpu.pipeline_mode<synchronous>, transform_indices = @transform_21, window_bounds = array<i64: 128, 128>}, {pipeline_mode = #tpu.pipeline_mode<synchronous>, transform_indices = @transform_22, window_bounds = array<i64: 1, 128>}, {pipeline_mode = #tpu.pipeline_mode<synchronous>, transform_indices = @transform_23, window_bounds = array<i64: 384, 128>}]} {
    %c0_i32 = arith.constant 0 : i32
    %0 = arith.cmpi eq, %arg0, %c0_i32 : i32
    %1 = arith.extui %0 : i1 to i32
    %c0_i32_0 = arith.constant 0 : i32
    %2 = arith.cmpi ne, %1, %c0_i32_0 : i32
    scf.if %2 {
      %cst_22 = arith.constant 0.000000e+00 : f32
      %28 = vector.broadcast %cst_22 : f32 to vector<128x128xf32>
      %c0_23 = arith.constant 0 : index
      %c0_24 = arith.constant 0 : index
      %29 = vector.load %arg25[%c0_23, %c0_24] : memref<128x128xf32, #tpu.memory_space<vmem>>, vector<128x128xf32>
      tpu.vector_store %arg25[%c0_23, %c0_24], %28 {strides = array<i32>} : memref<128x128xf32, #tpu.memory_space<vmem>>, vector<128x128xf32>,
      %cst_25 = arith.constant 0.000000e+00 : f32
      %30 = vector.broadcast %cst_25 : f32 to vector<384x128xf32>
      %c0_26 = arith.constant 0 : index
      %c0_27 = arith.constant 0 : index
      %31 = vector.load %arg24[%c0_26, %c0_27] : memref<384x128xf32, #tpu.memory_space<vmem>>, vector<384x128xf32>
      tpu.vector_store %arg24[%c0_26, %c0_27], %30 {strides = array<i32>} : memref<384x128xf32, #tpu.memory_space<vmem>>, vector<384x128xf32>,
    } else {
    }
    %c0 = arith.constant 0 : index
    %c0_1 = arith.constant 0 : index
    %3 = vector.load %arg1[%c0, %c0_1] : memref<384x128xbf16, #tpu.memory_space<vmem>>, vector<384x128xbf16>
    %c0_2 = arith.constant 0 : index
    %c0_3 = arith.constant 0 : index
    %4 = vector.load %arg4[%c0_2, %c0_3] : memref<128x128xbf16, #tpu.memory_space<vmem>>, vector<128x128xbf16>
    %cst = arith.constant dense<0.000000e+00> : vector<384x128xf32>
    %5 = tpu.matmul %3, %4, %cst {dimension_numbers = #tpu.dot_dimension_numbers<[1], [0], [0], [1], [0, 0, 1, 1], [], []>} : vector<384x128xbf16>, vector<128x128xbf16>, vector<384x128xf32> -> vector<384x128xf32>
    %c0_4 = arith.constant 0 : index
    %c0_5 = arith.constant 0 : index
    %6 = vector.load %arg5[%c0_4, %c0_5] : memref<1x128xf32, #tpu.memory_space<vmem>>, vector<1x128xf32>
    %7 = vector.broadcast %6 : vector<1x128xf32> to vector<384x128xf32>
    %8 = arith.addf %5, %7 : vector<384x128xf32>
    %cst_6 = arith.constant 0.000000e+00 : f32
    %9 = vector.broadcast %cst_6 : f32 to vector<384x128xf32>
    %10 = arith.maximumf %8, %9 : vector<384x128xf32>
    %11 = arith.truncf %10 : vector<384x128xf32> to vector<384x128xbf16>
    %c0_7 = arith.constant 0 : index
    %c0_8 = arith.constant 0 : index
    %12 = vector.load %arg6[%c0_7, %c0_8] : memref<128x128xbf16, #tpu.memory_space<vmem>>, vector<128x128xbf16>
    %cst_9 = arith.constant dense<0.000000e+00> : vector<384x128xf32>
    %13 = tpu.matmul %11, %12, %cst_9 {dimension_numbers = #tpu.dot_dimension_numbers<[1], [0], [0], [1], [0, 0, 1, 1], [], []>} : vector<384x128xbf16>, vector<128x128xbf16>, vector<384x128xf32> -> vector<384x128xf32>
    %c0_10 = arith.constant 0 : index
    %c0_11 = arith.constant 0 : index
    %14 = vector.load %arg7[%c0_10, %c0_11] : memref<1x128xf32, #tpu.memory_space<vmem>>, vector<1x128xf32>
    %15 = vector.broadcast %14 : vector<1x128xf32> to vector<384x128xf32>
    %16 = arith.addf %13, %15 : vector<384x128xf32>
    %cst_12 = arith.constant 0.000000e+00 : f32
    %17 = vector.broadcast %cst_12 : f32 to vector<384x128xf32>
    %18 = arith.maximumf %16, %17 : vector<384x128xf32>
    %c0_13 = arith.constant 0 : index
    %c0_14 = arith.constant 0 : index
    %19 = vector.load %arg25[%c0_13, %c0_14] : memref<128x128xf32, #tpu.memory_space<vmem>>, vector<128x128xf32>
    %c0_15 = arith.constant 0 : index
    %c0_16 = arith.constant 0 : index
    %20 = vector.load %arg2[%c0_15, %c0_16] : memref<128x384xbf16, #tpu.memory_space<vmem>>, vector<128x384xbf16>
    %21 = arith.truncf %18 : vector<384x128xf32> to vector<384x128xbf16>
    %cst_17 = arith.constant dense<0.000000e+00> : vector<128x128xf32>
    %22 = tpu.matmul %20, %21, %cst_17 {dimension_numbers = #tpu.dot_dimension_numbers<[1], [0], [0], [1], [0, 0, 1, 1], [], []>} : vector<128x384xbf16>, vector<384x128xbf16>, vector<128x128xf32> -> vector<128x128xf32>
    %23 = arith.addf %19, %22 : vector<128x128xf32>
    %c0_18 = arith.constant 0 : index
    %c0_19 = arith.constant 0 : index
    %24 = vector.load %arg25[%c0_18, %c0_19] : memref<128x128xf32, #tpu.memory_space<vmem>>, vector<128x128xf32>
    tpu.vector_store %arg25[%c0_18, %c0_19], %23 {strides = array<i32>} : memref<128x128xf32, #tpu.memory_space<vmem>>, vector<128x128xf32>,
    %c0_i32_20 = arith.constant 0 : i32
    %25 = arith.cmpi eq, %arg0, %c0_i32_20 : i32
    %26 = arith.extui %25 : i1 to i32
    %c0_i32_21 = arith.constant 0 : i32
    %27 = arith.cmpi ne, %26, %c0_i32_21 : i32
    scf.if %27 {
      %c0_22 = arith.constant 0 : index
      %c0_23 = arith.constant 0 : index
      %28 = vector.load %arg25[%c0_22, %c0_23] : memref<128x128xf32, #tpu.memory_space<vmem>>, vector<128x128xf32>
      %29 = arith.truncf %28 : vector<128x128xf32> to vector<128x128xbf16>
      %c0_24 = arith.constant 0 : index
      %c0_25 = arith.constant 0 : index
      %30 = vector.load %arg8[%c0_24, %c0_25] : memref<128x128xbf16, #tpu.memory_space<vmem>>, vector<128x128xbf16>
      %cst_26 = arith.constant dense<0.000000e+00> : vector<128x128xf32>
      %31 = tpu.matmul %29, %30, %cst_26 {dimension_numbers = #tpu.dot_dimension_numbers<[1], [0], [0], [1], [0, 0, 1, 1], [], []>} : vector<128x128xbf16>, vector<128x128xbf16>, vector<128x128xf32> -> vector<128x128xf32>
      %c0_27 = arith.constant 0 : index
      %c0_28 = arith.constant 0 : index
      %32 = vector.load %arg9[%c0_27, %c0_28] : memref<1x128xf32, #tpu.memory_space<vmem>>, vector<1x128xf32>
      %33 = vector.broadcast %32 : vector<1x128xf32> to vector<128x128xf32>
      %34 = arith.addf %31, %33 : vector<128x128xf32>
      %cst_29 = arith.constant 0.000000e+00 : f32
      %35 = vector.broadcast %cst_29 : f32 to vector<128x128xf32>
      %36 = arith.maximumf %34, %35 : vector<128x128xf32>
      %37 = arith.truncf %36 : vector<128x128xf32> to vector<128x128xbf16>
      %c0_30 = arith.constant 0 : index
      %c0_31 = arith.constant 0 : index
      %38 = vector.load %arg10[%c0_30, %c0_31] : memref<128x128xbf16, #tpu.memory_space<vmem>>, vector<128x128xbf16>
      %cst_32 = arith.constant dense<0.000000e+00> : vector<128x128xf32>
      %39 = tpu.matmul %37, %38, %cst_32 {dimension_numbers = #tpu.dot_dimension_numbers<[1], [0], [0], [1], [0, 0, 1, 1], [], []>} : vector<128x128xbf16>, vector<128x128xbf16>, vector<128x128xf32> -> vector<128x128xf32>
      %c0_33 = arith.constant 0 : index
      %c0_34 = arith.constant 0 : index
      %40 = vector.load %arg11[%c0_33, %c0_34] : memref<1x128xf32, #tpu.memory_space<vmem>>, vector<1x128xf32>
      %41 = vector.broadcast %40 : vector<1x128xf32> to vector<128x128xf32>
      %42 = arith.addf %39, %41 : vector<128x128xf32>
      %cst_35 = arith.constant 0.000000e+00 : f32
      %43 = vector.broadcast %cst_35 : f32 to vector<128x128xf32>
      %44 = arith.maximumf %42, %43 : vector<128x128xf32>
      %45 = arith.truncf %44 : vector<128x128xf32> to vector<128x128xbf16>
      %c0_36 = arith.constant 0 : index
      %c0_37 = arith.constant 0 : index
      %46 = vector.load %arg12[%c0_36, %c0_37] : memref<128x128xbf16, #tpu.memory_space<vmem>>, vector<128x128xbf16>
      %cst_38 = arith.constant dense<0.000000e+00> : vector<128x128xf32>
      %47 = tpu.matmul %45, %46, %cst_38 {dimension_numbers = #tpu.dot_dimension_numbers<[1], [0], [0], [1], [0, 0, 1, 1], [], []>} : vector<128x128xbf16>, vector<128x128xbf16>, vector<128x128xf32> -> vector<128x128xf32>
      %c0_39 = arith.constant 0 : index
      %c0_40 = arith.constant 0 : index
      %48 = vector.load %arg13[%c0_39, %c0_40] : memref<1x128xf32, #tpu.memory_space<vmem>>, vector<1x128xf32>
      %49 = vector.broadcast %48 : vector<1x128xf32> to vector<128x128xf32>
      %50 = arith.addf %47, %49 : vector<128x128xf32>
      %cst_41 = arith.constant 0.000000e+00 : f32
      %51 = vector.broadcast %cst_41 : f32 to vector<128x128xf32>
      %52 = arith.maximumf %50, %51 : vector<128x128xf32>
      %53 = arith.truncf %52 : vector<128x128xf32> to vector<128x128xbf16>
      %c0_42 = arith.constant 0 : index
      %c0_43 = arith.constant 0 : index
      %54 = vector.load %arg14[%c0_42, %c0_43] : memref<128x128xbf16, #tpu.memory_space<vmem>>, vector<128x128xbf16>
      %cst_44 = arith.constant dense<0.000000e+00> : vector<128x128xf32>
      %55 = tpu.matmul %53, %54, %cst_44 {dimension_numbers = #tpu.dot_dimension_numbers<[1], [0], [0], [1], [0, 0, 1, 1], [], []>} : vector<128x128xbf16>, vector<128x128xbf16>, vector<128x128xf32> -> vector<128x128xf32>
      %c0_45 = arith.constant 0 : index
      %c0_46 = arith.constant 0 : index
      %56 = vector.load %arg15[%c0_45, %c0_46] : memref<1x128xf32, #tpu.memory_space<vmem>>, vector<1x128xf32>
      %57 = vector.broadcast %56 : vector<1x128xf32> to vector<128x128xf32>
      %58 = arith.addf %55, %57 : vector<128x128xf32>
      %cst_47 = arith.constant 0.000000e+00 : f32
      %59 = vector.broadcast %cst_47 : f32 to vector<128x128xf32>
      %60 = arith.maximumf %58, %59 : vector<128x128xf32>
      %c0_48 = arith.constant 0 : index
      %c0_49 = arith.constant 0 : index
      %61 = vector.load %arg3[%c0_48, %c0_49] : memref<384x128xbf16, #tpu.memory_space<vmem>>, vector<384x128xbf16>
      %62 = arith.truncf %60 : vector<128x128xf32> to vector<128x128xbf16>
      %cst_50 = arith.constant dense<0.000000e+00> : vector<384x128xf32>
      %63 = tpu.matmul %61, %62, %cst_50 {dimension_numbers = #tpu.dot_dimension_numbers<[1], [0], [0], [1], [0, 0, 1, 1], [], []>} : vector<384x128xbf16>, vector<128x128xbf16>, vector<384x128xf32> -> vector<384x128xf32>
      %64 = arith.truncf %63 : vector<384x128xf32> to vector<384x128xbf16>
      %c0_51 = arith.constant 0 : index
      %c0_52 = arith.constant 0 : index
      %65 = vector.load %arg16[%c0_51, %c0_52] : memref<128x128xbf16, #tpu.memory_space<vmem>>, vector<128x128xbf16>
      %cst_53 = arith.constant dense<0.000000e+00> : vector<384x128xf32>
      %66 = tpu.matmul %64, %65, %cst_53 {dimension_numbers = #tpu.dot_dimension_numbers<[1], [0], [0], [1], [0, 0, 1, 1], [], []>} : vector<384x128xbf16>, vector<128x128xbf16>, vector<384x128xf32> -> vector<384x128xf32>
      %c0_54 = arith.constant 0 : index
      %c0_55 = arith.constant 0 : index
      %67 = vector.load %arg17[%c0_54, %c0_55] : memref<1x128xf32, #tpu.memory_space<vmem>>, vector<1x128xf32>
      %68 = vector.broadcast %67 : vector<1x128xf32> to vector<384x128xf32>
      %69 = arith.addf %66, %68 : vector<384x128xf32>
      %cst_56 = arith.constant 0.000000e+00 : f32
      %70 = vector.broadcast %cst_56 : f32 to vector<384x128xf32>
      %71 = arith.maximumf %69, %70 : vector<384x128xf32>
      %72 = arith.truncf %71 : vector<384x128xf32> to vector<384x128xbf16>
      %c0_57 = arith.constant 0 : index
      %c0_58 = arith.constant 0 : index
      %73 = vector.load %arg18[%c0_57, %c0_58] : memref<128x128xbf16, #tpu.memory_space<vmem>>, vector<128x128xbf16>
      %cst_59 = arith.constant dense<0.000000e+00> : vector<384x128xf32>
      %74 = tpu.matmul %72, %73, %cst_59 {dimension_numbers = #tpu.dot_dimension_numbers<[1], [0], [0], [1], [0, 0, 1, 1], [], []>} : vector<384x128xbf16>, vector<128x128xbf16>, vector<384x128xf32> -> vector<384x128xf32>
      %c0_60 = arith.constant 0 : index
      %c0_61 = arith.constant 0 : index
      %75 = vector.load %arg19[%c0_60, %c0_61] : memref<1x128xf32, #tpu.memory_space<vmem>>, vector<1x128xf32>
      %76 = vector.broadcast %75 : vector<1x128xf32> to vector<384x128xf32>
      %77 = arith.addf %74, %76 : vector<384x128xf32>
      %cst_62 = arith.constant 0.000000e+00 : f32
      %78 = vector.broadcast %cst_62 : f32 to vector<384x128xf32>
      %79 = arith.maximumf %77, %78 : vector<384x128xf32>
      %80 = arith.truncf %79 : vector<384x128xf32> to vector<384x128xbf16>
      %c0_63 = arith.constant 0 : index
      %c0_64 = arith.constant 0 : index
      %81 = vector.load %arg20[%c0_63, %c0_64] : memref<128x128xbf16, #tpu.memory_space<vmem>>, vector<128x128xbf16>
      %cst_65 = arith.constant dense<0.000000e+00> : vector<384x128xf32>
      %82 = tpu.matmul %80, %81, %cst_65 {dimension_numbers = #tpu.dot_dimension_numbers<[1], [0], [0], [1], [0, 0, 1, 1], [], []>} : vector<384x128xbf16>, vector<128x128xbf16>, vector<384x128xf32> -> vector<384x128xf32>
      %c0_66 = arith.constant 0 : index
      %c0_67 = arith.constant 0 : index
      %83 = vector.load %arg21[%c0_66, %c0_67] : memref<1x128xf32, #tpu.memory_space<vmem>>, vector<1x128xf32>
      %84 = vector.broadcast %83 : vector<1x128xf32> to vector<384x128xf32>
      %85 = arith.addf %82, %84 : vector<384x128xf32>
      %cst_68 = arith.constant 0.000000e+00 : f32
      %86 = vector.broadcast %cst_68 : f32 to vector<384x128xf32>
      %87 = arith.maximumf %85, %86 : vector<384x128xf32>
      %88 = arith.truncf %87 : vector<384x128xf32> to vector<384x128xbf16>
      %c0_69 = arith.constant 0 : index
      %c0_70 = arith.constant 0 : index
      %89 = vector.load %arg22[%c0_69, %c0_70] : memref<128x128xbf16, #tpu.memory_space<vmem>>, vector<128x128xbf16>
      %cst_71 = arith.constant dense<0.000000e+00> : vector<384x128xf32>
      %90 = tpu.matmul %88, %89, %cst_71 {dimension_numbers = #tpu.dot_dimension_numbers<[1], [0], [0], [1], [0, 0, 1, 1], [], []>} : vector<384x128xbf16>, vector<128x128xbf16>, vector<384x128xf32> -> vector<384x128xf32>
      %c0_72 = arith.constant 0 : index
      %c0_73 = arith.constant 0 : index
      %91 = vector.load %arg23[%c0_72, %c0_73] : memref<1x128xf32, #tpu.memory_space<vmem>>, vector<1x128xf32>
      %92 = vector.broadcast %91 : vector<1x128xf32> to vector<384x128xf32>
      %93 = arith.addf %90, %92 : vector<384x128xf32>
      %c0_74 = arith.constant 0 : index
      %c0_75 = arith.constant 0 : index
      %94 = vector.load %arg24[%c0_74, %c0_75] : memref<384x128xf32, #tpu.memory_space<vmem>>, vector<384x128xf32>
      tpu.vector_store %arg24[%c0_74, %c0_75], %93 {strides = array<i32>} : memref<384x128xf32, #tpu.memory_space<vmem>>, vector<384x128xf32>,
    } else {
    }
    return
  }
  func.func @transform_0(%arg0: i32) -> (i32, i32) {
    %c0_i32 = arith.constant 0 : i32
    %c0_i32_0 = arith.constant 0 : i32
    return %arg0, %c0_i32 : i32, i32
  }
  func.func @transform_1(%arg0: i32) -> (i32, i32) {
    %c0_i32 = arith.constant 0 : i32
    %c0_i32_0 = arith.constant 0 : i32
    return %c0_i32, %arg0 : i32, i32
  }
  func.func @transform_2(%arg0: i32) -> (i32, i32) {
    %c0_i32 = arith.constant 0 : i32
    %c0_i32_0 = arith.constant 0 : i32
    %c0_i32_1 = arith.constant 0 : i32
    return %c0_i32, %c0_i32_0 : i32, i32
  }
  func.func @transform_3(%arg0: i32) -> (i32, i32) {
    %c0_i32 = arith.constant 0 : i32
    %c0_i32_0 = arith.constant 0 : i32
    %c0_i32_1 = arith.constant 0 : i32
    return %c0_i32, %c0_i32_0 : i32, i32
  }
  func.func @transform_4(%arg0: i32) -> (i32, i32) {
    %c0_i32 = arith.constant 0 : i32
    %c0_i32_0 = arith.constant 0 : i32
    %c0_i32_1 = arith.constant 0 : i32
    return %c0_i32, %c0_i32_0 : i32, i32
  }
  func.func @transform_5(%arg0: i32) -> (i32, i32) {
    %c0_i32 = arith.constant 0 : i32
    %c0_i32_0 = arith.constant 0 : i32
    %c0_i32_1 = arith.constant 0 : i32
    return %c0_i32, %c0_i32_0 : i32, i32
  }
  func.func @transform_6(%arg0: i32) -> (i32, i32) {
    %c0_i32 = arith.constant 0 : i32
    %c0_i32_0 = arith.constant 0 : i32
    %c0_i32_1 = arith.constant 0 : i32
    return %c0_i32, %c0_i32_0 : i32, i32
  }
  func.func @transform_7(%arg0: i32) -> (i32, i32) {
    %c0_i32 = arith.constant 0 : i32
    %c0_i32_0 = arith.constant 0 : i32
    %c0_i32_1 = arith.constant 0 : i32
    return %c0_i32, %c0_i32_0 : i32, i32
  }
  func.func @transform_8(%arg0: i32) -> (i32, i32) {
    %c0_i32 = arith.constant 0 : i32
    %c0_i32_0 = arith.constant 0 : i32
    %c0_i32_1 = arith.constant 0 : i32
    return %c0_i32, %c0_i32_0 : i32, i32
  }
  func.func @transform_9(%arg0: i32) -> (i32, i32) {
    %c0_i32 = arith.constant 0 : i32
    %c0_i32_0 = arith.constant 0 : i32
    %c0_i32_1 = arith.constant 0 : i32
    return %c0_i32, %c0_i32_0 : i32, i32
  }
  func.func @transform_10(%arg0: i32) -> (i32, i32) {
    %c0_i32 = arith.constant 0 : i32
    %c0_i32_0 = arith.constant 0 : i32
    %c0_i32_1 = arith.constant 0 : i32
    return %c0_i32, %c0_i32_0 : i32, i32
  }
  func.func @transform_11(%arg0: i32) -> (i32, i32) {
    %c0_i32 = arith.constant 0 : i32
    %c0_i32_0 = arith.constant 0 : i32
    %c0_i32_1 = arith.constant 0 : i32
    return %c0_i32, %c0_i32_0 : i32, i32
  }
  func.func @transform_12(%arg0: i32) -> (i32, i32) {
    %c0_i32 = arith.constant 0 : i32
    %c0_i32_0 = arith.constant 0 : i32
    %c0_i32_1 = arith.constant 0 : i32
    return %c0_i32, %c0_i32_0 : i32, i32
  }
  func.func @transform_13(%arg0: i32) -> (i32, i32) {
    %c0_i32 = arith.constant 0 : i32
    %c0_i32_0 = arith.constant 0 : i32
    %c0_i32_1 = arith.constant 0 : i32
    return %c0_i32, %c0_i32_0 : i32, i32
  }
  func.func @transform_14(%arg0: i32) -> (i32, i32) {
    %c0_i32 = arith.constant 0 : i32
    %c0_i32_0 = arith.constant 0 : i32
    %c0_i32_1 = arith.constant 0 : i32
    return %c0_i32, %c0_i32_0 : i32, i32
  }
  func.func @transform_15(%arg0: i32) -> (i32, i32) {
    %c0_i32 = arith.constant 0 : i32
    %c0_i32_0 = arith.constant 0 : i32
    %c0_i32_1 = arith.constant 0 : i32
    return %c0_i32, %c0_i32_0 : i32, i32
  }
  func.func @transform_16(%arg0: i32) -> (i32, i32) {
    %c0_i32 = arith.constant 0 : i32
    %c0_i32_0 = arith.constant 0 : i32
    %c0_i32_1 = arith.constant 0 : i32
    return %c0_i32, %c0_i32_0 : i32, i32
  }
  func.func @transform_17(%arg0: i32) -> (i32, i32) {
    %c0_i32 = arith.constant 0 : i32
    %c0_i32_0 = arith.constant 0 : i32
    %c0_i32_1 = arith.constant 0 : i32
    return %c0_i32, %c0_i32_0 : i32, i32
  }
  func.func @transform_18(%arg0: i32) -> (i32, i32) {
    %c0_i32 = arith.constant 0 : i32
    %c0_i32_0 = arith.constant 0 : i32
    %c0_i32_1 = arith.constant 0 : i32
    return %c0_i32, %c0_i32_0 : i32, i32
  }
  func.func @transform_19(%arg0: i32) -> (i32, i32) {
    %c0_i32 = arith.constant 0 : i32
    %c0_i32_0 = arith.constant 0 : i32
    %c0_i32_1 = arith.constant 0 : i32
    return %c0_i32, %c0_i32_0 : i32, i32
  }
  func.func @transform_20(%arg0: i32) -> (i32, i32) {
    %c0_i32 = arith.constant 0 : i32
    %c0_i32_0 = arith.constant 0 : i32
    %c0_i32_1 = arith.constant 0 : i32
    return %c0_i32, %c0_i32_0 : i32, i32
  }
  func.func @transform_21(%arg0: i32) -> (i32, i32) {
    %c0_i32 = arith.constant 0 : i32
    %c0_i32_0 = arith.constant 0 : i32
    %c0_i32_1 = arith.constant 0 : i32
    return %c0_i32, %c0_i32_0 : i32, i32
  }
  func.func @transform_22(%arg0: i32) -> (i32, i32) {
    %c0_i32 = arith.constant 0 : i32
    %c0_i32_0 = arith.constant 0 : i32
    %c0_i32_1 = arith.constant 0 : i32
    return %c0_i32, %c0_i32_0 : i32, i32
  }
  func.func @transform_23(%arg0: i32) -> (i32, i32) {
    %c0_i32 = arith.constant 0 : i32
    %c0_i32_0 = arith.constant 0 : i32
    %c0_i32_1 = arith.constant 0 : i32
    return %c0_i32, %c0_i32_0 : i32, i32
  }
}

</mosaic_0001>

<bundles_post_ra>
// kernel: tpu_custom_call.1
= control target key start
LH: loop header
LB: loop body
LE: loop exit
PB: predicated region body
PF: predicated region fallthrough
CT: control target
= control target key end

     0   :  { %6 = vsyncpa [#allocation3], 0  ;;  %s341_s0 = inlined_call_operand.hbm [shape: f32[8,128], index: 0, kind: input, shape index: {}]   ;;  %s342_s1 = inlined_call_operand.hbm [shape: f32[8,128], index: 1, kind: output, shape index: {}]  }
   0x1   :  { %7 = vsyncpa [#allocation4], 0  ;;  %s262_s6 = smov 0  }
   0x2 LB: > { %s145_s7 = sadd.s32 4294967295, %s248_s6   ;;  %p146_p0 = scmp.ge.s32.totalorder %s248_s6, 1  ;;  %s248_s6 = sphi %s262_s6, %s13_s6  }
   0x3   : > { %p60_p1 = scmp.lt.s32.totalorder %s248_s6, 3  ;;  %p276_p3 = scmp.eq.s32.totalorder %s145_s7, 0 }
   0x4   : > { %s250_s10 = smov [#allocation2]   ;;  %s180_s15 = scalar_lea.hbm %s341_s0, 128 }
   0x5   : > { %p270_p2 = pnand %p146_p0, %p60_p1  ;;  %s73_s11 = sshll.u32 %s250_s10, 4  ;;  %s74_s11 = int_to_ptr.vmem [resolvable:$true] %s73_s11 }
   0x6   : > { %s347_s9 = scalar_select %p276_p3, 1, 0 }
   0x7   : > { %s346_s8 = scalar_select %p270_p2, 1, 0 }
   0x8   : > { %p162_p4 = pneg %p270_p2  ;;  %p181_p6 = scmp.ne.s32.totalorder %s341_s0, %s180_s15 }
   0x9   : > { %p187_p10 = scmp.lt.u32.totalorder %s180_s15, %s341_s0 }
   0xa   : > { %p284_p5 = pnand %p276_p3, %p162_p4 }
   0xc   : > { %p182_p7 = pneg %p284_p5 }
   0xe   : > { %p183_p8 = pnand %p182_p7, %p181_p6 }
  0x10   : > { %p184_p9 = pneg %p183_p8 }
  0x12   : > { %p189_p11 = pnand %p187_p10, %p184_p9 }
  0x14   : > { %192 = shalt.err (!%p189_p11)
}
  0x15   : > { %s193_s20 = scalar_lea.vmem %s74_s11, 128  ;;  %p201_p1 = scmp.lt.s32.totalorder %s74_s11, %s74_s11 }
  0x16   : > { %p194_p12 = scmp.ne.s32.totalorder %s74_s11, %s193_s20  ;;  %p202_p4 = scmp.lt.s32.totalorder %s193_s20, %s193_s20 }
  0x18   : > { %p196_p13 = pnand %p194_p12, %p182_p7  ;;  %p203_p3 = por %p202_p4, %p201_p1 }
  0x1a   : > { %p197_p0 = pneg %p196_p13 }
  0x1c   : > { %p204_p2 = pnand %p203_p3, %p197_p0 }
  0x1e   : > { %207 = shalt.err (!%p204_p2)
}
  0x1f   : > { %165 = dma.hbm_to_vmem [thread:$0]  (!%p284_p5), %s341_s0, 128, %s74_s11, [#allocation3]  }
  0x20   : > { %p349_p6 = scmp.ne.s32.totalorder %s346_s8, 0 }
  0x21   : > { %p350_p8 = scmp.ne.s32.totalorder (!%p349_p6), %s347_s9, 0 }
  0x22   : > { %86 = sbr.rel (%p349_p6) target bundleno = 67 (0x43), region = 24 }
  0x29   : > { %239 = dma.done.wait (%p350_p8), [#allocation3], 128  }
  0x2a   : > { %241 = vsyncadd (%p350_p8), [#allocation3], 4294967168  ;;  %s251_s23 = smov [#allocation5]   ;;  %v96_v0 = vld [vmem:[#allocation2] sm:$0xff]  ;;  %p312_p2 = scmp.eq.s32.totalorder %s145_s7, 1 }
  0x2b   : > { %s106_s24 = sshll.u32 %s251_s23, 4  ;;  %v97_v1 = vadd.f32 1.0, %v96_v0  ;;  %s107_s24 = int_to_ptr.vmem [resolvable:$true] %s106_s24 }
  0x2c   : > { %s208_s26 = scalar_lea.vmem %s107_s24, 128  ;;  %p215_p9 = scmp.lt.s32.totalorder %s107_s24, %s107_s24 }
  0x2d   : > { %98 = vst [vmem:[#allocation5] sm:$0xff] %v97_v1  ;;  %p209_p3 = scmp.ne.s32.totalorder %s107_s24, %s208_s26  ;;  %p216_p10 = scmp.lt.s32.totalorder %s208_s26, %s208_s26 }
  0x2f   : > { %p210_p5 = pnand %p209_p3, %p312_p2  ;;  %p217_p11 = por %p216_p10, %p215_p9 }
  0x31   : > { %p211_p7 = pneg %p210_p5 }
  0x33   : > { %p218_p12 = pnand %p217_p11, %p211_p7 }
  0x35   : > { %221 = shalt.err (!%p218_p12)
}
  0x36   : > { %s222_s29 = scalar_lea.hbm %s342_s1, 128 }
  0x37   : > { %p223_p13 = scmp.ne.s32.totalorder %s342_s1, %s222_s29  ;;  %p228_p4 = scmp.lt.u32.totalorder %s222_s29, %s342_s1 }
  0x39   : > { %p224_p0 = pnand %p223_p13, %p312_p2 }
  0x3b   : > { %p225_p1 = pneg %p224_p0 }
  0x3d   : > { %p230_p6 = pnand %p228_p4, %p225_p1 }
  0x3f   : > { %233 = shalt.err (!%p230_p6)
}
  0x40   : > { %159 = dma.vmem_to_hbm [thread:$0]  (%p312_p2), %s107_s24, 128, %s342_s1, [#allocation4]  }
  0x41   : > { %243 = dma.done.wait (%p312_p2), [#allocation4], 128  }
  0x42   : > { %245 = vsyncadd (%p312_p2), [#allocation4], 4294967168 }
  0x43 PF: > { %s13_s6 = sadd.s32 1, %s248_s6  }
  0x44   : > { %p10_p8 = scmp.ge.s32.totalorder %s13_s6, 4  }
  0x46   :  { %12 = sbr.rel (!%p10_p8) target bundleno = 2 (0x2), region = 53 }
  0x4d   :  { %119 = vsyncpa [#allocation3], 1 }
  0x4e   :  { %121 = vsyncpa [#allocation3 + $0x1], 1 }
  0x4f   :  { %122 = vsyncpa [#allocation4], 1 }
  0x50   :  { %124 = vsyncpa [#allocation4 + $0x1], 1 }

// kernel: setgnn_forward.1
= control target key start
LH: loop header
LB: loop body
LE: loop exit
PB: predicated region body
PF: predicated region fallthrough
CT: control target
= control target key end

     0   :  { %s6932_s0 = inlined_call_operand.hbm [shape: bf16[384,128], index: 0, kind: input, shape index: {}]   ;;  %s6933_s1 = inlined_call_operand.hbm [shape: bf16[128,384], index: 1, kind: input, shape index: {}]   ;;  %s6934_s2 = inlined_call_operand.hbm [shape: bf16[384,128], index: 2, kind: input, shape index: {}]   ;;  %s6935_s3 = inlined_call_operand.hbm [shape: bf16[128,128], index: 3, kind: input, shape index: {}]   ;;  %s6936_s4 = inlined_call_operand.vmem [shape: f32[1,128], index: 4, kind: input, shape index: {}]   ;;  %s6937_s5 = inlined_call_operand.hbm [shape: bf16[128,128], index: 5, kind: input, shape index: {}]   ;;  %s6938_s6 = inlined_call_operand.vmem [shape: f32[1,128], index: 6, kind: input, shape index: {}]   ;;  %s6939_s7 = inlined_call_operand.hbm [shape: bf16[128,128], index: 7, kind: input, shape index: {}]   ;;  %s6940_s8 = inlined_call_operand.vmem [shape: f32[1,128], index: 8, kind: input, shape index: {}]   ;;  %s6941_s9 = inlined_call_operand.hbm [shape: bf16[128,128], index: 9, kind: input, shape index: {}]   ;;  %s6942_s10 = inlined_call_operand.vmem [shape: f32[1,128], index: 10, kind: input, shape index: {}]   ;;  %s6943_s11 = inlined_call_operand.hbm [shape: bf16[128,128], index: 11, kind: input, shape index: {}]   ;;  %s6944_s12 = inlined_call_operand.hbm [shape: f32[1,128], index: 12, kind: input, shape index: {}]   ;;  %s6945_s13 = inlined_call_operand.hbm [shape: bf16[128,128], index: 13, kind: input, shape index: {}]   ;;  %s6946_s14 = inlined_call_operand.hbm [shape: f32[1,128], index: 14, kind: input, shape index: {}]   ;;  %s6947_s15 = inlined_call_operand.hbm [shape: bf16[128,128], index: 15, kind: input, shape index: {}]   ;;  %s6948_s16 = inlined_call_operand.hbm [shape: f32[1,128], index: 16, kind: input, shape index: {}]   ;;  %s6949_s17 = inlined_call_operand.hbm [shape: bf16[128,128], index: 17, kind: input, shape index: {}]   ;;  %s6950_s18 = inlined_call_operand.hbm [shape: f32[1,128], index: 18, kind: input, shape index: {}]   ;;  %s6951_s19 = inlined_call_operand.hbm [shape: bf16[128,128], index: 19, kind: input, shape index: {}]   ;;  %s6952_s20 = inlined_call_operand.hbm [shape: f32[1,128], index: 20, kind: input, shape index: {}]   ;;  %s6953_s21 = inlined_call_operand.vmem [shape: bf16[128,128], index: 21, kind: input, shape index: {}]   ;;  %s6954_s22 = inlined_call_operand.vmem [shape: f32[1,128], index: 22, kind: input, shape index: {}]   ;;  %s6955_s23 = inlined_call_operand.hbm [shape: f32[384,128], index: 23, kind: output, shape index: {}]  }
   0x1   :  { %6964 = sst [smem:[#allocation41_spill]] %s6932_s0 }
   0x2   :  { %6965 = sst [smem:[#allocation42_spill]] %s6933_s1 }
   0x3   :  { %6966 = sst [smem:[#allocation43_spill]] %s6934_s2 }
   0x4   :  { %6967 = sst [smem:[#allocation44_spill]] %s6935_s3 }
   0x5   :  { %6968 = sst [smem:[#allocation45_spill]] %s6936_s4 }
   0x6   :  { %6969 = sst [smem:[#allocation46_spill]] %s6937_s5 }
   0x7   :  { %6970 = sst [smem:[#allocation47_spill]] %s6938_s6 }
   0x8   :  { %6971 = sst [smem:[#allocation48_spill]] %s6939_s7 }
   0x9   :  { %6972 = sst [smem:[#allocation49_spill]] %s6953_s21 }
   0xa   :  { %6973 = sst [smem:[#allocation50_spill]] %s6954_s22 }
   0xb   :  { %6974 = sst [smem:[#allocation51_spill]] %s6955_s23 }
   0xc   :  { %28 = vsyncpa [#allocation4], 0 }
   0xd   :  { %29 = vsyncpa [#allocation7], 0 }
   0xe   :  { %30 = vsyncpa [#allocation10], 0 }
   0xf   :  { %31 = vsyncpa [#allocation13], 0 }
  0x10   :  { %32 = vsyncpa [#allocation16], 0 }
  0x11   :  { %33 = vsyncpa [#allocation19], 0 }
  0x12   :  { %34 = vsyncpa [#allocation22], 0 }
  0x13   :  { %35 = vsyncpa [#allocation25], 0 }
  0x14   :  { %36 = vsyncpa [#allocation28], 0 }
  0x15   :  { %37 = vsyncpa [#allocation5], 0  ;;  %s6158_s4 = smov [#allocation6]   ;;  %s6975_s5 = sld [smem:[#allocation42_spill]] }
  0x16   :  { %s55_s30 = sshll.u32 %s6158_s4, 4  ;;  %s56_s30 = int_to_ptr.vmem [resolvable:$true] %s55_s30 }
  0x1b   :  { %s5742_s1 = scalar_lea.hbm %s6975_s5, 3072 }
  0x1c   :  { %p5743_p0 = scmp.ne.s32.totalorder %s6975_s5, %s5742_s1  ;;  %p5746_p1 = scmp.lt.u32.totalorder %s5742_s1, %s6975_s5 }
  0x1e   :  { %p5748_p2 = pnand %p5746_p1, %p5743_p0 }
  0x20   :  { %5751 = shalt.err (!%p5748_p2)
}
  0x21   :  { %s5752_s7 = scalar_lea.vmem %s56_s30, 3072  ;;  %p5757_p4 = scmp.lt.s32.totalorder %s56_s30, %s56_s30 }
  0x22   :  { %p5753_p3 = scmp.ne.s32.totalorder %s56_s30, %s5752_s7  ;;  %p5758_p5 = scmp.lt.s32.totalorder %s5752_s7, %s5752_s7 }
  0x24   :  { %p5759_p6 = por %p5758_p5, %p5757_p4 }
  0x26   :  { %p5760_p7 = pnand %p5759_p6, %p5753_p3 }
  0x28   :  { %5763 = shalt.err (!%p5760_p7)
}
  0x29   :  { %s6159_s28 = smov 192   ;;  %s6160_s29 = smov 12  }
  0x2a   :  { %61 = dma.hbm_to_vmem [thread:$0]  %s6975_s5, 3072, %s56_s30, [#allocation7], %s6159_s28, %s6159_s28, %s6160_s29  }
  0x2b   :  { %s6161_s4 = smov [#allocation9]   ;;  %s6162_s25 = smov [#allocation12]  }
  0x2c   :  { %s79_s24 = sshll.u32 %s6161_s4, 4  ;;  %s107_s1 = sshll.u32 %s6162_s25, 4  ;;  %s80_s24 = int_to_ptr.vmem [resolvable:$true] %s79_s24  ;;  %s108_s1 = int_to_ptr.vmem [resolvable:$true] %s107_s1 }
  0x2d   :  { %s6976_s6 = sld [smem:[#allocation44_spill]] }
  0x33   :  { %s5764_s27 = scalar_lea.hbm %s6976_s6, 1024 }
  0x34   :  { %p5765_p8 = scmp.ne.s32.totalorder %s6976_s6, %s5764_s27  ;;  %p5768_p9 = scmp.lt.u32.totalorder %s5764_s27, %s6976_s6 }
  0x36   :  { %p5770_p10 = pnand %p5768_p9, %p5765_p8 }
  0x38   :  { %5773 = shalt.err (!%p5770_p10)
}
  0x39   :  { %s5774_s30 = scalar_lea.vmem %s80_s24, 1024  ;;  %p5779_p12 = scmp.lt.s32.totalorder %s80_s24, %s80_s24 }
  0x3a   :  { %p5775_p11 = scmp.ne.s32.totalorder %s80_s24, %s5774_s30  ;;  %p5780_p13 = scmp.lt.s32.totalorder %s5774_s30, %s5774_s30 }
  0x3c   :  { %p5781_p0 = por %p5780_p13, %p5779_p12 }
  0x3e   :  { %p5782_p1 = pnand %p5781_p0, %p5775_p11 }
  0x40   :  { %5785 = shalt.err (!%p5782_p1)
}
  0x41   :  { %s6163_s5 = smov 64   ;;  %s6164_s28 = smov 4  }
  0x42   :  { %85 = dma.hbm_to_vmem [thread:$0]  %s6976_s6, 1024, %s80_s24, [#allocation10], %s6163_s5, %s6163_s5, %s6164_s28  }
  0x43   :  { %s6977_s3 = sld [smem:[#allocation48_spill]] }
  0x49   :  { %s5786_s0 = scalar_lea.hbm %s6977_s3, 1024 }
  0x4a   :  { %p5787_p2 = scmp.ne.s32.totalorder %s6977_s3, %s5786_s0  ;;  %p5790_p3 = scmp.lt.u32.totalorder %s5786_s0, %s6977_s3 }
  0x4c   :  { %p5792_p4 = pnand %p5790_p3, %p5787_p2 }
  0x4e   :  { %5795 = shalt.err (!%p5792_p4)
}
  0x4f   :  { %s5796_s27 = scalar_lea.vmem %s108_s1, 1024  ;;  %p5801_p6 = scmp.lt.s32.totalorder %s108_s1, %s108_s1 }
  0x50   :  { %p5797_p5 = scmp.ne.s32.totalorder %s108_s1, %s5796_s27  ;;  %p5802_p7 = scmp.lt.s32.totalorder %s5796_s27, %s5796_s27 }
  0x52   :  { %p5803_p8 = por %p5802_p7, %p5801_p6 }
  0x54   :  { %p5804_p9 = pnand %p5803_p8, %p5797_p5 }
  0x56   :  { %5807 = shalt.err (!%p5804_p9)
}
  0x57   :  { %113 = dma.hbm_to_vmem [thread:$0]  %s6977_s3, 1024, %s108_s1, [#allocation13], %s6163_s5, %s6163_s5, %s6164_s28  }
  0x58   :  { %s6165_s7 = smov [#allocation15]   ;;  %s6166_s23 = smov [#allocation18]  }
  0x59   :  { %s135_s30 = sshll.u32 %s6165_s7, 4  ;;  %s157_s29 = sshll.u32 %s6166_s23, 4  ;;  %s136_s30 = int_to_ptr.vmem [resolvable:$true] %s135_s30  ;;  %s158_s29 = int_to_ptr.vmem [resolvable:$true] %s157_s29 }
  0x5a   :  { %s5808_s0 = scalar_lea.hbm %s6943_s11, 1024 }
  0x5b   :  { %p5809_p10 = scmp.ne.s32.totalorder %s6943_s11, %s5808_s0  ;;  %p5812_p11 = scmp.lt.u32.totalorder %s5808_s0, %s6943_s11 }
  0x5d   :  { %p5814_p12 = pnand %p5812_p11, %p5809_p10 }
  0x5f   :  { %5817 = shalt.err (!%p5814_p12)
}
  0x60   :  { %s5818_s1 = scalar_lea.vmem %s136_s30, 1024  ;;  %p5823_p0 = scmp.lt.s32.totalorder %s136_s30, %s136_s30 }
  0x61   :  { %p5819_p13 = scmp.ne.s32.totalorder %s136_s30, %s5818_s1  ;;  %p5824_p1 = scmp.lt.s32.totalorder %s5818_s1, %s5818_s1 }
  0x63   :  { %p5825_p2 = por %p5824_p1, %p5823_p0 }
  0x65   :  { %p5826_p3 = pnand %p5825_p2, %p5819_p13 }
  0x67   :  { %5829 = shalt.err (!%p5826_p3)
}
  0x68   :  { %141 = dma.hbm_to_vmem [thread:$0]  %s6943_s11, 1024, %s136_s30, [#allocation16], %s6163_s5, %s6163_s5, %s6164_s28  }
  0x69   :  { %s5830_s7 = scalar_lea.hbm %s6945_s13, 1024 }
  0x6a   :  { %p5831_p4 = scmp.ne.s32.totalorder %s6945_s13, %s5830_s7  ;;  %p5834_p5 = scmp.lt.u32.totalorder %s5830_s7, %s6945_s13 }
  0x6c   :  { %p5836_p6 = pnand %p5834_p5, %p5831_p4 }
  0x6e   :  { %5839 = shalt.err (!%p5836_p6)
}
  0x6f   :  { %s5840_s4 = scalar_lea.vmem %s158_s29, 1024  ;;  %p5845_p8 = scmp.lt.s32.totalorder %s158_s29, %s158_s29 }
  0x70   :  { %p5841_p7 = scmp.ne.s32.totalorder %s158_s29, %s5840_s4  ;;  %p5846_p9 = scmp.lt.s32.totalorder %s5840_s4, %s5840_s4 }
  0x72   :  { %p5847_p10 = por %p5846_p9, %p5845_p8 }
  0x74   :  { %p5848_p11 = pnand %p5847_p10, %p5841_p7 }
  0x76   :  { %5851 = shalt.err (!%p5848_p11)
}
  0x77   :  { %163 = dma.hbm_to_vmem [thread:$0]  %s6945_s13, 1024, %s158_s29, [#allocation19], %s6163_s5, %s6163_s5, %s6164_s28  }
  0x78   :  { %s6167_s25 = smov [#allocation21]   ;;  %s6168_s2 = smov [#allocation24]  }
  0x79   :  { %s179_s26 = sshll.u32 %s6167_s25, 4  ;;  %s201_s1 = sshll.u32 %s6168_s2, 4  ;;  %s180_s26 = int_to_ptr.vmem [resolvable:$true] %s179_s26  ;;  %s202_s1 = int_to_ptr.vmem [resolvable:$true] %s201_s1 }
  0x7a   :  { %s5852_s24 = scalar_lea.hbm %s6947_s15, 1024 }
  0x7b   :  { %p5853_p12 = scmp.ne.s32.totalorder %s6947_s15, %s5852_s24  ;;  %p5856_p13 = scmp.lt.u32.totalorder %s5852_s24, %s6947_s15 }
  0x7d   :  { %p5858_p0 = pnand %p5856_p13, %p5853_p12 }
  0x7f   :  { %5861 = shalt.err (!%p5858_p0)
}
  0x80   :  { %s5862_s13 = scalar_lea.vmem %s180_s26, 1024  ;;  %p5867_p2 = scmp.lt.s32.totalorder %s180_s26, %s180_s26 }
  0x81   :  { %p5863_p1 = scmp.ne.s32.totalorder %s180_s26, %s5862_s13  ;;  %p5868_p3 = scmp.lt.s32.totalorder %s5862_s13, %s5862_s13 }
  0x83   :  { %p5869_p4 = por %p5868_p3, %p5867_p2 }
  0x85   :  { %p5870_p5 = pnand %p5869_p4, %p5863_p1 }
  0x87   :  { %5873 = shalt.err (!%p5870_p5)
}
  0x88   :  { %185 = dma.hbm_to_vmem [thread:$0]  %s6947_s15, 1024, %s180_s26, [#allocation22], %s6163_s5, %s6163_s5, %s6164_s28  }
  0x89   :  { %s5874_s11 = scalar_lea.hbm %s6949_s17, 1024 }
  0x8a   :  { %p5875_p6 = scmp.ne.s32.totalorder %s6949_s17, %s5874_s11  ;;  %p5878_p7 = scmp.lt.u32.totalorder %s5874_s11, %s6949_s17 }
  0x8c   :  { %p5880_p8 = pnand %p5878_p7, %p5875_p6 }
  0x8e   :  { %5883 = shalt.err (!%p5880_p8)
}
  0x8f   :  { %s5884_s27 = scalar_lea.vmem %s202_s1, 1024  ;;  %p5889_p10 = scmp.lt.s32.totalorder %s202_s1, %s202_s1 }
  0x90   :  { %p5885_p9 = scmp.ne.s32.totalorder %s202_s1, %s5884_s27  ;;  %p5890_p11 = scmp.lt.s32.totalorder %s5884_s27, %s5884_s27 }
  0x92   :  { %p5891_p12 = por %p5890_p11, %p5889_p10 }
  0x94   :  { %p5892_p13 = pnand %p5891_p12, %p5885_p9 }
  0x96   :  { %5895 = shalt.err (!%p5892_p13)
}
  0x97   :  { %207 = dma.hbm_to_vmem [thread:$0]  %s6949_s17, 1024, %s202_s1, [#allocation25], %s6163_s5, %s6163_s5, %s6164_s28  }
  0x98   :  { %s6169_s24 = smov [#allocation27]   ;;  %s6170_s7 = smov [#allocation3]  }
  0x99   :  { %s223_s6 = sshll.u32 %s6169_s24, 4  ;;  %s43_s23 = sshll.u32 %s6170_s7, 4  ;;  %s224_s6 = int_to_ptr.vmem [resolvable:$true] %s223_s6  ;;  %s44_s23 = int_to_ptr.vmem [resolvable:$true] %s43_s23 }
  0x9a   :  { %s5896_s29 = scalar_lea.hbm %s6951_s19, 1024 }
  0x9b   :  { %p5897_p0 = scmp.ne.s32.totalorder %s6951_s19, %s5896_s29  ;;  %p5900_p1 = scmp.lt.u32.totalorder %s5896_s29, %s6951_s19 }
  0x9d   :  { %p5902_p2 = pnand %p5900_p1, %p5897_p0 }
  0x9f   :  { %5905 = shalt.err (!%p5902_p2)
}
  0xa0   :  { %s5906_s17 = scalar_lea.vmem %s224_s6, 1024  ;;  %p5911_p4 = scmp.lt.s32.totalorder %s224_s6, %s224_s6 }
  0xa1   :  { %p5907_p3 = scmp.ne.s32.totalorder %s224_s6, %s5906_s17  ;;  %p5912_p5 = scmp.lt.s32.totalorder %s5906_s17, %s5906_s17 }
  0xa3   :  { %p5913_p6 = por %p5912_p5, %p5911_p4 }
  0xa5   :  { %p5914_p7 = pnand %p5913_p6, %p5907_p3 }
  0xa7   :  { %5917 = shalt.err (!%p5914_p7)
}
  0xa8   :  { %229 = dma.hbm_to_vmem [thread:$0]  %s6951_s19, 1024, %s224_s6, [#allocation28], %s6163_s5, %s6163_s5, %s6164_s28  }
  0xa9   :  { %s6978_s3 = sld [smem:[#allocation41_spill]] }
  0xaf   :  { %s5918_s27 = scalar_lea.hbm %s6978_s3, 3072 }
  0xb0   :  { %p5919_p8 = scmp.ne.s32.totalorder %s6978_s3, %s5918_s27  ;;  %p5922_p9 = scmp.lt.u32.totalorder %s5918_s27, %s6978_s3 }
  0xb2   :  { %p5924_p10 = pnand %p5922_p9, %p5919_p8 }
  0xb4   :  { %5927 = shalt.err (!%p5924_p10)
}
  0xb5   :  { %s5928_s21 = scalar_lea.vmem %s44_s23, 3072  ;;  %p5933_p12 = scmp.lt.s32.totalorder %s44_s23, %s44_s23 }
  0xb6   :  { %p5929_p11 = scmp.ne.s32.totalorder %s44_s23, %s5928_s21  ;;  %p5934_p13 = scmp.lt.s32.totalorder %s5928_s21, %s5928_s21 }
  0xb8   :  { %p5935_p0 = por %p5934_p13, %p5933_p12 }
  0xba   :  { %p5936_p1 = pnand %p5935_p0, %p5929_p11 }
  0xbc   :  { %5939 = shalt.err (!%p5936_p1)
}
  0xbd   :  { %49 = dma.hbm_to_vmem [thread:$0]  %s6978_s3, 3072, %s44_s23, [#allocation4], %s6163_s5, %s6163_s5, %s6164_s28  }
  0xbe   :  { %s6171_s13 = smov [#allocation8]   ;;  %s6172_s22 = smov [#allocation11]  }
  0xbf   :  { %s67_s29 = sshll.u32 %s6171_s13, 4  ;;  %s93_s0 = sshll.u32 %s6172_s22, 4  ;;  %s68_s29 = int_to_ptr.vmem [resolvable:$true] %s67_s29  ;;  %s94_s0 = int_to_ptr.vmem [resolvable:$true] %s93_s0 }
  0xc0   :  { %s6979_s17 = sld [smem:[#allocation43_spill]] }
  0xc6   :  { %s5940_s1 = scalar_lea.hbm %s6979_s17, 3072 }
  0xc7   :  { %p5941_p2 = scmp.ne.s32.totalorder %s6979_s17, %s5940_s1  ;;  %p5944_p3 = scmp.lt.u32.totalorder %s5940_s1, %s6979_s17 }
  0xc9   :  { %p5946_p4 = pnand %p5944_p3, %p5941_p2 }
  0xcb   :  { %5949 = shalt.err (!%p5946_p4)
}
  0xcc   :  { %s5950_s23 = scalar_lea.vmem %s68_s29, 3072  ;;  %p5955_p6 = scmp.lt.s32.totalorder %s68_s29, %s68_s29 }
  0xcd   :  { %p5951_p5 = scmp.ne.s32.totalorder %s68_s29, %s5950_s23  ;;  %p5956_p7 = scmp.lt.s32.totalorder %s5950_s23, %s5950_s23 }
  0xcf   :  { %p5957_p8 = por %p5956_p7, %p5955_p6 }
  0xd1   :  { %p5958_p9 = pnand %p5957_p8, %p5951_p5 }
  0xd3   :  { %5961 = shalt.err (!%p5958_p9)
}
  0xd4   :  { %73 = dma.hbm_to_vmem [thread:$0]  %s6979_s17, 3072, %s68_s29, [#allocation7], %s6163_s5, %s6163_s5, %s6164_s28  }
  0xd5   :  { %s6980_s7 = sld [smem:[#allocation46_spill]] }
  0xdb   :  { %s5962_s21 = scalar_lea.hbm %s6980_s7, 1024 }
  0xdc   :  { %p5963_p10 = scmp.ne.s32.totalorder %s6980_s7, %s5962_s21  ;;  %p5966_p11 = scmp.lt.u32.totalorder %s5962_s21, %s6980_s7 }
  0xde   :  { %p5968_p12 = pnand %p5966_p11, %p5963_p10 }
  0xe0   :  { %5971 = shalt.err (!%p5968_p12)
}
  0xe1   :  { %s5972_s4 = scalar_lea.vmem %s94_s0, 1024  ;;  %p5977_p0 = scmp.lt.s32.totalorder %s94_s0, %s94_s0 }
  0xe2   :  { %p5973_p13 = scmp.ne.s32.totalorder %s94_s0, %s5972_s4  ;;  %p5978_p1 = scmp.lt.s32.totalorder %s5972_s4, %s5972_s4 }
  0xe4   :  { %p5979_p2 = por %p5978_p1, %p5977_p0 }
  0xe6   :  { %p5980_p3 = pnand %p5979_p2, %p5973_p13 }
  0xe8   :  { %5983 = shalt.err (!%p5980_p3)
}
  0xe9   :  { %99 = dma.hbm_to_vmem [thread:$0]  %s6980_s7, 1024, %s94_s0, [#allocation10], %s6163_s5, %s6163_s5, %s6164_s28  }
  0xea   :  { %s6173_s17 = smov [#allocation14]   ;;  %s6174_s30 = smov [#allocation17]  }
  0xeb   :  { %s121_s1 = sshll.u32 %s6173_s17, 4  ;;  %s148_s25 = sshll.u32 %s6174_s30, 4  ;;  %s122_s1 = int_to_ptr.vmem [resolvable:$true] %s121_s1  ;;  %s149_s25 = int_to_ptr.vmem [resolvable:$true] %s148_s25 }
  0xec   :  { %s5984_s23 = scalar_lea.hbm %s6941_s9, 1024 }
  0xed   :  { %p5985_p4 = scmp.ne.s32.totalorder %s6941_s9, %s5984_s23  ;;  %p5988_p5 = scmp.lt.u32.totalorder %s5984_s23, %s6941_s9 }
  0xef   :  { %p5990_p6 = pnand %p5988_p5, %p5985_p4 }
  0xf1   :  { %5993 = shalt.err (!%p5990_p6)
}
  0xf2   :  { %s5994_s0 = scalar_lea.vmem %s122_s1, 1024  ;;  %p5999_p8 = scmp.lt.s32.totalorder %s122_s1, %s122_s1 }
  0xf3   :  { %p5995_p7 = scmp.ne.s32.totalorder %s122_s1, %s5994_s0  ;;  %p6000_p9 = scmp.lt.s32.totalorder %s5994_s0, %s5994_s0 }
  0xf5   :  { %p6001_p10 = por %p6000_p9, %p5999_p8 }
  0xf7   :  { %p6002_p11 = pnand %p6001_p10, %p5995_p7 }
  0xf9   :  { %6005 = shalt.err (!%p6002_p11)
}
  0xfa   :  { %127 = dma.hbm_to_vmem [thread:$0]  %s6941_s9, 1024, %s122_s1, [#allocation13], %s6163_s5, %s6163_s5, %s6164_s28  }
  0xfb   :  { %s6006_s13 = scalar_lea.hbm %s6944_s12, 16 }
  0xfc   :  { %p6007_p12 = scmp.ne.s32.totalorder %s6944_s12, %s6006_s13  ;;  %p6010_p13 = scmp.lt.u32.totalorder %s6006_s13, %s6944_s12 }
  0xfe   :  { %p6012_p0 = pnand %p6010_p13, %p6007_p12 }
 0x100   :  { %6015 = shalt.err (!%p6012_p0)
}
 0x101   :  { %s6016_s17 = scalar_lea.vmem %s149_s25, 16  ;;  %s6020_s30 = scalar_lea.vmem %s149_s25, 32 }
 0x102   :  { %p6017_p1 = scmp.ne.s32.totalorder %s149_s25, %s6016_s17  ;;  %p6021_p2 = scmp.lt.s32.totalorder %s149_s25, %s149_s25 }
 0x103   :  { %p6022_p3 = scmp.lt.s32.totalorder %s6020_s30, %s6016_s17 }
 0x105   :  { %p6023_p4 = por %p6022_p3, %p6021_p2 }
 0x107   :  { %p6024_p5 = pnand %p6023_p4, %p6017_p1 }
 0x109   :  { %6027 = shalt.err (!%p6024_p5)
}
 0x10a   :  { %151 = dma.hbm_to_vmem [thread:$0]  %s6944_s12, 16, %s149_s25, [#allocation16]  }
 0x10b   :  { %s6175_s28 = smov [#allocation20]   ;;  %s6176_s2 = smov [#allocation23]  }
 0x10c   :  { %s170_s1 = sshll.u32 %s6175_s28, 4  ;;  %s192_s27 = sshll.u32 %s6176_s2, 4  ;;  %s171_s1 = int_to_ptr.vmem [resolvable:$true] %s170_s1  ;;  %s193_s27 = int_to_ptr.vmem [resolvable:$true] %s192_s27 }
 0x10d   :  { %s6028_s15 = scalar_lea.hbm %s6946_s14, 16 }
 0x10e   :  { %p6029_p6 = scmp.ne.s32.totalorder %s6946_s14, %s6028_s15  ;;  %p6032_p7 = scmp.lt.u32.totalorder %s6028_s15, %s6946_s14 }
 0x110   :  { %p6034_p8 = pnand %p6032_p7, %p6029_p6 }
 0x112   :  { %6037 = shalt.err (!%p6034_p8)
}
 0x113   :  { %s6038_s12 = scalar_lea.vmem %s171_s1, 16  ;;  %s6042_s25 = scalar_lea.vmem %s171_s1, 32 }
 0x114   :  { %p6039_p9 = scmp.ne.s32.totalorder %s171_s1, %s6038_s12  ;;  %p6043_p10 = scmp.lt.s32.totalorder %s171_s1, %s171_s1 }
 0x115   :  { %p6044_p11 = scmp.lt.s32.totalorder %s6042_s25, %s6038_s12 }
 0x117   :  { %p6045_p12 = por %p6044_p11, %p6043_p10 }
 0x119   :  { %p6046_p13 = pnand %p6045_p12, %p6039_p9 }
 0x11b   :  { %6049 = shalt.err (!%p6046_p13)
}
 0x11c   :  { %173 = dma.hbm_to_vmem [thread:$0]  %s6946_s14, 16, %s171_s1, [#allocation19]  }
 0x11d   :  { %s6050_s22 = scalar_lea.hbm %s6948_s16, 16 }
 0x11e   :  { %p6051_p0 = scmp.ne.s32.totalorder %s6948_s16, %s6050_s22  ;;  %p6054_p1 = scmp.lt.u32.totalorder %s6050_s22, %s6948_s16 }
 0x120   :  { %p6056_p2 = pnand %p6054_p1, %p6051_p0 }
 0x122   :  { %6059 = shalt.err (!%p6056_p2)
}
 0x123   :  { %s6060_s30 = scalar_lea.vmem %s193_s27, 16  ;;  %s6064_s9 = scalar_lea.vmem %s193_s27, 32 }
 0x124   :  { %p6061_p3 = scmp.ne.s32.totalorder %s193_s27, %s6060_s30  ;;  %p6065_p4 = scmp.lt.s32.totalorder %s193_s27, %s193_s27 }
 0x125   :  { %p6066_p5 = scmp.lt.s32.totalorder %s6064_s9, %s6060_s30 }
 0x127   :  { %p6067_p6 = por %p6066_p5, %p6065_p4 }
 0x129   :  { %p6068_p7 = pnand %p6067_p6, %p6061_p3 }
 0x12b   :  { %6071 = shalt.err (!%p6068_p7)
}
 0x12c   :  { %195 = dma.hbm_to_vmem [thread:$0]  %s6948_s16, 16, %s193_s27, [#allocation22]  }
 0x12d   :  { %s6177_s28 = smov [#allocation26]   ;;  %s6178_s2 = smov [#allocation29]  }
 0x12e   :  { %s214_s1 = sshll.u32 %s6177_s28, 4  ;;  %s236_s23 = sshll.u32 %s6178_s2, 4  ;;  %s215_s1 = int_to_ptr.vmem [resolvable:$true] %s214_s1  ;;  %s237_s23 = int_to_ptr.vmem [resolvable:$true] %s236_s23 }
 0x12f   :  { %s6072_s26 = scalar_lea.hbm %s6950_s18, 16 }
 0x130   :  { %p6073_p8 = scmp.ne.s32.totalorder %s6950_s18, %s6072_s26  ;;  %p6076_p9 = scmp.lt.u32.totalorder %s6072_s26, %s6950_s18 }
 0x132   :  { %p6078_p10 = pnand %p6076_p9, %p6073_p8 }
 0x134   :  { %6081 = shalt.err (!%p6078_p10)
}
 0x135   :  { %s6082_s16 = scalar_lea.vmem %s215_s1, 16  ;;  %s6086_s27 = scalar_lea.vmem %s215_s1, 32 }
 0x136   :  { %p6083_p11 = scmp.ne.s32.totalorder %s215_s1, %s6082_s16  ;;  %p6087_p12 = scmp.lt.s32.totalorder %s215_s1, %s215_s1 }
 0x137   :  { %p6088_p13 = scmp.lt.s32.totalorder %s6086_s27, %s6082_s16 }
 0x139   :  { %p6089_p0 = por %p6088_p13, %p6087_p12 }
 0x13b   :  { %p6090_p1 = pnand %p6089_p0, %p6083_p11 }
 0x13d   :  { %6093 = shalt.err (!%p6090_p1)
}
 0x13e   :  { %217 = dma.hbm_to_vmem [thread:$0]  %s6950_s18, 16, %s215_s1, [#allocation25]  }
 0x13f   :  { %s6094_s13 = scalar_lea.hbm %s6952_s20, 16 }
 0x140   :  { %p6095_p2 = scmp.ne.s32.totalorder %s6952_s20, %s6094_s13  ;;  %p6098_p3 = scmp.lt.u32.totalorder %s6094_s13, %s6952_s20 }
 0x142   :  { %p6100_p4 = pnand %p6098_p3, %p6095_p2 }
 0x144   :  { %6103 = shalt.err (!%p6100_p4)
}
 0x145   :  { %s6104_s17 = scalar_lea.vmem %s237_s23, 16  ;;  %s6108_s30 = scalar_lea.vmem %s237_s23, 32 }
 0x146   :  { %p6105_p5 = scmp.ne.s32.totalorder %s237_s23, %s6104_s17  ;;  %p6109_p6 = scmp.lt.s32.totalorder %s237_s23, %s237_s23 }
 0x147   :  { %p6110_p7 = scmp.lt.s32.totalorder %s6108_s30, %s6104_s17 }
 0x149   :  { %p6111_p8 = por %p6110_p7, %p6109_p6 }
 0x14b   :  { %p6112_p9 = pnand %p6111_p8, %p6105_p5 }
 0x14d   :  { %6115 = shalt.err (!%p6112_p9)
}
 0x14e   :  { %239 = dma.hbm_to_vmem [thread:$0]  %s6952_s20, 16, %s237_s23, [#allocation28]  }
 0x14f   :  { %6138 = dma.done.wait [#allocation4], 3072  }
 0x150   :  { %6139 = vsyncadd [#allocation4], 4294964224 }
 0x151   :  { %6140 = dma.done.wait [#allocation7], 6144  }
 0x152   :  { %6141 = vsyncadd [#allocation7], 4294961152 }
 0x153   :  { %6142 = dma.done.wait [#allocation10], 2048  }
 0x154   :  { %6143 = vsyncadd [#allocation10], 4294965248 }
 0x155   :  { %6144 = dma.done.wait [#allocation13], 2048  }
 0x156   :  { %6145 = vsyncadd [#allocation13], 4294965248 }
 0x157   :  { %6146 = dma.done.wait [#allocation16], 1040  }
 0x158   :  { %6147 = vsyncadd [#allocation16], 4294966256 }
 0x159   :  { %6148 = dma.done.wait [#allocation19], 1040  }
 0x15a   :  { %6149 = vsyncadd [#allocation19], 4294966256 }
 0x15b   :  { %6150 = dma.done.wait [#allocation22], 1040  }
 0x15c   :  { %6151 = vsyncadd [#allocation22], 4294966256 }
 0x15d   :  { %6152 = dma.done.wait [#allocation25], 1040  }
 0x15e   :  { %6153 = vsyncadd [#allocation25], 4294966256 }
 0x15f   :  { %6154 = dma.done.wait [#allocation28], 1040  }
 0x160   :  { %6155 = vsyncadd [#allocation28], 4294966256  ;;  %v5582_v0 = vld [vmem:[#allocation9] sm:$0xff]   ;;  %v5583_v1 = vld [vmem:[#allocation9 + $0x8] sm:$0xff]   ;;  %s6981_s5 = sld [smem:[#allocation45_spill]]  ;;  %s6982_s2 = sld [smem:[#allocation47_spill]] }
 0x161   :  { %4933 = vmatprep.subr.bf16.mxu0 %v5582_v0  ;;  %v5584_v2 = vld [vmem:[#allocation9 + $0x10] sm:$0xff]   ;;  %v5585_v3 = vld [vmem:[#allocation9 + $0x18] sm:$0xff]   ;;  %v5590_v4 = vld [vmem:[#allocation3] sm:$0xff]   ;;  %s6983_s24 = sld [smem:[#allocation49_spill]]  ;;  %s6984_s18 = sld [smem:[#allocation50_spill]] }
 0x162   :  { %4934 = vmatpush3.bf16.msra.mxu0 %v5582_v0  ;;  %4949 = vmatprep.mubr.bf16.mxu0 %v5590_v4  ;;  %v5586_v5 = vld [vmem:[#allocation9 + $0x20] sm:$0xff]   ;;  %v5587_v6 = vld [vmem:[#allocation9 + $0x28] sm:$0xff]   ;;  %v5588_v7 = vld [vmem:[#allocation9 + $0x30] sm:$0xff]   ;;  %s6179_s9 = smov [#allocation30]  }
 0x163   :  { %4935 = vmatprep.subr.bf16.mxu0 %v5583_v1  ;;  %v5589_v8 = vld [vmem:[#allocation9 + $0x38] sm:$0xff]   ;;  %v5591_v9 = vld [vmem:[#allocation3 + $0x8] sm:$0xff]   ;;  %v5592_v10 = vld [vmem:[#allocation3 + $0x10] sm:$0xff]   ;;  %s4383_s20 = sshll.u32 %s6179_s9, 4  ;;  %s4384_s20 = int_to_ptr.vmem [resolvable:$true] %s4383_s20 }
 0x164   :  { %v5614_v11 = vld [vmem:[#allocation11] sm:$0xff]   ;;  %v5615_v12 = vld [vmem:[#allocation11 + $0x8] sm:$0xff]   ;;  %v5593_v13 = vld [vmem:[#allocation3 + $0x18] sm:$0xff]   ;;  %s6116_s14 = scalar_lea.vmem %s4384_s20, 6144  ;;  %p6121_p11 = scmp.lt.s32.totalorder %s4384_s20, %s4384_s20 }
 0x165   :  { %v5616_v14 = vld [vmem:[#allocation11 + $0x10] sm:$0xff]   ;;  %5541 = vmatprep.subr.bf16.mxu1 %v5614_v11  ;;  %v5594_v15 = vld [vmem:[#allocation3 + $0x20] sm:$0xff]   ;;  %v5617_v16 = vld [vmem:[#allocation11 + $0x18] sm:$0xff]   ;;  %p6117_p10 = scmp.ne.s32.totalorder %s4384_s20, %s6116_s14  ;;  %p6122_p12 = scmp.lt.s32.totalorder %s6116_s14, %s6116_s14 }
 0x166   :  { %4936 = vmatpush3.bf16.msra.mxu0 %v5583_v1  ;;  %5549 = vmatpush3.bf16.msra.mxu1 %v5614_v11  ;;  %v5618_v17 = vld [vmem:[#allocation11 + $0x20] sm:$0xff]   ;;  %v5595_v18 = vld [vmem:[#allocation3 + $0x28] sm:$0xff]   ;;  %v5596_v19 = vld [vmem:[#allocation3 + $0x30] sm:$0xff]  }
 0x167   :  { %4937 = vmatprep.subr.bf16.mxu0 %v5584_v2  ;;  %5542 = vmatprep.subr.bf16.mxu1 %v5615_v12  ;;  %v5619_v20 = vld [vmem:[#allocation11 + $0x28] sm:$0xff]   ;;  %v5597_v21 = vld [vmem:[#allocation3 + $0x38] sm:$0xff]   ;;  %v5598_v22 = vld [vmem:[#allocation3 + $0x40] sm:$0xff]   ;;  %p6123_p13 = por %p6122_p12, %p6121_p11 }
 0x168   :  { %v5599_v23 = vld [vmem:[#allocation3 + $0x48] sm:$0xff]   ;;  %v5600_v24 = vld [vmem:[#allocation3 + $0x50] sm:$0xff]   ;;  %v5601_v25 = vld [vmem:[#allocation3 + $0x58] sm:$0xff]  }
 0x169   :  { %v5602_v26 = vld [vmem:[#allocation3 + $0x60] sm:$0xff]   ;;  %v5603_v27 = vld [vmem:[#allocation3 + $0x68] sm:$0xff]   ;;  %v5604_v28 = vld [vmem:[#allocation3 + $0x70] sm:$0xff]   ;;  %p6124_p0 = pnand %p6123_p13, %p6117_p10 }
 0x16a   :  { %4938 = vmatpush3.bf16.msra.mxu0 %v5584_v2  ;;  %5550 = vmatpush3.bf16.msra.mxu1 %v5615_v12  ;;  %v5605_v29 = vld [vmem:[#allocation3 + $0x78] sm:$0xff]   ;;  %v5606_v30 = vld [vmem:[#allocation3 + $0x80] sm:$0xff]   ;;  %v5607_v31 = vld [vmem:[#allocation3 + $0x88] sm:$0xff]  }
 0x16b   :  { %4939 = vmatprep.subr.bf16.mxu0 %v5585_v3  ;;  %5543 = vmatprep.subr.bf16.mxu1 %v5616_v14  ;;  %v5608_v32 = vld [vmem:[#allocation3 + $0x90] sm:$0xff]   ;;  %v5609_v33 = vld [vmem:[#allocation3 + $0x98] sm:$0xff]   ;;  %v5610_v34 = vld [vmem:[#allocation3 + $0xa0] sm:$0xff]  }
 0x16c   :  { %v5611_v35 = vld [vmem:[#allocation3 + $0xa8] sm:$0xff]   ;;  %v5612_v36 = vld [vmem:[#allocation3 + $0xb0] sm:$0xff]   ;;  %v5613_v37 = vld [vmem:[#allocation3 + $0xb8] sm:$0xff]  }
 0x16d   :  { %v5620_v38 = vld [vmem:[#allocation11 + $0x30] sm:$0xff]   ;;  %v5621_v39 = vld [vmem:[#allocation11 + $0x38] sm:$0xff]   ;;  %v6542_v40 = vld [vmem:[%s6981_s5] ss:$0 sm:$0xff] }
 0x16e   :  { %4940 = vmatpush3.bf16.msra.mxu0 %v5585_v3  ;;  %5551 = vmatpush3.bf16.msra.mxu1 %v5616_v14 }
 0x16f   :  { %4941 = vmatprep.subr.bf16.mxu0 %v5586_v5  ;;  %5544 = vmatprep.subr.bf16.mxu1 %v5617_v16 }
 0x172   :  { %4942 = vmatpush3.bf16.msra.mxu0 %v5586_v5  ;;  %5552 = vmatpush3.bf16.msra.mxu1 %v5617_v16 }
 0x173   :  { %4943 = vmatprep.subr.bf16.mxu0 %v5587_v6  ;;  %5545 = vmatprep.subr.bf16.mxu1 %v5618_v17 }
 0x176   :  { %4944 = vmatpush3.bf16.msra.mxu0 %v5587_v6  ;;  %5553 = vmatpush3.bf16.msra.mxu1 %v5618_v17 }
 0x177   :  { %4945 = vmatprep.subr.bf16.mxu0 %v5588_v7  ;;  %5546 = vmatprep.subr.bf16.mxu1 %v5619_v20 }
 0x17a   :  { %4946 = vmatpush3.bf16.msra.mxu0 %v5588_v7  ;;  %5554 = vmatpush3.bf16.msra.mxu1 %v5619_v20 }
 0x17b   :  { %4947 = vmatprep.subr.bf16.mxu0 %v5589_v8  ;;  %5547 = vmatprep.subr.bf16.mxu1 %v5620_v38 }
 0x17e   :  { %4948 = vmatpush3.bf16.msra.mxu0 %v5589_v8  ;;  %5555 = vmatpush3.bf16.msra.mxu1 %v5620_v38 }
 0x17f   :  { %4997 = vmatprep.subr.bf16.mxu0 %v5614_v11  ;;  %5548 = vmatprep.subr.bf16.mxu1 %v5621_v39 }
 0x181   :  { %4950 = vmatmul.mubr.bf16.vlgmr.msra.gmra.mrb[0].mxu0 %v5591_v9 }
 0x182   :  { %4953 = vmatprep.mubr.bf16.mxu0 %v5592_v10  ;;  %4998 = vmatpush3.bf16.msra.mxu0 %v5614_v11 }
 0x183   :  { %4999 = vmatprep.subr.bf16.mxu0 %v5615_v12  ;;  %5556 = vmatpush3.bf16.msra.mxu1 %v5621_v39 }
 0x186   :  { %5000 = vmatpush3.bf16.msra.mxu0 %v5615_v12 }
 0x187   :  { %5001 = vmatprep.subr.bf16.mxu0 %v5616_v14 }
 0x189   :  { %4954 = vmatmul.mubr.bf16.gmra.mrb[4].mxu0 %v5593_v13 }
 0x18a   :  { %4957 = vmatprep.mubr.bf16.mxu0 %v5594_v15  ;;  %5002 = vmatpush3.bf16.msra.mxu0 %v5616_v14 }
 0x18b   :  { %5003 = vmatprep.subr.bf16.mxu0 %v5617_v16 }
 0x18e   :  { %5004 = vmatpush3.bf16.msra.mxu0 %v5617_v16 }
 0x18f   :  { %5005 = vmatprep.subr.bf16.mxu0 %v5618_v17 }
 0x191   :  { %4958 = vmatmul.mubr.bf16.gmra.mrb[8].mxu0 %v5595_v18 }
 0x192   :  { %4961 = vmatprep.mubr.bf16.mxu0 %v5596_v19  ;;  %5006 = vmatpush3.bf16.msra.mxu0 %v5618_v17 }
 0x193   :  { %5007 = vmatprep.subr.bf16.mxu0 %v5619_v20 }
 0x196   :  { %5008 = vmatpush3.bf16.msra.mxu0 %v5619_v20 }
 0x197   :  { %5009 = vmatprep.subr.bf16.mxu0 %v5620_v38 }
 0x199   :  { %4962 = vmatmul.mubr.bf16.gmra.mrb[12].mxu0 %v5597_v21 }
 0x19a   :  { %4965 = vmatprep.mubr.bf16.mxu0 %v5598_v22  ;;  %5010 = vmatpush3.bf16.msra.mxu0 %v5620_v38 }
 0x19b   :  { %5011 = vmatprep.subr.bf16.mxu0 %v5621_v39 }
 0x19e   :  { %5012 = vmatpush3.bf16.msra.mxu0 %v5621_v39 }
 0x1a1   :  { %4966 = vmatmul.mubr.bf16.gmra.mrb[16].mxu0 %v5599_v23 }
 0x1a2   :  { %4969 = vmatprep.mubr.bf16.mxu0 %v5600_v24 }
 0x1a9   :  { %4970 = vmatmul.mubr.bf16.gmra.mrb[20].mxu0 %v5601_v25 }
 0x1aa   :  { %4973 = vmatprep.mubr.bf16.mxu0 %v5602_v26 }
 0x1b1   :  { %4974 = vmatmul.mubr.bf16.gmra.mrb[24].mxu0 %v5603_v27 }
 0x1b2   :  { %4977 = vmatprep.mubr.bf16.mxu0 %v5604_v28 }
 0x1b9   :  { %4978 = vmatmul.mubr.bf16.gmra.mrb[28].mxu0 %v5605_v29 }
 0x1ba   :  { %4981 = vmatprep.mubr.bf16.mxu0 %v5606_v30 }
 0x1c1   :  { %4982 = vmatmul.mubr.bf16.gmra.mrb[32].mxu0 %v5607_v31 }
 0x1c2   :  { %4985 = vmatprep.mubr.bf16.mxu0 %v5608_v32 }
 0x1c9   :  { %4986 = vmatmul.mubr.bf16.gmra.mrb[36].mxu0 %v5609_v33 }
 0x1ca   :  { %4989 = vmatprep.mubr.bf16.mxu0 %v5610_v34 }
 0x1d1   :  { %4990 = vmatmul.mubr.bf16.gmra.mrb[40].mxu0 %v5611_v35 }
 0x1d2   :  { %4993 = vmatprep.mubr.bf16.mxu0 %v5612_v36 }
 0x1d9   :  { %4994 = vmatmul.mubr.bf16.gmra.mrb[44].mxu0 %v5613_v37 }
 0x254   :  { %v4951_v41 = vpop.f32.mrb[0].mxu0 }
 0x255   :  { %v670_v42 = vadd.f32 %v4951_v41, %v6542_v40  ;;  %v661_v43 = vpop.f32.mrb[1].mxu0 }
 0x256   :  { %v662_v44 = vadd.f32 %v6542_v40, %v661_v43  ;;  %v4952_v45 = vpop.f32.mrb[2].mxu0 }
 0x257   :  { %v673_v46 = vadd.f32 %v4952_v45, %v6542_v40  ;;  %v664_v47 = vpop.f32.mrb[3].mxu0  ;;  %v854_v49 = vmax.f32 %v670_v42, 0.0 }
 0x258   :  { %v665_v48 = vadd.f32 %v6542_v40, %v664_v47  ;;  %v852_v51 = vmax.f32 %v662_v44, 0.0 }
 0x259   :  { %v855_v50 = vmax.f32 %v673_v46, 0.0 }
 0x25a   :  { %v853_v52 = vmax.f32 %v665_v48, 0.0 }
 0x25b   :  { %v901_v53 = vpack.c.bf16 %v855_v50, %v854_v49 }
 0x25c   :  { %v900_v54 = vpack.c.bf16 %v853_v52, %v852_v51  ;;  %v4955_v55 = vpop.f32.mrb[4].mxu0 }
 0x25d   :  { %v686_v56 = vadd.f32 %v4955_v55, %v6542_v40  ;;  %v677_v57 = vpop.f32.mrb[5].mxu0 }
 0x25e   :  { %v678_v58 = vadd.f32 %v6542_v40, %v677_v57  ;;  %v4956_v59 = vpop.f32.mrb[6].mxu0  ;;  %5013 = vmatprep.mubr.bf16.mxu0 %v900_v54 }
 0x25f   :  { %v689_v60 = vadd.f32 %v4956_v59, %v6542_v40  ;;  %v680_v61 = vpop.f32.mrb[7].mxu0  ;;  %5014 = vmatmul.mubr.bf16.vlgmr.msra.gmra.mrb[48].mxu0 %v901_v53  ;;  %v858_v63 = vmax.f32 %v686_v56, 0.0 }
 0x260   :  { %v681_v62 = vadd.f32 %v6542_v40, %v680_v61  ;;  %v856_v1 = vmax.f32 %v678_v58, 0.0 }
 0x261   :  { %v859_v0 = vmax.f32 %v689_v60, 0.0 }
 0x262   :  { %v857_v2 = vmax.f32 %v681_v62, 0.0 }
 0x263   :  { %v903_v3 = vpack.c.bf16 %v859_v0, %v858_v63 }
 0x264   :  { %v902_v4 = vpack.c.bf16 %v857_v2, %v856_v1  ;;  %v4959_v5 = vpop.f32.mrb[8].mxu0 }
 0x265   :  { %v702_v6 = vadd.f32 %v4959_v5, %v6542_v40  ;;  %v693_v7 = vpop.f32.mrb[9].mxu0 }
 0x266   :  { %v694_v8 = vadd.f32 %v6542_v40, %v693_v7  ;;  %v4960_v9 = vpop.f32.mrb[10].mxu0  ;;  %5017 = vmatprep.mubr.bf16.mxu0 %v902_v4 }
 0x267   :  { %v705_v10 = vadd.f32 %v4960_v9, %v6542_v40  ;;  %v696_v11 = vpop.f32.mrb[11].mxu0  ;;  %5018 = vmatmul.mubr.bf16.gmra.mrb[52].mxu0 %v903_v3  ;;  %v862_v13 = vmax.f32 %v702_v6, 0.0 }
 0x268   :  { %v697_v12 = vadd.f32 %v6542_v40, %v696_v11  ;;  %v860_v15 = vmax.f32 %v694_v8, 0.0 }
 0x269   :  { %v863_v14 = vmax.f32 %v705_v10, 0.0 }
 0x26a   :  { %v861_v16 = vmax.f32 %v697_v12, 0.0 }
 0x26b   :  { %v905_v17 = vpack.c.bf16 %v863_v14, %v862_v13 }
 0x26c   :  { %v904_v18 = vpack.c.bf16 %v861_v16, %v860_v15  ;;  %v4963_v19 = vpop.f32.mrb[12].mxu0 }
 0x26d   :  { %v718_v20 = vadd.f32 %v4963_v19, %v6542_v40  ;;  %v709_v21 = vpop.f32.mrb[13].mxu0 }
 0x26e   :  { %v710_v22 = vadd.f32 %v6542_v40, %v709_v21  ;;  %v4964_v23 = vpop.f32.mrb[14].mxu0  ;;  %5021 = vmatprep.mubr.bf16.mxu0 %v904_v18 }
 0x26f   :  { %v721_v24 = vadd.f32 %v4964_v23, %v6542_v40  ;;  %v712_v25 = vpop.f32.mrb[15].mxu0  ;;  %5022 = vmatmul.mubr.bf16.gmra.mrb[56].mxu0 %v905_v17  ;;  %v866_v27 = vmax.f32 %v718_v20, 0.0 }
 0x270   :  { %v713_v26 = vadd.f32 %v6542_v40, %v712_v25  ;;  %v864_v29 = vmax.f32 %v710_v22, 0.0 }
 0x271   :  { %v867_v28 = vmax.f32 %v721_v24, 0.0 }
 0x272   :  { %v865_v30 = vmax.f32 %v713_v26, 0.0 }
 0x273   :  { %v907_v31 = vpack.c.bf16 %v867_v28, %v866_v27 }
 0x274   :  { %v906_v32 = vpack.c.bf16 %v865_v30, %v864_v29  ;;  %v4967_v33 = vpop.f32.mrb[16].mxu0 }
 0x275   :  { %v734_v34 = vadd.f32 %v4967_v33, %v6542_v40  ;;  %v725_v35 = vpop.f32.mrb[17].mxu0 }
 0x276   :  { %v726_v36 = vadd.f32 %v6542_v40, %v725_v35  ;;  %v4968_v37 = vpop.f32.mrb[18].mxu0  ;;  %5025 = vmatprep.mubr.bf16.mxu0 %v906_v32 }
 0x277   :  { %v737_v38 = vadd.f32 %v4968_v37, %v6542_v40  ;;  %v728_v39 = vpop.f32.mrb[19].mxu0  ;;  %5026 = vmatmul.mubr.bf16.gmra.mrb[60].mxu0 %v907_v31  ;;  %v870_v42 = vmax.f32 %v734_v34, 0.0 }
 0x278   :  { %v729_v41 = vadd.f32 %v6542_v40, %v728_v39  ;;  %v868_v44 = vmax.f32 %v726_v36, 0.0 }
 0x279   :  { %v871_v43 = vmax.f32 %v737_v38, 0.0 }
 0x27a   :  { %v869_v45 = vmax.f32 %v729_v41, 0.0 }
 0x27b   :  { %v909_v46 = vpack.c.bf16 %v871_v43, %v870_v42 }
 0x27c   :  { %v4971_v47 = vpop.f32.mrb[20].mxu0  ;;  %v908_v48 = vpack.c.bf16 %v869_v45, %v868_v44 }
 0x27d   :  { %v750_v49 = vadd.f32 %v4971_v47, %v6542_v40  ;;  %v741_v50 = vpop.f32.mrb[21].mxu0 }
 0x27e   :  { %v742_v51 = vadd.f32 %v6542_v40, %v741_v50  ;;  %v4972_v52 = vpop.f32.mrb[22].mxu0  ;;  %5029 = vmatprep.mubr.bf16.mxu1 %v908_v48 }
 0x27f   :  { %v753_v53 = vadd.f32 %v4972_v52, %v6542_v40  ;;  %v744_v54 = vpop.f32.mrb[23].mxu0  ;;  %5030 = vmatmul.mubr.bf16.vlgmr.msra.gmra.mrb[0].mxu1 %v909_v46  ;;  %v874_v56 = vmax.f32 %v750_v49, 0.0 }
 0x280   :  { %v745_v55 = vadd.f32 %v6542_v40, %v744_v54  ;;  %v872_v58 = vmax.f32 %v742_v51, 0.0 }
 0x281   :  { %v875_v57 = vmax.f32 %v753_v53, 0.0 }
 0x282   :  { %v873_v59 = vmax.f32 %v745_v55, 0.0 }
 0x283   :  { %v911_v60 = vpack.c.bf16 %v875_v57, %v874_v56 }
 0x284   :  { %v910_v61 = vpack.c.bf16 %v873_v59, %v872_v58  ;;  %v4975_v62 = vpop.f32.mrb[24].mxu0 }
 0x285   :  { %v766_v63 = vadd.f32 %v4975_v62, %v6542_v40  ;;  %v757_v0 = vpop.f32.mrb[25].mxu0 }
 0x286   :  { %v758_v1 = vadd.f32 %v6542_v40, %v757_v0  ;;  %v4976_v2 = vpop.f32.mrb[26].mxu0  ;;  %5033 = vmatprep.mubr.bf16.mxu1 %v910_v61 }
 0x287   :  { %v769_v3 = vadd.f32 %v4976_v2, %v6542_v40  ;;  %v760_v4 = vpop.f32.mrb[27].mxu0  ;;  %5034 = vmatmul.mubr.bf16.gmra.mrb[4].mxu1 %v911_v60  ;;  %v878_v6 = vmax.f32 %v766_v63, 0.0 }
 0x288   :  { %v761_v5 = vadd.f32 %v6542_v40, %v760_v4  ;;  %v876_v8 = vmax.f32 %v758_v1, 0.0 }
 0x289   :  { %v879_v7 = vmax.f32 %v769_v3, 0.0 }
 0x28a   :  { %v877_v9 = vmax.f32 %v761_v5, 0.0 }
 0x28b   :  { %v913_v10 = vpack.c.bf16 %v879_v7, %v878_v6 }
 0x28c   :  { %v912_v11 = vpack.c.bf16 %v877_v9, %v876_v8  ;;  %v4979_v12 = vpop.f32.mrb[28].mxu0 }
 0x28d   :  { %v782_v13 = vadd.f32 %v4979_v12, %v6542_v40  ;;  %v773_v14 = vpop.f32.mrb[29].mxu0 }
 0x28e   :  { %v774_v15 = vadd.f32 %v6542_v40, %v773_v14  ;;  %v4980_v16 = vpop.f32.mrb[30].mxu0  ;;  %5037 = vmatprep.mubr.bf16.mxu1 %v912_v11 }
 0x28f   :  { %v785_v17 = vadd.f32 %v4980_v16, %v6542_v40  ;;  %v776_v18 = vpop.f32.mrb[31].mxu0  ;;  %5038 = vmatmul.mubr.bf16.gmra.mrb[8].mxu1 %v913_v10  ;;  %v882_v20 = vmax.f32 %v782_v13, 0.0 }
 0x290   :  { %v777_v19 = vadd.f32 %v6542_v40, %v776_v18  ;;  %v880_v22 = vmax.f32 %v774_v15, 0.0 }
 0x291   :  { %v883_v21 = vmax.f32 %v785_v17, 0.0 }
 0x292   :  { %v881_v23 = vmax.f32 %v777_v19, 0.0  ;;  %v5624_v19 = vld [vmem:[#allocation6 + $0x4] ss:$12 sps:$4 sm:$0xff]  }
 0x293   :  { %v915_v24 = vpack.c.bf16 %v883_v21, %v882_v20  ;;  %1500 = vmatprep.mubr.bf16.mxu0 %v5624_v19  ;;  %v5634_v20 = vld [vmem:[#allocation6 + $0x8] ss:$12 sps:$4 sm:$0xff]   ;;  %v6595_v21 = vld [vmem:[%s6982_s2] ss:$0 sm:$0xff] }
 0x294   :  { %v914_v25 = vpack.c.bf16 %v881_v23, %v880_v22  ;;  %v4983_v26 = vpop.f32.mrb[32].mxu0 }
 0x295   :  { %v798_v27 = vadd.f32 %v4983_v26, %v6542_v40  ;;  %v789_v28 = vpop.f32.mrb[33].mxu0 }
 0x296   :  { %v790_v29 = vadd.f32 %v6542_v40, %v789_v28  ;;  %v4984_v30 = vpop.f32.mrb[34].mxu0  ;;  %5041 = vmatprep.mubr.bf16.mxu1 %v914_v25 }
 0x297   :  { %v886_v31 = vmax.f32 %v798_v27, 0.0  ;;  %v801_v32 = vadd.f32 %v4984_v30, %v6542_v40  ;;  %v792_v33 = vpop.f32.mrb[35].mxu0  ;;  %5042 = vmatmul.mubr.bf16.gmra.mrb[12].mxu1 %v915_v24 }
 0x298   :  { %v793_v34 = vadd.f32 %v6542_v40, %v792_v33  ;;  %v884_v36 = vmax.f32 %v790_v29, 0.0 }
 0x299   :  { %v887_v35 = vmax.f32 %v801_v32, 0.0 }
 0x29a   :  { %v885_v37 = vmax.f32 %v793_v34, 0.0 }
 0x29b   :  { %v917_v38 = vpack.c.bf16 %v887_v35, %v886_v31 }
 0x29c   :  { %v916_v39 = vpack.c.bf16 %v885_v37, %v884_v36  ;;  %v4987_v41 = vpop.f32.mrb[36].mxu0 }
 0x29d   :  { %v814_v42 = vadd.f32 %v4987_v41, %v6542_v40  ;;  %v805_v43 = vpop.f32.mrb[37].mxu0 }
 0x29e   :  { %v806_v44 = vadd.f32 %v6542_v40, %v805_v43  ;;  %v4988_v45 = vpop.f32.mrb[38].mxu0  ;;  %5045 = vmatprep.mubr.bf16.mxu1 %v916_v39 }
 0x29f   :  { %v890_v46 = vmax.f32 %v814_v42, 0.0  ;;  %v817_v47 = vadd.f32 %v4988_v45, %v6542_v40  ;;  %v808_v48 = vpop.f32.mrb[39].mxu0  ;;  %5046 = vmatmul.mubr.bf16.gmra.mrb[16].mxu1 %v917_v38 }
 0x2a0   :  { %v809_v49 = vadd.f32 %v6542_v40, %v808_v48  ;;  %v888_v51 = vmax.f32 %v806_v44, 0.0 }
 0x2a1   :  { %v891_v50 = vmax.f32 %v817_v47, 0.0 }
 0x2a2   :  { %v889_v52 = vmax.f32 %v809_v49, 0.0 }
 0x2a3   :  { %v919_v53 = vpack.c.bf16 %v891_v50, %v890_v46 }
 0x2a4   :  { %v918_v54 = vpack.c.bf16 %v889_v52, %v888_v51  ;;  %v4991_v55 = vpop.f32.mrb[40].mxu0 }
 0x2a5   :  { %v830_v56 = vadd.f32 %v4991_v55, %v6542_v40  ;;  %v821_v57 = vpop.f32.mrb[41].mxu0 }
 0x2a6   :  { %v822_v58 = vadd.f32 %v6542_v40, %v821_v57  ;;  %v4992_v59 = vpop.f32.mrb[42].mxu0  ;;  %5049 = vmatprep.mubr.bf16.mxu1 %v918_v54 }
 0x2a7   :  { %v894_v60 = vmax.f32 %v830_v56, 0.0  ;;  %v833_v61 = vadd.f32 %v4992_v59, %v6542_v40  ;;  %v824_v62 = vpop.f32.mrb[43].mxu0  ;;  %5050 = vmatmul.mubr.bf16.gmra.mrb[20].mxu1 %v919_v53 }
 0x2a8   :  { %v825_v63 = vadd.f32 %v6542_v40, %v824_v62  ;;  %v892_v1 = vmax.f32 %v822_v58, 0.0 }
 0x2a9   :  { %v895_v0 = vmax.f32 %v833_v61, 0.0 }
 0x2aa   :  { %v893_v2 = vmax.f32 %v825_v63, 0.0 }
 0x2ab   :  { %v921_v3 = vpack.c.bf16 %v895_v0, %v894_v60 }
 0x2ac   :  { %v920_v4 = vpack.c.bf16 %v893_v2, %v892_v1  ;;  %v4995_v5 = vpop.f32.mrb[44].mxu0 }
 0x2ad   :  { %v846_v6 = vadd.f32 %v4995_v5, %v6542_v40  ;;  %v837_v7 = vpop.f32.mrb[45].mxu0 }
 0x2ae   :  { %v838_v8 = vadd.f32 %v6542_v40, %v837_v7  ;;  %v4996_v9 = vpop.f32.mrb[46].mxu0  ;;  %5053 = vmatprep.mubr.bf16.mxu1 %v920_v4 }
 0x2af   :  { %v898_v10 = vmax.f32 %v846_v6, 0.0  ;;  %v849_v11 = vadd.f32 %v4996_v9, %v6542_v40  ;;  %v840_v12 = vpop.f32.mrb[47].mxu0  ;;  %5054 = vmatmul.mubr.bf16.gmra.mrb[24].mxu1 %v921_v3 }
 0x2b0   :  { %v841_v13 = vadd.f32 %v6542_v40, %v840_v12  ;;  %v896_v15 = vmax.f32 %v838_v8, 0.0 }
 0x2b1   :  { %v899_v14 = vmax.f32 %v849_v11, 0.0 }
 0x2b2   :  { %v897_v16 = vmax.f32 %v841_v13, 0.0 }
 0x2b3   :  { %v923_v17 = vpack.c.bf16 %v899_v14, %v898_v10 }
 0x2b4   :  { %v922_v18 = vpack.c.bf16 %v897_v16, %v896_v15 }
 0x2b6   :  { %5057 = vmatprep.mubr.bf16.mxu1 %v922_v18 }
 0x2b7   :  { %5058 = vmatmul.mubr.bf16.gmra.mrb[28].mxu1 %v923_v17 }
 0x2b8   :  { %5077 = vmatprep.mubr.bf16.mxu1 %v5634_v20 }
 0x332   :  { %v5015_v22 = vpop.f32.mrb[48].mxu0 }
 0x333   :  { %v1038_v23 = vadd.f32 %v5015_v22, %v6595_v21  ;;  %v1029_v40 = vpop.f32.mrb[49].mxu0 }
 0x334   :  { %v1030_v24 = vadd.f32 %v6595_v21, %v1029_v40  ;;  %v5016_v25 = vpop.f32.mrb[50].mxu0 }
 0x335   :  { %v1041_v26 = vadd.f32 %v5016_v25, %v6595_v21  ;;  %v1032_v27 = vpop.f32.mrb[51].mxu0  ;;  %v1222_v29 = vmax.f32 %v1038_v23, 0.0 }
 0x336   :  { %v1033_v28 = vadd.f32 %v6595_v21, %v1032_v27  ;;  %v1220_v31 = vmax.f32 %v1030_v24, 0.0 }
 0x337   :  { %v1223_v30 = vmax.f32 %v1041_v26, 0.0 }
 0x338   :  { %v1221_v32 = vmax.f32 %v1033_v28, 0.0 }
 0x339   :  { %v6601_v33 = vpack.c.bf16 %v1223_v30, %v1222_v29 }
 0x33a   :  { %v6603_v34 = vpack.c.bf16 %v1221_v32, %v1220_v31  ;;  %v5019_v35 = vpop.f32.mrb[52].mxu0 }
 0x33b   :  { %v1054_v36 = vadd.f32 %v5019_v35, %v6595_v21  ;;  %v1045_v37 = vpop.f32.mrb[53].mxu0 }
 0x33c   :  { %v1046_v38 = vadd.f32 %v6595_v21, %v1045_v37  ;;  %v5020_v39 = vpop.f32.mrb[54].mxu0 }
 0x33d   :  { %v1057_v41 = vadd.f32 %v5020_v39, %v6595_v21  ;;  %v1048_v42 = vpop.f32.mrb[55].mxu0  ;;  %v1226_v44 = vmax.f32 %v1054_v36, 0.0 }
 0x33e   :  { %v1049_v43 = vadd.f32 %v6595_v21, %v1048_v42  ;;  %v1224_v46 = vmax.f32 %v1046_v38, 0.0 }
 0x33f   :  { %v1227_v45 = vmax.f32 %v1057_v41, 0.0 }
 0x340   :  { %v1225_v47 = vmax.f32 %v1049_v43, 0.0 }
 0x341   :  { %v6609_v48 = vpack.c.bf16 %v1227_v45, %v1226_v44 }
 0x342   :  { %v6611_v49 = vpack.c.bf16 %v1225_v47, %v1224_v46  ;;  %v5023_v50 = vpop.f32.mrb[56].mxu0 }
 0x343   :  { %v1070_v51 = vadd.f32 %v5023_v50, %v6595_v21  ;;  %v1061_v52 = vpop.f32.mrb[57].mxu0 }
 0x344   :  { %v1062_v53 = vadd.f32 %v6595_v21, %v1061_v52  ;;  %v5024_v54 = vpop.f32.mrb[58].mxu0 }
 0x345   :  { %v1073_v55 = vadd.f32 %v5024_v54, %v6595_v21  ;;  %v1064_v56 = vpop.f32.mrb[59].mxu0  ;;  %v1230_v58 = vmax.f32 %v1070_v51, 0.0 }
 0x346   :  { %v1065_v57 = vadd.f32 %v6595_v21, %v1064_v56  ;;  %v1228_v60 = vmax.f32 %v1062_v53, 0.0 }
 0x347   :  { %v1231_v59 = vmax.f32 %v1073_v55, 0.0 }
 0x348   :  { %v1229_v61 = vmax.f32 %v1065_v57, 0.0 }
 0x349   :  { %v6617_v62 = vpack.c.bf16 %v1231_v59, %v1230_v58 }
 0x34a   :  { %v6619_v63 = vpack.c.bf16 %v1229_v61, %v1228_v60  ;;  %v5027_v0 = vpop.f32.mrb[60].mxu0 }
 0x34b   :  { %v1086_v1 = vadd.f32 %v5027_v0, %v6595_v21  ;;  %v1077_v2 = vpop.f32.mrb[61].mxu0 }
 0x34c   :  { %v1078_v3 = vadd.f32 %v6595_v21, %v1077_v2  ;;  %v5028_v4 = vpop.f32.mrb[62].mxu0 }
 0x34d   :  { %v1089_v5 = vadd.f32 %v5028_v4, %v6595_v21  ;;  %v1080_v6 = vpop.f32.mrb[63].mxu0  ;;  %v1234_v8 = vmax.f32 %v1086_v1, 0.0 }
 0x34e   :  { %v1081_v7 = vadd.f32 %v6595_v21, %v1080_v6  ;;  %v1232_v10 = vmax.f32 %v1078_v3, 0.0 }
 0x34f   :  { %v1235_v9 = vmax.f32 %v1089_v5, 0.0 }
 0x350   :  { %v1233_v11 = vmax.f32 %v1081_v7, 0.0 }
 0x351   :  { %v6625_v12 = vpack.c.bf16 %v1235_v9, %v1234_v8 }
 0x352   :  { %v6627_v13 = vpack.c.bf16 %v1233_v11, %v1232_v10  ;;  %v5031_v14 = vpop.f32.mrb[0].mxu1 }
 0x353   :  { %v1102_v15 = vadd.f32 %v5031_v14, %v6595_v21  ;;  %v1093_v16 = vpop.f32.mrb[1].mxu1 }
 0x354   :  { %v1094_v17 = vadd.f32 %v6595_v21, %v1093_v16  ;;  %v5032_v18 = vpop.f32.mrb[2].mxu1 }
 0x355   :  { %v1105_v19 = vadd.f32 %v5032_v18, %v6595_v21  ;;  %v1096_v20 = vpop.f32.mrb[3].mxu1  ;;  %v1238_v23 = vmax.f32 %v1102_v15, 0.0 }
 0x356   :  { %v1097_v22 = vadd.f32 %v6595_v21, %v1096_v20  ;;  %v1236_v24 = vmax.f32 %v1094_v17, 0.0 }
 0x357   :  { %v1239_v40 = vmax.f32 %v1105_v19, 0.0 }
 0x358   :  { %v1237_v25 = vmax.f32 %v1097_v22, 0.0  ;;  %v5622_v22 = vld [vmem:[#allocation6] ss:$12 sps:$4 sm:$0xff]  }
 0x359   :  { %v1325_v26 = vpack.c.bf16 %v1239_v40, %v1238_v23  ;;  %v5625_v40 = vld [vmem:[#allocation6 + $0x1c] ss:$12 sps:$4 sm:$0xff]  }
 0x35a   :  { %v1324_v27 = vpack.c.bf16 %v1237_v25, %v1236_v24  ;;  %v5035_v28 = vpop.f32.mrb[4].mxu1 }
 0x35b   :  { %v1118_v29 = vadd.f32 %v5035_v28, %v6595_v21  ;;  %v1109_v30 = vpop.f32.mrb[5].mxu1 }
 0x35c   :  { %v1110_v31 = vadd.f32 %v6595_v21, %v1109_v30  ;;  %v5036_v32 = vpop.f32.mrb[6].mxu1  ;;  %4629 = vmatprep.subr.bf16.mxu0 %v1324_v27 }
 0x35d   :  { %v1121_v35 = vadd.f32 %v5036_v32, %v6595_v21  ;;  %v1112_v36 = vpop.f32.mrb[7].mxu1  ;;  %4630 = vmatpush3.bf16.msra.mxu0 %v6603_v34  ;;  %v1242_v38 = vmax.f32 %v1118_v29, 0.0 }
 0x35e   :  { %v1113_v37 = vadd.f32 %v6595_v21, %v1112_v36  ;;  %4631 = vmatprep.subr.bf16.mxu0 %v1325_v26  ;;  %v1240_v41 = vmax.f32 %v1110_v31, 0.0 }
 0x35f   :  { %v1243_v39 = vmax.f32 %v1121_v35, 0.0 }
 0x360   :  { %v1241_v42 = vmax.f32 %v1113_v37, 0.0  ;;  %v5627_v37 = vld [vmem:[#allocation6 + $0x18] ss:$12 sps:$4 sm:$0xff]  }
 0x361   :  { %v1327_v43 = vpack.c.bf16 %v1243_v39, %v1242_v38  ;;  %4632 = vmatpush3.bf16.msra.mxu0 %v6601_v33  ;;  %v5628_v39 = vld [vmem:[#allocation6 + $0x34] ss:$12 sps:$4 sm:$0xff]  }
 0x362   :  { %v1326_v44 = vpack.c.bf16 %v1241_v42, %v1240_v41  ;;  %v5039_v45 = vpop.f32.mrb[8].mxu1 }
 0x363   :  { %v1134_v46 = vadd.f32 %v5039_v45, %v6595_v21  ;;  %v1125_v47 = vpop.f32.mrb[9].mxu1 }
 0x364   :  { %v1126_v50 = vadd.f32 %v6595_v21, %v1125_v47  ;;  %v5040_v51 = vpop.f32.mrb[10].mxu1  ;;  %4633 = vmatprep.subr.bf16.mxu0 %v1326_v44 }
 0x365   :  { %v1137_v34 = vadd.f32 %v5040_v51, %v6595_v21  ;;  %v1128_v52 = vpop.f32.mrb[11].mxu1  ;;  %4634 = vmatpush3.bf16.msra.mxu0 %v6611_v49  ;;  %v1246_v54 = vmax.f32 %v1134_v46, 0.0 }
 0x366   :  { %v1129_v53 = vadd.f32 %v6595_v21, %v1128_v52  ;;  %4635 = vmatprep.subr.bf16.mxu0 %v1327_v43  ;;  %v1244_v33 = vmax.f32 %v1126_v50, 0.0 }
 0x367   :  { %v1247_v55 = vmax.f32 %v1137_v34, 0.0 }
 0x368   :  { %v1245_v56 = vmax.f32 %v1129_v53, 0.0 }
 0x369   :  { %v1329_v57 = vpack.c.bf16 %v1247_v55, %v1246_v54  ;;  %4636 = vmatpush3.bf16.msra.mxu0 %v6609_v48  ;;  %v5630_v55 = vld [vmem:[#allocation6 + $0x30] ss:$12 sps:$4 sm:$0xff]  }
 0x36a   :  { %v1328_v58 = vpack.c.bf16 %v1245_v56, %v1244_v33  ;;  %v5043_v59 = vpop.f32.mrb[12].mxu1  ;;  %v5631_v56 = vld [vmem:[#allocation6 + $0x4c] ss:$12 sps:$4 sm:$0xff]  }
 0x36b   :  { %v1150_v60 = vadd.f32 %v5043_v59, %v6595_v21  ;;  %v1141_v61 = vpop.f32.mrb[13].mxu1 }
 0x36c   :  { %v1142_v0 = vadd.f32 %v6595_v21, %v1141_v61  ;;  %v5044_v1 = vpop.f32.mrb[14].mxu1  ;;  %4637 = vmatprep.subr.bf16.mxu0 %v1328_v58 }
 0x36d   :  { %v1153_v49 = vadd.f32 %v5044_v1, %v6595_v21  ;;  %v1144_v2 = vpop.f32.mrb[15].mxu1  ;;  %4638 = vmatpush3.bf16.msra.mxu0 %v6619_v63  ;;  %v1250_v4 = vmax.f32 %v1150_v60, 0.0 }
 0x36e   :  { %v1145_v3 = vadd.f32 %v6595_v21, %v1144_v2  ;;  %4639 = vmatprep.subr.bf16.mxu0 %v1329_v57  ;;  %v1248_v48 = vmax.f32 %v1142_v0, 0.0 }
 0x36f   :  { %v1251_v5 = vmax.f32 %v1153_v49, 0.0 }
 0x370   :  { %v1249_v6 = vmax.f32 %v1145_v3, 0.0 }
 0x371   :  { %v1331_v7 = vpack.c.bf16 %v1251_v5, %v1250_v4  ;;  %4640 = vmatpush3.bf16.msra.mxu0 %v6617_v62 }
 0x372   :  { %v1330_v8 = vpack.c.bf16 %v1249_v6, %v1248_v48  ;;  %v5047_v9 = vpop.f32.mrb[16].mxu1  ;;  %v5633_v6 = vld [vmem:[#allocation6 + $0x48] ss:$12 sps:$4 sm:$0xff]  }
 0x373   :  { %v1166_v10 = vadd.f32 %v5047_v9, %v6595_v21  ;;  %v1157_v11 = vpop.f32.mrb[17].mxu1 }
 0x374   :  { %v1158_v14 = vadd.f32 %v6595_v21, %v1157_v11  ;;  %v5048_v15 = vpop.f32.mrb[18].mxu1  ;;  %4641 = vmatprep.subr.bf16.mxu0 %v1330_v8  ;;  %v5636_v8 = vld [vmem:[#allocation6 + $0x64] ss:$12 sps:$4 sm:$0xff]   ;;  %v5635_v11 = vld [vmem:[#allocation6 + $0x20] ss:$12 sps:$4 sm:$0xff]  }
 0x375   :  { %v1169_v63 = vadd.f32 %v5048_v15, %v6595_v21  ;;  %v1160_v16 = vpop.f32.mrb[19].mxu1  ;;  %4642 = vmatpush3.bf16.msra.mxu0 %v6627_v13  ;;  %v1254_v18 = vmax.f32 %v1166_v10, 0.0  ;;  %v5654_v10 = vld [vmem:[#allocation12] sm:$0xff]   ;;  %v5641_v15 = vld [vmem:[#allocation6 + $0x7c] ss:$12 sps:$4 sm:$0xff]  }
 0x376   :  { %v1161_v17 = vadd.f32 %v6595_v21, %v1160_v16  ;;  %4643 = vmatprep.subr.bf16.mxu0 %v1331_v7  ;;  %v1252_v62 = vmax.f32 %v1158_v14, 0.0  ;;  %v5638_v14 = vld [vmem:[#allocation6 + $0x60] ss:$12 sps:$4 sm:$0xff]   ;;  %v5656_v16 = vld [vmem:[#allocation12 + $0x10] sm:$0xff]  }
 0x377   :  { %v1255_v19 = vmax.f32 %v1169_v63, 0.0  ;;  %v5655_v63 = vld [vmem:[#allocation12 + $0x8] sm:$0xff]  }
 0x378   :  { %v1253_v20 = vmax.f32 %v1161_v17, 0.0  ;;  %v5640_v17 = vld [vmem:[#allocation6 + $0x50] ss:$12 sps:$4 sm:$0xff]  }
 0x379   :  { %v1333_v23 = vpack.c.bf16 %v1255_v19, %v1254_v18  ;;  %4644 = vmatpush3.bf16.msra.mxu0 %v6625_v12  ;;  %v5643_v18 = vld [vmem:[#allocation6 + $0x78] ss:$12 sps:$4 sm:$0xff]   ;;  %v5644_v19 = vld [vmem:[#allocation6 + $0x68] ss:$12 sps:$4 sm:$0xff]  }
 0x37a   :  { %v1332_v24 = vpack.c.bf16 %v1253_v20, %v1252_v62  ;;  %v5051_v25 = vpop.f32.mrb[20].mxu1  ;;  %v5646_v62 = vld [vmem:[#allocation6 + $0x94] ss:$12 sps:$4 sm:$0xff]   ;;  %v5657_v20 = vld [vmem:[#allocation12 + $0x18] sm:$0xff]  }
 0x37b   :  { %v1182_v26 = vadd.f32 %v5051_v25, %v6595_v21  ;;  %v1173_v27 = vpop.f32.mrb[21].mxu1  ;;  %v5652_v25 = vld [vmem:[#allocation6 + $0x98] ss:$12 sps:$4 sm:$0xff]  }
 0x37c   :  { %v1174_v28 = vadd.f32 %v6595_v21, %v1173_v27  ;;  %v5052_v13 = vpop.f32.mrb[22].mxu1  ;;  %5061 = vmatprep.subr.bf16.mxu1 %v1332_v24  ;;  %1501 = vmatmul.mubr.bf16.vlgmr.msra.gmra.mrb[64].mxu0 %v5622_v22  ;;  %v5658_v22 = vld [vmem:[#allocation12 + $0x20] sm:$0xff]   ;;  %v5653_v27 = vld [vmem:[#allocation6 + $0xb0] ss:$12 sps:$4 sm:$0xff]  }
 0x37d   :  { %v1185_v29 = vadd.f32 %v5052_v13, %v6595_v21  ;;  %v1176_v30 = vpop.f32.mrb[23].mxu1  ;;  %5062 = vmatpush3.bf16.msra.mxu1 %v1332_v24  ;;  %1508 = vmatprep.mubr.bf16.mxu0 %v5625_v40  ;;  %v1258_v12 = vmax.f32 %v1182_v26, 0.0  ;;  %v5648_v40 = vld [vmem:[#allocation6 + $0x90] ss:$12 sps:$4 sm:$0xff]   ;;  %v5649_v24 = vld [vmem:[#allocation6 + $0xac] ss:$12 sps:$4 sm:$0xff]  }
 0x37e   :  { %v1177_v31 = vadd.f32 %v6595_v21, %v1176_v30  ;;  %5063 = vmatprep.subr.bf16.mxu1 %v1333_v23  ;;  %v1256_v35 = vmax.f32 %v1174_v28, 0.0  ;;  %v5651_v26 = vld [vmem:[#allocation6 + $0xa8] ss:$12 sps:$4 sm:$0xff]   ;;  %v5662_v30 = vld [vmem:[#allocation14] sm:$0xff]  }
 0x37f   :  { %v1259_v32 = vmax.f32 %v1185_v29, 0.0  ;;  %v5659_v28 = vld [vmem:[#allocation12 + $0x28] sm:$0xff]   ;;  %v5660_v13 = vld [vmem:[#allocation12 + $0x30] sm:$0xff]   ;;  %v5661_v29 = vld [vmem:[#allocation12 + $0x38] sm:$0xff]   ;;  %5125 = vmatprep.subr.bf16.mxu0 %v5662_v30 }
 0x380   :  { %v1257_v36 = vmax.f32 %v1177_v31, 0.0  ;;  %v5663_v31 = vld [vmem:[#allocation14 + $0x8] sm:$0xff]   ;;  %5126 = vmatpush3.bf16.msra.mxu0 %v5662_v30 }
 0x381   :  { %v1335_v38 = vpack.c.bf16 %v1259_v32, %v1258_v12  ;;  %5064 = vmatpush3.bf16.msra.mxu1 %v1333_v23  ;;  %v5645_v23 = vld [vmem:[#allocation6 + $0x80] ss:$12 sps:$4 sm:$0xff]   ;;  %5127 = vmatprep.subr.bf16.mxu0 %v5663_v31  ;;  %v5664_v12 = vld [vmem:[#allocation14 + $0x10] sm:$0xff]   ;;  %v5665_v32 = vld [vmem:[#allocation14 + $0x18] sm:$0xff]  }
 0x382   :  { %v1334_v41 = vpack.c.bf16 %v1257_v36, %v1256_v35  ;;  %v5055_v42 = vpop.f32.mrb[24].mxu1  ;;  %v5666_v35 = vld [vmem:[#allocation14 + $0x20] sm:$0xff]   ;;  %v5667_v36 = vld [vmem:[#allocation14 + $0x28] sm:$0xff]  }
 0x383   :  { %v1198_v43 = vadd.f32 %v5055_v42, %v6595_v21  ;;  %v1189_v44 = vpop.f32.mrb[25].mxu1 }
 0x384   :  { %v1190_v45 = vadd.f32 %v6595_v21, %v1189_v44  ;;  %v5056_v46 = vpop.f32.mrb[26].mxu1  ;;  %5065 = vmatprep.subr.bf16.mxu1 %v1334_v41  ;;  %1509 = vmatmul.mubr.bf16.gmra.mrb[68].mxu0 %v5627_v37 }
 0x385   :  { %v1201_v47 = vadd.f32 %v5056_v46, %v6595_v21  ;;  %v1192_v50 = vpop.f32.mrb[27].mxu1  ;;  %5066 = vmatpush3.bf16.msra.mxu1 %v1334_v41  ;;  %1516 = vmatprep.mubr.bf16.mxu0 %v5628_v39  ;;  %v1262_v34 = vmax.f32 %v1198_v43, 0.0 }
 0x386   :  { %v1193_v51 = vadd.f32 %v6595_v21, %v1192_v50  ;;  %5067 = vmatprep.subr.bf16.mxu1 %v1335_v38  ;;  %v1260_v53 = vmax.f32 %v1190_v45, 0.0  ;;  %5128 = vmatpush3.bf16.msra.mxu0 %v5663_v31 }
 0x387   :  { %v1263_v52 = vmax.f32 %v1201_v47, 0.0  ;;  %5129 = vmatprep.subr.bf16.mxu0 %v5664_v12 }
 0x388   :  { %v1261_v54 = vmax.f32 %v1193_v51, 0.0 }
 0x389   :  { %v1337_v33 = vpack.c.bf16 %v1263_v52, %v1262_v34  ;;  %5068 = vmatpush3.bf16.msra.mxu1 %v1335_v38 }
 0x38a   :  { %v1336_v57 = vpack.c.bf16 %v1261_v54, %v1260_v53  ;;  %v5059_v58 = vpop.f32.mrb[28].mxu1  ;;  %5130 = vmatpush3.bf16.msra.mxu0 %v5664_v12 }
 0x38b   :  { %v1214_v59 = vadd.f32 %v5059_v58, %v6595_v21  ;;  %v1205_v60 = vpop.f32.mrb[29].mxu1  ;;  %5131 = vmatprep.subr.bf16.mxu0 %v5665_v32 }
 0x38c   :  { %v1206_v61 = vadd.f32 %v6595_v21, %v1205_v60  ;;  %v5060_v0 = vpop.f32.mrb[30].mxu1  ;;  %5069 = vmatprep.subr.bf16.mxu1 %v1336_v57  ;;  %1517 = vmatmul.mubr.bf16.gmra.mrb[72].mxu0 %v5630_v55 }
 0x38d   :  { %v1217_v1 = vadd.f32 %v5060_v0, %v6595_v21  ;;  %v1208_v49 = vpop.f32.mrb[31].mxu1  ;;  %5070 = vmatpush3.bf16.msra.mxu1 %v1336_v57  ;;  %1524 = vmatprep.mubr.bf16.mxu0 %v5631_v56  ;;  %v1266_v3 = vmax.f32 %v1214_v59, 0.0 }
 0x38e   :  { %v1209_v2 = vadd.f32 %v6595_v21, %v1208_v49  ;;  %5071 = vmatprep.subr.bf16.mxu1 %v1337_v33  ;;  %v1264_v5 = vmax.f32 %v1206_v61, 0.0  ;;  %v5639_v21 = vld [vmem:[#allocation6 + $0x38] ss:$12 sps:$4 sm:$0xff]   ;;  %5132 = vmatpush3.bf16.msra.mxu0 %v5665_v32 }
 0x38f   :  { %v1267_v4 = vmax.f32 %v1217_v1, 0.0  ;;  %5133 = vmatprep.subr.bf16.mxu0 %v5666_v35 }
 0x390   :  { %v1265_v48 = vmax.f32 %v1209_v2, 0.0 }
 0x391   :  { %v1339_v7 = vpack.c.bf16 %v1267_v4, %v1266_v3  ;;  %5072 = vmatpush3.bf16.msra.mxu1 %v1337_v33 }
 0x392   :  { %v1338_v9 = vpack.c.bf16 %v1265_v48, %v1264_v5  ;;  %5134 = vmatpush3.bf16.msra.mxu0 %v5666_v35 }
 0x393   :  { %5135 = vmatprep.subr.bf16.mxu0 %v5667_v36 }
 0x394   :  { %5073 = vmatprep.subr.bf16.mxu1 %v1338_v9  ;;  %1525 = vmatmul.mubr.bf16.gmra.mrb[76].mxu0 %v5633_v6 }
 0x395   :  { %5074 = vmatpush3.bf16.msra.mxu1 %v1338_v9  ;;  %1532 = vmatprep.mubr.bf16.mxu0 %v5636_v8 }
 0x396   :  { %5075 = vmatprep.subr.bf16.mxu1 %v1339_v7  ;;  %5136 = vmatpush3.bf16.msra.mxu0 %v5667_v36 }
 0x399   :  { %5076 = vmatpush3.bf16.msra.mxu1 %v1339_v7 }
 0x39a   :  { %5093 = vmatprep.subr.bf16.mxu1 %v5654_v10 }
 0x39c   :  { %5078 = vmatmul.mubr.bf16.vlgmr.msra.gmra.mrb[32].mxu1 %v5635_v11  ;;  %1533 = vmatmul.mubr.bf16.gmra.mrb[80].mxu0 %v5638_v14 }
 0x39d   :  { %5081 = vmatprep.mubr.bf16.mxu1 %v5639_v21  ;;  %1540 = vmatprep.mubr.bf16.mxu0 %v5641_v15 }
 0x39e   :  { %5094 = vmatpush3.bf16.msra.mxu1 %v5654_v10 }
 0x39f   :  { %5095 = vmatprep.subr.bf16.mxu1 %v5655_v63 }
 0x3a2   :  { %5096 = vmatpush3.bf16.msra.mxu1 %v5655_v63 }
 0x3a3   :  { %5097 = vmatprep.subr.bf16.mxu1 %v5656_v16 }
 0x3a4   :  { %5082 = vmatmul.mubr.bf16.gmra.mrb[36].mxu1 %v5640_v17  ;;  %1541 = vmatmul.mubr.bf16.gmra.mrb[84].mxu0 %v5643_v18 }
 0x3a5   :  { %5085 = vmatprep.mubr.bf16.mxu1 %v5644_v19  ;;  %1548 = vmatprep.mubr.bf16.mxu0 %v5646_v62 }
 0x3a6   :  { %5098 = vmatpush3.bf16.msra.mxu1 %v5656_v16 }
 0x3a7   :  { %5099 = vmatprep.subr.bf16.mxu1 %v5657_v20 }
 0x3aa   :  { %5100 = vmatpush3.bf16.msra.mxu1 %v5657_v20 }
 0x3ab   :  { %5101 = vmatprep.subr.bf16.mxu1 %v5658_v22 }
 0x3ac   :  { %5086 = vmatmul.mubr.bf16.gmra.mrb[40].mxu1 %v5645_v23  ;;  %1549 = vmatmul.mubr.bf16.gmra.mrb[88].mxu0 %v5648_v40 }
 0x3ad   :  { %1556 = vmatprep.mubr.bf16.mxu0 %v5649_v24  ;;  %5089 = vmatprep.mubr.bf16.mxu1 %v5652_v25 }
 0x3ae   :  { %5102 = vmatpush3.bf16.msra.mxu1 %v5658_v22 }
 0x3af   :  { %5103 = vmatprep.subr.bf16.mxu1 %v5659_v28 }
 0x3b2   :  { %5104 = vmatpush3.bf16.msra.mxu1 %v5659_v28 }
 0x3b3   :  { %5105 = vmatprep.subr.bf16.mxu1 %v5660_v13 }
 0x3b4   :  { %1557 = vmatmul.mubr.bf16.gmra.mrb[92].mxu0 %v5651_v26  ;;  %5090 = vmatmul.mubr.bf16.gmra.mrb[44].mxu1 %v5653_v27 }
 0x3b6   :  { %5106 = vmatpush3.bf16.msra.mxu1 %v5660_v13 }
 0x3b7   :  { %5107 = vmatprep.subr.bf16.mxu1 %v5661_v29 }
 0x3ba   :  { %5108 = vmatpush3.bf16.msra.mxu1 %v5661_v29 }
 0x44f   :  { %v4645_v37 = vpop.f32.mrb[64].mxu0 }
 0x450   :  { %v4646_v38 = vpop.f32.mrb[65].mxu0 }
 0x451   :  { %v4647_v39 = vadd.f32 %v4646_v38, %v4645_v37  ;;  %v4648_v41 = vpop.f32.mrb[66].mxu0 }
 0x452   :  { %v4649_v42 = vpop.f32.mrb[67].mxu0 }
 0x453   :  { %v4650_v43 = vadd.f32 %v4649_v42, %v4648_v41 }
 0x457   :  { %v4651_v44 = vpop.f32.mrb[68].mxu0 }
 0x458   :  { %v4652_v45 = vpop.f32.mrb[69].mxu0 }
 0x459   :  { %v4653_v46 = vadd.f32 %v4652_v45, %v4651_v44  ;;  %v4654_v47 = vpop.f32.mrb[70].mxu0 }
 0x45a   :  { %v4655_v50 = vpop.f32.mrb[71].mxu0 }
 0x45b   :  { %v4656_v51 = vadd.f32 %v4655_v50, %v4654_v47 }
 0x45f   :  { %v4657_v34 = vpop.f32.mrb[72].mxu0 }
 0x460   :  { %v4658_v52 = vpop.f32.mrb[73].mxu0 }
 0x461   :  { %v4659_v53 = vadd.f32 %v4658_v52, %v4657_v34  ;;  %v4660_v54 = vpop.f32.mrb[74].mxu0 }
 0x462   :  { %v4661_v55 = vpop.f32.mrb[75].mxu0 }
 0x463   :  { %v4662_v33 = vadd.f32 %v4661_v55, %v4660_v54 }
 0x467   :  { %v4663_v56 = vpop.f32.mrb[76].mxu0 }
 0x468   :  { %v4664_v57 = vpop.f32.mrb[77].mxu0 }
 0x469   :  { %v4665_v58 = vadd.f32 %v4664_v57, %v4663_v56  ;;  %v4666_v59 = vpop.f32.mrb[78].mxu0 }
 0x46a   :  { %v4667_v60 = vpop.f32.mrb[79].mxu0 }
 0x46b   :  { %v4668_v61 = vadd.f32 %v4667_v60, %v4666_v59 }
 0x46f   :  { %v5079_v0 = vpop.f32.mrb[32].mxu1  ;;  %v4669_v1 = vpop.f32.mrb[80].mxu0 }
 0x470   :  { %v1608_v49 = vadd.f32 %v5079_v0, %v4653_v46  ;;  %v1599_v2 = vpop.f32.mrb[33].mxu1  ;;  %v4670_v3 = vpop.f32.mrb[81].mxu0  ;;  %v5668_v0 = vld [vmem:[#allocation14 + $0x30] sm:$0xff]  }
 0x471   :  { %v1600_v4 = vadd.f32 %v4647_v39, %v1599_v2  ;;  %v5080_v5 = vpop.f32.mrb[34].mxu1  ;;  %v4671_v48 = vadd.f32 %v4670_v3, %v4669_v1  ;;  %v4672_v6 = vpop.f32.mrb[82].mxu0  ;;  %5137 = vmatprep.subr.bf16.mxu0 %v5668_v0  ;;  %v5669_v1 = vld [vmem:[#allocation14 + $0x38] sm:$0xff]   ;;  %v5671_v2 = vld [vmem:[#allocation15 + $0x8] sm:$0xff]   ;;  %v5672_v3 = vld [vmem:[#allocation15 + $0x10] sm:$0xff]  }
 0x472   :  { %v1611_v7 = vadd.f32 %v5080_v5, %v4656_v51  ;;  %v1602_v8 = vpop.f32.mrb[35].mxu1  ;;  %v4673_v9 = vpop.f32.mrb[83].mxu0  ;;  %5138 = vmatpush3.bf16.msra.mxu0 %v5668_v0  ;;  %v5674_v5 = vld [vmem:[#allocation15 + $0x20] sm:$0xff]  }
 0x473   :  { %v1603_v10 = vadd.f32 %v4650_v43, %v1602_v8  ;;  %v4674_v11 = vadd.f32 %v4673_v9, %v4672_v6  ;;  %5139 = vmatprep.subr.bf16.mxu0 %v5669_v1  ;;  %v4469_v6 = vld [vmem:[%s6940_s8] ss:$0 sm:$0xff] }
 0x474   :  { %v1714_v14 = vpack.c.bf16 %v1611_v7, %v1608_v49  ;;  %v5670_v49 = vld [vmem:[#allocation15] sm:$0xff]  }
 0x475   :  { %v1713_v21 = vpack.c.bf16 %v1603_v10, %v1600_v4  ;;  %5157 = vmatprep.subr.bf16.mxu1 %v5670_v49  ;;  %v5673_v4 = vld [vmem:[#allocation15 + $0x18] sm:$0xff]  }
 0x476   :  { %5140 = vmatpush3.bf16.msra.mxu0 %v5669_v1  ;;  %v5676_v1 = vld [vmem:[#allocation15 + $0x30] sm:$0xff]  }
 0x477   :  { %v5083_v15 = vpop.f32.mrb[36].mxu1  ;;  %5109 = vmatprep.mubr.bf16.mxu1 %v1713_v21  ;;  %v4675_v63 = vpop.f32.mrb[84].mxu0 }
 0x478   :  { %v1624_v16 = vadd.f32 %v5083_v15, %v4665_v58  ;;  %v1615_v17 = vpop.f32.mrb[37].mxu1  ;;  %5110 = vmatmul.mubr.bf16.vlgmr.msra.gmra.mrb[48].mxu1 %v1714_v14  ;;  %v4676_v18 = vpop.f32.mrb[85].mxu0 }
 0x479   :  { %v1616_v19 = vadd.f32 %v4659_v53, %v1615_v17  ;;  %v5084_v62 = vpop.f32.mrb[38].mxu1  ;;  %v4677_v20 = vadd.f32 %v4676_v18, %v4675_v63  ;;  %v4678_v22 = vpop.f32.mrb[86].mxu0  ;;  %5158 = vmatpush3.bf16.msra.mxu1 %v5670_v49  ;;  %v5677_v49 = vld [vmem:[#allocation15 + $0x38] sm:$0xff]  }
 0x47a   :  { %v1627_v23 = vadd.f32 %v5084_v62, %v4668_v61  ;;  %v1618_v40 = vpop.f32.mrb[39].mxu1  ;;  %v4679_v24 = vpop.f32.mrb[87].mxu0  ;;  %5159 = vmatprep.subr.bf16.mxu1 %v5671_v2 }
 0x47b   :  { %v1619_v25 = vadd.f32 %v4662_v33, %v1618_v40  ;;  %v4680_v26 = vadd.f32 %v4679_v24, %v4678_v22 }
 0x47c   :  { %v1716_v27 = vpack.c.bf16 %v1627_v23, %v1624_v16 }
 0x47d   :  { %v1715_v28 = vpack.c.bf16 %v1619_v25, %v1616_v19  ;;  %5160 = vmatpush3.bf16.msra.mxu1 %v5671_v2  ;;  %v5678_v2 = vld [vmem:[#allocation18] sm:$0xff]  }
 0x47e   :  { %5161 = vmatprep.subr.bf16.mxu1 %v5672_v3  ;;  %5189 = vmatprep.subr.bf16.mxu0 %v5678_v2 }
 0x47f   :  { %5113 = vmatprep.mubr.bf16.mxu1 %v1715_v28  ;;  %v5087_v13 = vpop.f32.mrb[40].mxu1  ;;  %v4681_v29 = vpop.f32.mrb[88].mxu0 }
 0x480   :  { %v1640_v30 = vadd.f32 %v5087_v13, %v4677_v20  ;;  %5114 = vmatmul.mubr.bf16.gmra.mrb[52].mxu1 %v1716_v27  ;;  %v1631_v31 = vpop.f32.mrb[41].mxu1  ;;  %v4682_v12 = vpop.f32.mrb[89].mxu0 }
 0x481   :  { %v1632_v32 = vadd.f32 %v4671_v48, %v1631_v31  ;;  %v5088_v35 = vpop.f32.mrb[42].mxu1  ;;  %v4683_v36 = vadd.f32 %v4682_v12, %v4681_v29  ;;  %v4684_v37 = vpop.f32.mrb[90].mxu0  ;;  %5162 = vmatpush3.bf16.msra.mxu1 %v5672_v3  ;;  %v5675_v48 = vld [vmem:[#allocation15 + $0x28] sm:$0xff]  }
 0x482   :  { %v1643_v38 = vadd.f32 %v5088_v35, %v4680_v26  ;;  %v1634_v39 = vpop.f32.mrb[43].mxu1  ;;  %v4685_v41 = vpop.f32.mrb[91].mxu0  ;;  %5163 = vmatprep.subr.bf16.mxu1 %v5673_v4  ;;  %v5679_v3 = vld [vmem:[#allocation18 + $0x8] sm:$0xff]  }
 0x483   :  { %v1635_v42 = vadd.f32 %v4674_v11, %v1634_v39  ;;  %v4686_v43 = vadd.f32 %v4685_v41, %v4684_v37 }
 0x484   :  { %v1718_v44 = vpack.c.bf16 %v1643_v38, %v1640_v30 }
 0x485   :  { %v1717_v45 = vpack.c.bf16 %v1635_v42, %v1632_v32  ;;  %5164 = vmatpush3.bf16.msra.mxu1 %v5673_v4  ;;  %v5680_v4 = vld [vmem:[#allocation18 + $0x10] sm:$0xff]  }
 0x486   :  { %5165 = vmatprep.subr.bf16.mxu1 %v5674_v5 }
 0x487   :  { %5117 = vmatprep.mubr.bf16.mxu1 %v1717_v45  ;;  %v4687_v46 = vpop.f32.mrb[92].mxu0  ;;  %v5091_v47 = vpop.f32.mrb[44].mxu1 }
 0x488   :  { %5118 = vmatmul.mubr.bf16.gmra.mrb[56].mxu1 %v1718_v44  ;;  %v4688_v50 = vpop.f32.mrb[93].mxu0  ;;  %v1647_v51 = vpop.f32.mrb[45].mxu1 }
 0x489   :  { %v4689_v34 = vadd.f32 %v4688_v50, %v4687_v46  ;;  %v4690_v52 = vpop.f32.mrb[94].mxu0  ;;  %v1648_v53 = vadd.f32 %v4683_v36, %v1647_v51  ;;  %v5092_v54 = vpop.f32.mrb[46].mxu1  ;;  %5166 = vmatpush3.bf16.msra.mxu1 %v5674_v5  ;;  %v5681_v5 = vld [vmem:[#allocation18 + $0x18] sm:$0xff]  }
 0x48a   :  { %v4691_v55 = vpop.f32.mrb[95].mxu0  ;;  %v1650_v33 = vpop.f32.mrb[47].mxu1  ;;  %5167 = vmatprep.subr.bf16.mxu1 %v5675_v48 }
 0x48b   :  { %v1656_v56 = vadd.f32 %v5091_v47, %v4689_v34  ;;  %v4692_v57 = vadd.f32 %v4691_v55, %v4690_v52  ;;  %v1651_v58 = vadd.f32 %v4686_v43, %v1650_v33 }
 0x48d   :  { %v1659_v59 = vadd.f32 %v5092_v54, %v4692_v57  ;;  %v1719_v60 = vpack.c.bf16 %v1651_v58, %v1648_v53  ;;  %5168 = vmatpush3.bf16.msra.mxu1 %v5675_v48  ;;  %v5682_v48 = vld [vmem:[#allocation18 + $0x20] sm:$0xff]  }
 0x48e   :  { %5169 = vmatprep.subr.bf16.mxu1 %v5676_v1 }
 0x48f   :  { %v1720_v61 = vpack.c.bf16 %v1659_v59, %v1656_v56  ;;  %5121 = vmatprep.mubr.bf16.mxu1 %v1719_v60 }
 0x491   :  { %5122 = vmatmul.mubr.bf16.gmra.mrb[60].mxu1 %v1720_v61 }
 0x492   :  { %5170 = vmatpush3.bf16.msra.mxu1 %v5676_v1 }
 0x493   :  { %5171 = vmatprep.subr.bf16.mxu1 %v5677_v49 }
 0x496   :  { %5172 = vmatpush3.bf16.msra.mxu1 %v5677_v49  ;;  %v5684_v49 = vld [vmem:[#allocation18 + $0x30] sm:$0xff]  }
 0x54b   :  { %v5111_v7 = vpop.f32.mrb[48].mxu1 }
 0x54c   :  { %v1835_v8 = vadd.f32 %v5111_v7, %v4469_v6  ;;  %v1826_v9 = vpop.f32.mrb[49].mxu1  ;;  %v4478_v7 = vld [vmem:[%s6942_s10] ss:$0 sm:$0xff] }
 0x54d   :  { %v1827_v10 = vadd.f32 %v4469_v6, %v1826_v9  ;;  %v5112_v11 = vpop.f32.mrb[50].mxu1 }
 0x54e   :  { %v1838_v14 = vadd.f32 %v5112_v11, %v4469_v6  ;;  %v1829_v21 = vpop.f32.mrb[51].mxu1  ;;  %v1891_v63 = vmax.f32 %v1835_v8, 0.0 }
 0x54f   :  { %v1830_v15 = vadd.f32 %v4469_v6, %v1829_v21  ;;  %v1889_v17 = vmax.f32 %v1827_v10, 0.0 }
 0x550   :  { %v1892_v16 = vmax.f32 %v1838_v14, 0.0 }
 0x551   :  { %v1890_v18 = vmax.f32 %v1830_v15, 0.0 }
 0x552   :  { %v1906_v19 = vpack.c.bf16 %v1892_v16, %v1891_v63 }
 0x553   :  { %v1905_v62 = vpack.c.bf16 %v1890_v18, %v1889_v17  ;;  %v5115_v20 = vpop.f32.mrb[52].mxu1 }
 0x554   :  { %v1851_v22 = vadd.f32 %v5115_v20, %v4469_v6  ;;  %v1842_v23 = vpop.f32.mrb[53].mxu1 }
 0x555   :  { %v1843_v40 = vadd.f32 %v4469_v6, %v1842_v23  ;;  %v5116_v24 = vpop.f32.mrb[54].mxu1  ;;  %5141 = vmatprep.mubr.bf16.mxu0 %v1905_v62 }
 0x556   :  { %v1854_v25 = vadd.f32 %v5116_v24, %v4469_v6  ;;  %v1845_v26 = vpop.f32.mrb[55].mxu1  ;;  %5142 = vmatmul.mubr.bf16.vlgmr.msra.gmra.mrb[96].mxu0 %v1906_v19  ;;  %v1895_v28 = vmax.f32 %v1851_v22, 0.0 }
 0x557   :  { %v1846_v27 = vadd.f32 %v4469_v6, %v1845_v26  ;;  %v1893_v29 = vmax.f32 %v1843_v40, 0.0  ;;  %5190 = vmatpush3.bf16.msra.mxu0 %v5678_v2  ;;  %v5685_v2 = vld [vmem:[#allocation18 + $0x38] sm:$0xff]  }
 0x558   :  { %v1896_v13 = vmax.f32 %v1854_v25, 0.0  ;;  %5191 = vmatprep.subr.bf16.mxu0 %v5679_v3 }
 0x559   :  { %v1894_v30 = vmax.f32 %v1846_v27, 0.0 }
 0x55a   :  { %v1908_v31 = vpack.c.bf16 %v1896_v13, %v1895_v28 }
 0x55b   :  { %v1907_v12 = vpack.c.bf16 %v1894_v30, %v1893_v29  ;;  %v5119_v32 = vpop.f32.mrb[56].mxu1  ;;  %5192 = vmatpush3.bf16.msra.mxu0 %v5679_v3  ;;  %v4487_v3 = vld [vmem:[#allocation17] ss:$0 sm:$0xff] }
 0x55c   :  { %v1867_v35 = vadd.f32 %v5119_v32, %v4469_v6  ;;  %v1858_v36 = vpop.f32.mrb[57].mxu1  ;;  %5193 = vmatprep.subr.bf16.mxu0 %v5680_v4 }
 0x55d   :  { %v1859_v37 = vadd.f32 %v4469_v6, %v1858_v36  ;;  %5145 = vmatprep.mubr.bf16.mxu0 %v1907_v12  ;;  %v5120_v38 = vpop.f32.mrb[58].mxu1 }
 0x55e   :  { %v1870_v39 = vadd.f32 %v5120_v38, %v4469_v6  ;;  %5146 = vmatmul.mubr.bf16.gmra.mrb[100].mxu0 %v1908_v31  ;;  %v1861_v41 = vpop.f32.mrb[59].mxu1  ;;  %v1899_v43 = vmax.f32 %v1867_v35, 0.0 }
 0x55f   :  { %v1862_v42 = vadd.f32 %v4469_v6, %v1861_v41  ;;  %v1897_v45 = vmax.f32 %v1859_v37, 0.0  ;;  %5194 = vmatpush3.bf16.msra.mxu0 %v5680_v4 }
 0x560   :  { %v1900_v44 = vmax.f32 %v1870_v39, 0.0  ;;  %5195 = vmatprep.subr.bf16.mxu0 %v5681_v5 }
 0x561   :  { %v1898_v46 = vmax.f32 %v1862_v42, 0.0 }
 0x562   :  { %v1910_v47 = vpack.c.bf16 %v1900_v44, %v1899_v43 }
 0x563   :  { %v1909_v50 = vpack.c.bf16 %v1898_v46, %v1897_v45  ;;  %5196 = vmatpush3.bf16.msra.mxu0 %v5681_v5 }
 0x564   :  { %v5123_v51 = vpop.f32.mrb[60].mxu1  ;;  %5197 = vmatprep.subr.bf16.mxu0 %v5682_v48 }
 0x565   :  { %5149 = vmatprep.mubr.bf16.mxu0 %v1909_v50  ;;  %v1883_v34 = vadd.f32 %v5123_v51, %v4469_v6  ;;  %v1874_v52 = vpop.f32.mrb[61].mxu1 }
 0x566   :  { %5150 = vmatmul.mubr.bf16.gmra.mrb[104].mxu0 %v1910_v47  ;;  %v1875_v53 = vadd.f32 %v4469_v6, %v1874_v52  ;;  %v5124_v54 = vpop.f32.mrb[62].mxu1 }
 0x567   :  { %v1886_v55 = vadd.f32 %v5124_v54, %v4469_v6  ;;  %v1877_v33 = vpop.f32.mrb[63].mxu1  ;;  %v1903_v57 = vmax.f32 %v1883_v34, 0.0  ;;  %5198 = vmatpush3.bf16.msra.mxu0 %v5682_v48 }
 0x568   :  { %v1878_v56 = vadd.f32 %v4469_v6, %v1877_v33  ;;  %v1901_v59 = vmax.f32 %v1875_v53, 0.0  ;;  %v5683_v6 = vld [vmem:[#allocation18 + $0x28] sm:$0xff]  }
 0x569   :  { %v1904_v58 = vmax.f32 %v1886_v55, 0.0  ;;  %5199 = vmatprep.subr.bf16.mxu0 %v5683_v6 }
 0x56a   :  { %v1902_v60 = vmax.f32 %v1878_v56, 0.0 }
 0x56b   :  { %v1912_v61 = vpack.c.bf16 %v1904_v58, %v1903_v57  ;;  %5200 = vmatpush3.bf16.msra.mxu0 %v5683_v6 }
 0x56c   :  { %v1911_v0 = vpack.c.bf16 %v1902_v60, %v1901_v59  ;;  %5201 = vmatprep.subr.bf16.mxu0 %v5684_v49 }
 0x56e   :  { %5153 = vmatprep.mubr.bf16.mxu0 %v1911_v0 }
 0x56f   :  { %5154 = vmatmul.mubr.bf16.gmra.mrb[108].mxu0 %v1912_v61 }
 0x570   :  { %5202 = vmatpush3.bf16.msra.mxu0 %v5684_v49 }
 0x571   :  { %5203 = vmatprep.subr.bf16.mxu0 %v5685_v2 }
 0x574   :  { %5204 = vmatpush3.bf16.msra.mxu0 %v5685_v2 }
 0x629   :  { %v5143_v8 = vpop.f32.mrb[96].mxu0 }
 0x62a   :  { %v2027_v9 = vadd.f32 %v5143_v8, %v4478_v7  ;;  %v2018_v10 = vpop.f32.mrb[97].mxu0 }
 0x62b   :  { %v2019_v11 = vadd.f32 %v4478_v7, %v2018_v10  ;;  %v5144_v14 = vpop.f32.mrb[98].mxu0 }
 0x62c   :  { %v2030_v21 = vadd.f32 %v5144_v14, %v4478_v7  ;;  %v2021_v15 = vpop.f32.mrb[99].mxu0  ;;  %v2083_v16 = vmax.f32 %v2027_v9, 0.0 }
 0x62d   :  { %v2022_v63 = vadd.f32 %v4478_v7, %v2021_v15  ;;  %v2081_v18 = vmax.f32 %v2019_v11, 0.0 }
 0x62e   :  { %v2084_v17 = vmax.f32 %v2030_v21, 0.0 }
 0x62f   :  { %v2082_v19 = vmax.f32 %v2022_v63, 0.0 }
 0x630   :  { %v2098_v62 = vpack.c.bf16 %v2084_v17, %v2083_v16 }
 0x631   :  { %v2097_v20 = vpack.c.bf16 %v2082_v19, %v2081_v18  ;;  %v5147_v22 = vpop.f32.mrb[100].mxu0 }
 0x632   :  { %v2043_v23 = vadd.f32 %v5147_v22, %v4478_v7  ;;  %v2034_v40 = vpop.f32.mrb[101].mxu0 }
 0x633   :  { %v2035_v24 = vadd.f32 %v4478_v7, %v2034_v40  ;;  %v5148_v25 = vpop.f32.mrb[102].mxu0  ;;  %5173 = vmatprep.mubr.bf16.mxu1 %v2097_v20 }
 0x634   :  { %v2046_v26 = vadd.f32 %v5148_v25, %v4478_v7  ;;  %v2037_v27 = vpop.f32.mrb[103].mxu0  ;;  %5174 = vmatmul.mubr.bf16.vlgmr.msra.gmra.mrb[64].mxu1 %v2098_v62  ;;  %v2087_v13 = vmax.f32 %v2043_v23, 0.0 }
 0x635   :  { %v2038_v28 = vadd.f32 %v4478_v7, %v2037_v27  ;;  %v2085_v30 = vmax.f32 %v2035_v24, 0.0 }
 0x636   :  { %v2088_v29 = vmax.f32 %v2046_v26, 0.0 }
 0x637   :  { %v2086_v31 = vmax.f32 %v2038_v28, 0.0 }
 0x638   :  { %v2100_v12 = vpack.c.bf16 %v2088_v29, %v2087_v13 }
 0x639   :  { %v2099_v32 = vpack.c.bf16 %v2086_v31, %v2085_v30  ;;  %v5151_v35 = vpop.f32.mrb[104].mxu0 }
 0x63a   :  { %v2059_v36 = vadd.f32 %v5151_v35, %v4478_v7  ;;  %v2050_v37 = vpop.f32.mrb[105].mxu0 }
 0x63b   :  { %v2051_v38 = vadd.f32 %v4478_v7, %v2050_v37  ;;  %5177 = vmatprep.mubr.bf16.mxu1 %v2099_v32  ;;  %v5152_v39 = vpop.f32.mrb[106].mxu0 }
 0x63c   :  { %v2062_v41 = vadd.f32 %v5152_v39, %v4478_v7  ;;  %5178 = vmatmul.mubr.bf16.gmra.mrb[68].mxu1 %v2100_v12  ;;  %v2053_v42 = vpop.f32.mrb[107].mxu0  ;;  %v2091_v44 = vmax.f32 %v2059_v36, 0.0 }
 0x63d   :  { %v2054_v43 = vadd.f32 %v4478_v7, %v2053_v42  ;;  %v2089_v46 = vmax.f32 %v2051_v38, 0.0 }
 0x63e   :  { %v2092_v45 = vmax.f32 %v2062_v41, 0.0 }
 0x63f   :  { %v2090_v47 = vmax.f32 %v2054_v43, 0.0 }
 0x640   :  { %v2102_v50 = vpack.c.bf16 %v2092_v45, %v2091_v44 }
 0x641   :  { %v2101_v51 = vpack.c.bf16 %v2090_v47, %v2089_v46 }
 0x642   :  { %v5155_v34 = vpop.f32.mrb[108].mxu0 }
 0x643   :  { %5181 = vmatprep.mubr.bf16.mxu1 %v2101_v51  ;;  %v2075_v52 = vadd.f32 %v5155_v34, %v4478_v7  ;;  %v2066_v53 = vpop.f32.mrb[109].mxu0 }
 0x644   :  { %5182 = vmatmul.mubr.bf16.gmra.mrb[72].mxu1 %v2102_v50  ;;  %v2067_v54 = vadd.f32 %v4478_v7, %v2066_v53  ;;  %v5156_v55 = vpop.f32.mrb[110].mxu0 }
 0x645   :  { %v2078_v33 = vadd.f32 %v5156_v55, %v4478_v7  ;;  %v2069_v56 = vpop.f32.mrb[111].mxu0  ;;  %v2095_v58 = vmax.f32 %v2075_v52, 0.0 }
 0x646   :  { %v2070_v57 = vadd.f32 %v4478_v7, %v2069_v56  ;;  %v2093_v60 = vmax.f32 %v2067_v54, 0.0 }
 0x647   :  { %v2096_v59 = vmax.f32 %v2078_v33, 0.0 }
 0x648   :  { %v2094_v61 = vmax.f32 %v2070_v57, 0.0 }
 0x649   :  { %v2104_v0 = vpack.c.bf16 %v2096_v59, %v2095_v58  ;;  %v5686_v59 = vld [vmem:[#allocation8] sm:$0xff]  }
 0x64a   :  { %v2103_v1 = vpack.c.bf16 %v2094_v61, %v2093_v60  ;;  %v6675_v60 = vld [vmem:[#allocation20] ss:$0 sm:$0xff] }
 0x64c   :  { %5185 = vmatprep.mubr.bf16.mxu1 %v2103_v1 }
 0x64d   :  { %5186 = vmatmul.mubr.bf16.gmra.mrb[76].mxu1 %v2104_v0 }
 0x64e   :  { %5237 = vmatprep.mubr.bf16.mxu1 %v5686_v59 }
 0x707   :  { %v5175_v4 = vpop.f32.mrb[64].mxu1 }
 0x708   :  { %v2219_v5 = vadd.f32 %v5175_v4, %v4487_v3  ;;  %v2210_v48 = vpop.f32.mrb[65].mxu1 }
 0x709   :  { %v2211_v6 = vadd.f32 %v4487_v3, %v2210_v48  ;;  %v5176_v7 = vpop.f32.mrb[66].mxu1  ;;  %v5711_v48 = vld [vmem:[#allocation21 + $0x8] sm:$0xff]  }
 0x70a   :  { %v2222_v8 = vadd.f32 %v5176_v7, %v4487_v3  ;;  %v2213_v9 = vpop.f32.mrb[67].mxu1  ;;  %v2275_v11 = vmax.f32 %v2219_v5, 0.0  ;;  %v5710_v5 = vld [vmem:[#allocation21] sm:$0xff]  }
 0x70b   :  { %v2214_v10 = vadd.f32 %v4487_v3, %v2213_v9  ;;  %v2273_v21 = vmax.f32 %v2211_v6, 0.0  ;;  %5285 = vmatprep.subr.bf16.mxu0 %v5710_v5 }
 0x70c   :  { %v2276_v14 = vmax.f32 %v2222_v8, 0.0 }
 0x70d   :  { %v2274_v15 = vmax.f32 %v2214_v10, 0.0 }
 0x70e   :  { %v2290_v63 = vpack.c.bf16 %v2276_v14, %v2275_v11  ;;  %v5712_v14 = vld [vmem:[#allocation21 + $0x10] sm:$0xff]  }
 0x70f   :  { %v2289_v16 = vpack.c.bf16 %v2274_v15, %v2273_v21  ;;  %v5179_v17 = vpop.f32.mrb[68].mxu1 }
 0x710   :  { %v2235_v18 = vadd.f32 %v5179_v17, %v4487_v3  ;;  %v2226_v19 = vpop.f32.mrb[69].mxu1 }
 0x711   :  { %v2227_v62 = vadd.f32 %v4487_v3, %v2226_v19  ;;  %v5180_v20 = vpop.f32.mrb[70].mxu1  ;;  %5205 = vmatprep.mubr.bf16.mxu0 %v2289_v16 }
 0x712   :  { %v2238_v22 = vadd.f32 %v5180_v20, %v4487_v3  ;;  %v2229_v23 = vpop.f32.mrb[71].mxu1  ;;  %5206 = vmatmul.mubr.bf16.vlgmr.msra.gmra.mrb[112].mxu0 %v2290_v63  ;;  %v2279_v24 = vmax.f32 %v2235_v18, 0.0  ;;  %v5713_v20 = vld [vmem:[#allocation21 + $0x18] sm:$0xff]  }
 0x713   :  { %v2230_v40 = vadd.f32 %v4487_v3, %v2229_v23  ;;  %v2277_v26 = vmax.f32 %v2227_v62, 0.0  ;;  %5286 = vmatpush3.bf16.msra.mxu0 %v5710_v5  ;;  %v5695_v5 = vld [vmem:[#allocation8 + $0x48] sm:$0xff]  }
 0x714   :  { %v2280_v25 = vmax.f32 %v2238_v22, 0.0  ;;  %5287 = vmatprep.subr.bf16.mxu0 %v5711_v48 }
 0x715   :  { %v2278_v27 = vmax.f32 %v2230_v40, 0.0 }
 0x716   :  { %v2292_v28 = vpack.c.bf16 %v2280_v25, %v2279_v24 }
 0x717   :  { %v2291_v13 = vpack.c.bf16 %v2278_v27, %v2277_v26  ;;  %v5183_v29 = vpop.f32.mrb[72].mxu1  ;;  %5288 = vmatpush3.bf16.msra.mxu0 %v5711_v48  ;;  %v5714_v27 = vld [vmem:[#allocation21 + $0x20] sm:$0xff]   ;;  %v5696_v48 = vld [vmem:[#allocation8 + $0x50] sm:$0xff]  }
 0x718   :  { %v2251_v30 = vadd.f32 %v5183_v29, %v4487_v3  ;;  %v2242_v31 = vpop.f32.mrb[73].mxu1  ;;  %5289 = vmatprep.subr.bf16.mxu0 %v5712_v14 }
 0x719   :  { %v2243_v12 = vadd.f32 %v4487_v3, %v2242_v31  ;;  %5209 = vmatprep.mubr.bf16.mxu0 %v2291_v13  ;;  %v5184_v32 = vpop.f32.mrb[74].mxu1 }
 0x71a   :  { %v2254_v35 = vadd.f32 %v5184_v32, %v4487_v3  ;;  %5210 = vmatmul.mubr.bf16.gmra.mrb[116].mxu0 %v2292_v28  ;;  %v2245_v36 = vpop.f32.mrb[75].mxu1  ;;  %v2283_v38 = vmax.f32 %v2251_v30, 0.0 }
 0x71b   :  { %v2246_v37 = vadd.f32 %v4487_v3, %v2245_v36  ;;  %v2281_v41 = vmax.f32 %v2243_v12, 0.0  ;;  %5290 = vmatpush3.bf16.msra.mxu0 %v5712_v14  ;;  %v5715_v36 = vld [vmem:[#allocation21 + $0x28] sm:$0xff]  }
 0x71c   :  { %v2284_v39 = vmax.f32 %v2254_v35, 0.0  ;;  %5291 = vmatprep.subr.bf16.mxu0 %v5713_v20  ;;  %v5703_v14 = vld [vmem:[#allocation8 + $0x88] sm:$0xff]  }
 0x71d   :  { %v2282_v42 = vmax.f32 %v2246_v37, 0.0 }
 0x71e   :  { %v2294_v43 = vpack.c.bf16 %v2284_v39, %v2283_v38 }
 0x71f   :  { %v2293_v44 = vpack.c.bf16 %v2282_v42, %v2281_v41  ;;  %5292 = vmatpush3.bf16.msra.mxu0 %v5713_v20  ;;  %v5719_v20 = vld [vmem:[#allocation24 + $0x8] sm:$0xff]  }
 0x720   :  { %v5187_v45 = vpop.f32.mrb[76].mxu1  ;;  %5293 = vmatprep.subr.bf16.mxu0 %v5714_v27 }
 0x721   :  { %5213 = vmatprep.mubr.bf16.mxu0 %v2293_v44  ;;  %v2267_v46 = vadd.f32 %v5187_v45, %v4487_v3  ;;  %v2258_v47 = vpop.f32.mrb[77].mxu1  ;;  %v5716_v44 = vld [vmem:[#allocation21 + $0x30] sm:$0xff]  }
 0x722   :  { %5214 = vmatmul.mubr.bf16.gmra.mrb[120].mxu0 %v2294_v43  ;;  %v2259_v50 = vadd.f32 %v4487_v3, %v2258_v47  ;;  %v5188_v51 = vpop.f32.mrb[78].mxu1 }
 0x723   :  { %v2270_v34 = vadd.f32 %v5188_v51, %v4487_v3  ;;  %v2261_v52 = vpop.f32.mrb[79].mxu1  ;;  %v2287_v54 = vmax.f32 %v2267_v46, 0.0  ;;  %5294 = vmatpush3.bf16.msra.mxu0 %v5714_v27 }
 0x724   :  { %v2262_v53 = vadd.f32 %v4487_v3, %v2261_v52  ;;  %v2285_v33 = vmax.f32 %v2259_v50, 0.0  ;;  %5295 = vmatprep.subr.bf16.mxu0 %v5715_v36 }
 0x725   :  { %v2288_v55 = vmax.f32 %v2270_v34, 0.0 }
 0x726   :  { %v2286_v56 = vmax.f32 %v2262_v53, 0.0 }
 0x727   :  { %v2296_v57 = vpack.c.bf16 %v2288_v55, %v2287_v54  ;;  %5296 = vmatpush3.bf16.msra.mxu0 %v5715_v36 }
 0x728   :  { %v2295_v58 = vpack.c.bf16 %v2286_v56, %v2285_v33  ;;  %5297 = vmatprep.subr.bf16.mxu0 %v5716_v44 }
 0x72a   :  { %5217 = vmatprep.mubr.bf16.mxu0 %v2295_v58 }
 0x72b   :  { %5218 = vmatmul.mubr.bf16.gmra.mrb[124].mxu0 %v2296_v57 }
 0x72c   :  { %5298 = vmatpush3.bf16.msra.mxu0 %v5716_v44 }
 0x7e5   :  { %v5207_v61 = vpop.f32.mrb[112].mxu0 }
 0x7e6   :  { %v2411_v0 = vadd.f32 %v5207_v61, %v6675_v60  ;;  %v2402_v1 = vpop.f32.mrb[113].mxu0  ;;  %v5687_v61 = vld [vmem:[#allocation8 + $0x8] sm:$0xff]  }
 0x7e7   :  { %v2403_v49 = vadd.f32 %v6675_v60, %v2402_v1  ;;  %v5208_v2 = vpop.f32.mrb[114].mxu0  ;;  %v5689_v1 = vld [vmem:[#allocation8 + $0x18] sm:$0xff]  }
 0x7e8   :  { %v2414_v3 = vadd.f32 %v5208_v2, %v6675_v60  ;;  %v2405_v4 = vpop.f32.mrb[115].mxu0  ;;  %v2467_v7 = vmax.f32 %v2411_v0, 0.0  ;;  %v5688_v0 = vld [vmem:[#allocation8 + $0x10] sm:$0xff]  }
 0x7e9   :  { %v2406_v6 = vadd.f32 %v6675_v60, %v2405_v4  ;;  %v2465_v9 = vmax.f32 %v2403_v49, 0.0  ;;  %v5690_v49 = vld [vmem:[#allocation8 + $0x20] sm:$0xff]   ;;  %v5692_v2 = vld [vmem:[#allocation8 + $0x30] sm:$0xff]  }
 0x7ea   :  { %v2468_v8 = vmax.f32 %v2414_v3, 0.0  ;;  %v5693_v3 = vld [vmem:[#allocation8 + $0x38] sm:$0xff]   ;;  %v5694_v4 = vld [vmem:[#allocation8 + $0x40] sm:$0xff]  }
 0x7eb   :  { %v2466_v10 = vmax.f32 %v2406_v6, 0.0  ;;  %v5697_v6 = vld [vmem:[#allocation8 + $0x58] sm:$0xff]  }
 0x7ec   :  { %v2530_v11 = vpack.c.bf16 %v2468_v8, %v2467_v7  ;;  %v5698_v7 = vld [vmem:[#allocation8 + $0x60] sm:$0xff]   ;;  %v5699_v8 = vld [vmem:[#allocation8 + $0x68] sm:$0xff]  }
 0x7ed   :  { %v2529_v21 = vpack.c.bf16 %v2466_v10, %v2465_v9  ;;  %v5211_v15 = vpop.f32.mrb[116].mxu0  ;;  %v5700_v9 = vld [vmem:[#allocation8 + $0x70] sm:$0xff]   ;;  %v5701_v10 = vld [vmem:[#allocation8 + $0x78] sm:$0xff]  }
 0x7ee   :  { %v2427_v63 = vadd.f32 %v5211_v15, %v6675_v60  ;;  %v2418_v16 = vpop.f32.mrb[117].mxu0  ;;  %v5705_v15 = vld [vmem:[#allocation8 + $0x98] sm:$0xff]  }
 0x7ef   :  { %v2419_v17 = vadd.f32 %v6675_v60, %v2418_v16  ;;  %v5212_v18 = vpop.f32.mrb[118].mxu0  ;;  %5221 = vmatprep.subr.bf16.mxu1 %v2529_v21  ;;  %v5707_v16 = vld [vmem:[#allocation8 + $0xa8] sm:$0xff]  }
 0x7f0   :  { %v2430_v19 = vadd.f32 %v5212_v18, %v6675_v60  ;;  %v2421_v62 = vpop.f32.mrb[119].mxu0  ;;  %5222 = vmatpush3.bf16.msra.mxu1 %v2529_v21  ;;  %v2471_v23 = vmax.f32 %v2427_v63, 0.0  ;;  %v5704_v21 = vld [vmem:[#allocation8 + $0x90] sm:$0xff]   ;;  %v5706_v63 = vld [vmem:[#allocation8 + $0xa0] sm:$0xff]   ;;  %v5709_v18 = vld [vmem:[#allocation8 + $0xb8] sm:$0xff]  }
 0x7f1   :  { %v2422_v22 = vadd.f32 %v6675_v60, %v2421_v62  ;;  %5223 = vmatprep.subr.bf16.mxu1 %v2530_v11  ;;  %v2469_v24 = vmax.f32 %v2419_v17, 0.0  ;;  %v5708_v17 = vld [vmem:[#allocation8 + $0xb0] sm:$0xff]   ;;  %v5718_v62 = vld [vmem:[#allocation24] sm:$0xff]  }
 0x7f2   :  { %v2472_v40 = vmax.f32 %v2430_v19, 0.0  ;;  %v5717_v19 = vld [vmem:[#allocation21 + $0x38] sm:$0xff]  }
 0x7f3   :  { %v2470_v25 = vmax.f32 %v2422_v22, 0.0  ;;  %5299 = vmatprep.subr.bf16.mxu0 %v5717_v19  ;;  %v5720_v22 = vld [vmem:[#allocation24 + $0x10] sm:$0xff]  }
 0x7f4   :  { %v2532_v26 = vpack.c.bf16 %v2472_v40, %v2471_v23  ;;  %5224 = vmatpush3.bf16.msra.mxu1 %v2530_v11  ;;  %v5702_v11 = vld [vmem:[#allocation8 + $0x80] sm:$0xff]   ;;  %5300 = vmatpush3.bf16.msra.mxu0 %v5717_v19 }
 0x7f5   :  { %v2531_v28 = vpack.c.bf16 %v2470_v25, %v2469_v24  ;;  %v5215_v13 = vpop.f32.mrb[120].mxu0  ;;  %v5721_v23 = vld [vmem:[#allocation24 + $0x18] sm:$0xff]   ;;  %v5722_v40 = vld [vmem:[#allocation24 + $0x20] sm:$0xff]   ;;  %v5723_v24 = vld [vmem:[#allocation24 + $0x28] sm:$0xff]  }
 0x7f6   :  { %v2443_v29 = vadd.f32 %v5215_v13, %v6675_v60  ;;  %v2434_v30 = vpop.f32.mrb[121].mxu0 }
 0x7f7   :  { %v2435_v31 = vadd.f32 %v6675_v60, %v2434_v30  ;;  %5225 = vmatprep.subr.bf16.mxu1 %v2531_v28  ;;  %v5216_v12 = vpop.f32.mrb[122].mxu0 }
 0x7f8   :  { %v2446_v32 = vadd.f32 %v5216_v12, %v6675_v60  ;;  %5226 = vmatpush3.bf16.msra.mxu1 %v2531_v28  ;;  %v2437_v35 = vpop.f32.mrb[123].mxu0  ;;  %v2475_v38 = vmax.f32 %v2443_v29, 0.0 }
 0x7f9   :  { %v2438_v37 = vadd.f32 %v6675_v60, %v2437_v35  ;;  %5227 = vmatprep.subr.bf16.mxu1 %v2532_v26  ;;  %v2473_v41 = vmax.f32 %v2435_v31, 0.0 }
 0x7fa   :  { %v2476_v39 = vmax.f32 %v2446_v32, 0.0 }
 0x7fb   :  { %v2474_v42 = vmax.f32 %v2438_v37, 0.0 }
 0x7fc   :  { %v2534_v43 = vpack.c.bf16 %v2476_v39, %v2475_v38  ;;  %5228 = vmatpush3.bf16.msra.mxu1 %v2532_v26 }
 0x7fd   :  { %v2533_v45 = vpack.c.bf16 %v2474_v42, %v2473_v41 }
 0x7fe   :  { %v5219_v46 = vpop.f32.mrb[124].mxu0 }
 0x7ff   :  { %5229 = vmatprep.subr.bf16.mxu1 %v2533_v45  ;;  %v2459_v47 = vadd.f32 %v5219_v46, %v6675_v60  ;;  %v2450_v50 = vpop.f32.mrb[125].mxu0 }
 0x800   :  { %5230 = vmatpush3.bf16.msra.mxu1 %v2533_v45  ;;  %v2451_v51 = vadd.f32 %v6675_v60, %v2450_v50  ;;  %v5220_v34 = vpop.f32.mrb[126].mxu0 }
 0x801   :  { %5231 = vmatprep.subr.bf16.mxu1 %v2534_v43  ;;  %v2462_v52 = vadd.f32 %v5220_v34, %v6675_v60  ;;  %v2453_v53 = vpop.f32.mrb[127].mxu0  ;;  %v2479_v55 = vmax.f32 %v2459_v47, 0.0 }
 0x802   :  { %v2454_v54 = vadd.f32 %v6675_v60, %v2453_v53  ;;  %v2477_v56 = vmax.f32 %v2451_v51, 0.0  ;;  %v5691_v60 = vld [vmem:[#allocation8 + $0x28] sm:$0xff]  }
 0x803   :  { %v2480_v33 = vmax.f32 %v2462_v52, 0.0 }
 0x804   :  { %5232 = vmatpush3.bf16.msra.mxu1 %v2534_v43  ;;  %v2478_v57 = vmax.f32 %v2454_v54, 0.0 }
 0x805   :  { %v2536_v58 = vpack.c.bf16 %v2480_v33, %v2479_v55 }
 0x806   :  { %v2535_v59 = vpack.c.bf16 %v2478_v57, %v2477_v56 }
 0x808   :  { %5233 = vmatprep.subr.bf16.mxu1 %v2535_v59 }
 0x809   :  { %5234 = vmatpush3.bf16.msra.mxu1 %v2535_v59 }
 0x80a   :  { %5235 = vmatprep.subr.bf16.mxu1 %v2536_v58 }
 0x80d   :  { %5236 = vmatpush3.bf16.msra.mxu1 %v2536_v58 }
 0x80e   :  { %5349 = vmatprep.subr.bf16.mxu1 %v5718_v62 }
 0x810   :  { %5238 = vmatmul.mubr.bf16.vlgmr.msra.gmra.mrb[80].mxu1 %v5687_v61 }
 0x811   :  { %5241 = vmatprep.mubr.bf16.mxu1 %v5688_v0  ;;  %5350 = vmatpush3.bf16.msra.mxu1 %v5718_v62 }
 0x812   :  { %5351 = vmatprep.subr.bf16.mxu1 %v5719_v20 }
 0x815   :  { %5352 = vmatpush3.bf16.msra.mxu1 %v5719_v20 }
 0x816   :  { %5353 = vmatprep.subr.bf16.mxu1 %v5720_v22 }
 0x818   :  { %5242 = vmatmul.mubr.bf16.gmra.mrb[84].mxu1 %v5689_v1 }
 0x819   :  { %5245 = vmatprep.mubr.bf16.mxu1 %v5690_v49  ;;  %5354 = vmatpush3.bf16.msra.mxu1 %v5720_v22 }
 0x81a   :  { %5355 = vmatprep.subr.bf16.mxu1 %v5721_v23 }
 0x81d   :  { %5356 = vmatpush3.bf16.msra.mxu1 %v5721_v23 }
 0x81e   :  { %5357 = vmatprep.subr.bf16.mxu1 %v5722_v40 }
 0x820   :  { %5246 = vmatmul.mubr.bf16.gmra.mrb[88].mxu1 %v5691_v60 }
 0x821   :  { %5249 = vmatprep.mubr.bf16.mxu1 %v5692_v2  ;;  %5358 = vmatpush3.bf16.msra.mxu1 %v5722_v40 }
 0x822   :  { %5359 = vmatprep.subr.bf16.mxu1 %v5723_v24 }
 0x825   :  { %5360 = vmatpush3.bf16.msra.mxu1 %v5723_v24 }
 0x828   :  { %5250 = vmatmul.mubr.bf16.gmra.mrb[92].mxu1 %v5693_v3 }
 0x829   :  { %5253 = vmatprep.mubr.bf16.mxu1 %v5694_v4 }
 0x830   :  { %5254 = vmatmul.mubr.bf16.gmra.mrb[96].mxu1 %v5695_v5 }
 0x831   :  { %5257 = vmatprep.mubr.bf16.mxu1 %v5696_v48 }
 0x838   :  { %5258 = vmatmul.mubr.bf16.gmra.mrb[100].mxu1 %v5697_v6 }
 0x839   :  { %5261 = vmatprep.mubr.bf16.mxu1 %v5698_v7 }
 0x840   :  { %5262 = vmatmul.mubr.bf16.gmra.mrb[104].mxu1 %v5699_v8 }
 0x841   :  { %5265 = vmatprep.mubr.bf16.mxu1 %v5700_v9 }
 0x848   :  { %5266 = vmatmul.mubr.bf16.gmra.mrb[108].mxu1 %v5701_v10 }
 0x849   :  { %5269 = vmatprep.mubr.bf16.mxu1 %v5702_v11 }
 0x850   :  { %5270 = vmatmul.mubr.bf16.gmra.mrb[112].mxu1 %v5703_v14 }
 0x851   :  { %5273 = vmatprep.mubr.bf16.mxu1 %v5704_v21 }
 0x858   :  { %5274 = vmatmul.mubr.bf16.gmra.mrb[116].mxu1 %v5705_v15 }
 0x859   :  { %5277 = vmatprep.mubr.bf16.mxu1 %v5706_v63 }
 0x860   :  { %5278 = vmatmul.mubr.bf16.gmra.mrb[120].mxu1 %v5707_v16 }
 0x861   :  { %5281 = vmatprep.mubr.bf16.mxu1 %v5708_v17 }
 0x868   :  { %5282 = vmatmul.mubr.bf16.gmra.mrb[124].mxu1 %v5709_v18 }
 0x8e3   :  { %v5239_v25 = vpop.f32.mrb[80].mxu1 }
 0x8e4   :  { %v2715_v26 = vpop.f32.mrb[81].mxu1 }
 0x8e5   :  { %v5240_v27 = vpop.f32.mrb[82].mxu1 }
 0x8e6   :  { %v2907_v28 = vpack.c.bf16 %v5240_v27, %v5239_v25  ;;  %v2718_v13 = vpop.f32.mrb[83].mxu1 }
 0x8e7   :  { %v2906_v29 = vpack.c.bf16 %v2718_v13, %v2715_v26 }
 0x8e9   :  { %5301 = vmatprep.mubr.bf16.mxu0 %v2906_v29 }
 0x8ea   :  { %5302 = vmatmul.mubr.bf16.vlgmr.msra.gmra.mrb[128].mxu0 %v2907_v28 }
 0x8eb   :  { %v5243_v30 = vpop.f32.mrb[84].mxu1 }
 0x8ec   :  { %v2731_v31 = vpop.f32.mrb[85].mxu1 }
 0x8ed   :  { %v5244_v12 = vpop.f32.mrb[86].mxu1 }
 0x8ee   :  { %v2909_v32 = vpack.c.bf16 %v5244_v12, %v5243_v30  ;;  %v2734_v35 = vpop.f32.mrb[87].mxu1 }
 0x8ef   :  { %v2908_v36 = vpack.c.bf16 %v2734_v35, %v2731_v31  ;;  %v5724_v31 = vld [vmem:[#allocation24 + $0x30] sm:$0xff]   ;;  %v5726_v35 = vld [vmem:[#allocation27] sm:$0xff]  }
 0x8f0   :  { %5361 = vmatprep.subr.bf16.mxu1 %v5724_v31  ;;  %5413 = vmatprep.subr.bf16.mxu0 %v5726_v35 }
 0x8f1   :  { %5305 = vmatprep.mubr.bf16.mxu0 %v2908_v36  ;;  %5362 = vmatpush3.bf16.msra.mxu1 %v5724_v31  ;;  %v5727_v36 = vld [vmem:[#allocation27 + $0x8] sm:$0xff]  }
 0x8f2   :  { %5306 = vmatmul.mubr.bf16.gmra.mrb[132].mxu0 %v2909_v32  ;;  %v5725_v32 = vld [vmem:[#allocation24 + $0x38] sm:$0xff]  }
 0x8f3   :  { %v5247_v37 = vpop.f32.mrb[88].mxu1  ;;  %5363 = vmatprep.subr.bf16.mxu1 %v5725_v32  ;;  %5414 = vmatpush3.bf16.msra.mxu0 %v5726_v35 }
 0x8f4   :  { %v2747_v38 = vpop.f32.mrb[89].mxu1  ;;  %5415 = vmatprep.subr.bf16.mxu0 %v5727_v36 }
 0x8f5   :  { %v5248_v39 = vpop.f32.mrb[90].mxu1  ;;  %5364 = vmatpush3.bf16.msra.mxu1 %v5725_v32 }
 0x8f6   :  { %v2911_v41 = vpack.c.bf16 %v5248_v39, %v5247_v37  ;;  %v2750_v42 = vpop.f32.mrb[91].mxu1  ;;  %v5728_v37 = vld [vmem:[#allocation27 + $0x10] sm:$0xff]   ;;  %v5730_v39 = vld [vmem:[#allocation27 + $0x20] sm:$0xff]  }
 0x8f7   :  { %v2910_v43 = vpack.c.bf16 %v2750_v42, %v2747_v38  ;;  %5416 = vmatpush3.bf16.msra.mxu0 %v5727_v36  ;;  %v5729_v38 = vld [vmem:[#allocation27 + $0x18] sm:$0xff]  }
 0x8f8   :  { %5417 = vmatprep.subr.bf16.mxu0 %v5728_v37  ;;  %v6693_v42 = vld [vmem:[#allocation23] ss:$0 sm:$0xff] }
 0x8f9   :  { %5309 = vmatprep.mubr.bf16.mxu0 %v2910_v43 }
 0x8fa   :  { %5310 = vmatmul.mubr.bf16.gmra.mrb[136].mxu0 %v2911_v41  ;;  %v5731_v41 = vld [vmem:[#allocation27 + $0x28] sm:$0xff]  }
 0x8fb   :  { %v5251_v44 = vpop.f32.mrb[92].mxu1  ;;  %5418 = vmatpush3.bf16.msra.mxu0 %v5728_v37 }
 0x8fc   :  { %v2763_v45 = vpop.f32.mrb[93].mxu1  ;;  %5419 = vmatprep.subr.bf16.mxu0 %v5729_v38 }
 0x8fd   :  { %v5252_v46 = vpop.f32.mrb[94].mxu1 }
 0x8fe   :  { %v2913_v47 = vpack.c.bf16 %v5252_v46, %v5251_v44  ;;  %v2766_v50 = vpop.f32.mrb[95].mxu1 }
 0x8ff   :  { %v2912_v51 = vpack.c.bf16 %v2766_v50, %v2763_v45  ;;  %5420 = vmatpush3.bf16.msra.mxu0 %v5729_v38 }
 0x900   :  { %5421 = vmatprep.subr.bf16.mxu0 %v5730_v39 }
 0x901   :  { %5313 = vmatprep.mubr.bf16.mxu0 %v2912_v51 }
 0x902   :  { %5314 = vmatmul.mubr.bf16.gmra.mrb[140].mxu0 %v2913_v47 }
 0x903   :  { %v5255_v34 = vpop.f32.mrb[96].mxu1  ;;  %5422 = vmatpush3.bf16.msra.mxu0 %v5730_v39 }
 0x904   :  { %v2779_v52 = vpop.f32.mrb[97].mxu1  ;;  %5423 = vmatprep.subr.bf16.mxu0 %v5731_v41 }
 0x905   :  { %v5256_v53 = vpop.f32.mrb[98].mxu1 }
 0x906   :  { %v2915_v54 = vpack.c.bf16 %v5256_v53, %v5255_v34  ;;  %v2782_v55 = vpop.f32.mrb[99].mxu1 }
 0x907   :  { %v2914_v33 = vpack.c.bf16 %v2782_v55, %v2779_v52  ;;  %5424 = vmatpush3.bf16.msra.mxu0 %v5731_v41 }
 0x909   :  { %5317 = vmatprep.mubr.bf16.mxu0 %v2914_v33 }
 0x90a   :  { %5318 = vmatmul.mubr.bf16.gmra.mrb[144].mxu0 %v2915_v54 }
 0x90b   :  { %v5259_v56 = vpop.f32.mrb[100].mxu1 }
 0x90c   :  { %v2795_v57 = vpop.f32.mrb[101].mxu1 }
 0x90d   :  { %v5260_v58 = vpop.f32.mrb[102].mxu1 }
 0x90e   :  { %v2917_v59 = vpack.c.bf16 %v5260_v58, %v5259_v56  ;;  %v2798_v61 = vpop.f32.mrb[103].mxu1 }
 0x90f   :  { %v2916_v0 = vpack.c.bf16 %v2798_v61, %v2795_v57 }
 0x911   :  { %5321 = vmatprep.mubr.bf16.mxu0 %v2916_v0 }
 0x912   :  { %5322 = vmatmul.mubr.bf16.gmra.mrb[148].mxu0 %v2917_v59 }
 0x913   :  { %v5263_v1 = vpop.f32.mrb[104].mxu1 }
 0x914   :  { %v2811_v49 = vpop.f32.mrb[105].mxu1 }
 0x915   :  { %v5264_v60 = vpop.f32.mrb[106].mxu1 }
 0x916   :  { %v2919_v2 = vpack.c.bf16 %v5264_v60, %v5263_v1  ;;  %v2814_v3 = vpop.f32.mrb[107].mxu1 }
 0x917   :  { %v2918_v4 = vpack.c.bf16 %v2814_v3, %v2811_v49 }
 0x919   :  { %5325 = vmatprep.mubr.bf16.mxu0 %v2918_v4 }
 0x91a   :  { %5326 = vmatmul.mubr.bf16.gmra.mrb[152].mxu0 %v2919_v2 }
 0x91b   :  { %v5267_v5 = vpop.f32.mrb[108].mxu1 }
 0x91c   :  { %v2827_v48 = vpop.f32.mrb[109].mxu1 }
 0x91d   :  { %v5268_v6 = vpop.f32.mrb[110].mxu1 }
 0x91e   :  { %v2921_v7 = vpack.c.bf16 %v5268_v6, %v5267_v5  ;;  %v2830_v8 = vpop.f32.mrb[111].mxu1 }
 0x91f   :  { %v2920_v9 = vpack.c.bf16 %v2830_v8, %v2827_v48 }
 0x921   :  { %5329 = vmatprep.mubr.bf16.mxu0 %v2920_v9 }
 0x922   :  { %5330 = vmatmul.mubr.bf16.gmra.mrb[156].mxu0 %v2921_v7 }
 0x923   :  { %v5271_v10 = vpop.f32.mrb[112].mxu1 }
 0x924   :  { %v2843_v11 = vpop.f32.mrb[113].mxu1 }
 0x925   :  { %v5272_v14 = vpop.f32.mrb[114].mxu1 }
 0x926   :  { %v2923_v21 = vpack.c.bf16 %v5272_v14, %v5271_v10  ;;  %v2846_v15 = vpop.f32.mrb[115].mxu1 }
 0x927   :  { %v2922_v63 = vpack.c.bf16 %v2846_v15, %v2843_v11 }
 0x929   :  { %5333 = vmatprep.mubr.bf16.mxu0 %v2922_v63 }
 0x92a   :  { %5334 = vmatmul.mubr.bf16.gmra.mrb[160].mxu0 %v2923_v21 }
 0x92b   :  { %v5275_v16 = vpop.f32.mrb[116].mxu1 }
 0x92c   :  { %v2859_v17 = vpop.f32.mrb[117].mxu1 }
 0x92d   :  { %v5276_v18 = vpop.f32.mrb[118].mxu1 }
 0x92e   :  { %v2925_v19 = vpack.c.bf16 %v5276_v18, %v5275_v16  ;;  %v2862_v62 = vpop.f32.mrb[119].mxu1 }
 0x92f   :  { %v2924_v20 = vpack.c.bf16 %v2862_v62, %v2859_v17 }
 0x931   :  { %5337 = vmatprep.mubr.bf16.mxu0 %v2924_v20 }
 0x932   :  { %5338 = vmatmul.mubr.bf16.gmra.mrb[164].mxu0 %v2925_v19 }
 0x933   :  { %v5279_v22 = vpop.f32.mrb[120].mxu1 }
 0x934   :  { %v2875_v23 = vpop.f32.mrb[121].mxu1 }
 0x935   :  { %v5280_v40 = vpop.f32.mrb[122].mxu1 }
 0x936   :  { %v2927_v24 = vpack.c.bf16 %v5280_v40, %v5279_v22  ;;  %v2878_v25 = vpop.f32.mrb[123].mxu1 }
 0x937   :  { %v2926_v26 = vpack.c.bf16 %v2878_v25, %v2875_v23 }
 0x939   :  { %5341 = vmatprep.mubr.bf16.mxu0 %v2926_v26 }
 0x93a   :  { %5342 = vmatmul.mubr.bf16.gmra.mrb[168].mxu0 %v2927_v24 }
 0x93b   :  { %v5283_v27 = vpop.f32.mrb[124].mxu1 }
 0x93c   :  { %v2891_v28 = vpop.f32.mrb[125].mxu1 }
 0x93d   :  { %v5284_v13 = vpop.f32.mrb[126].mxu1 }
 0x93e   :  { %v2929_v29 = vpack.c.bf16 %v5284_v13, %v5283_v27  ;;  %v2894_v30 = vpop.f32.mrb[127].mxu1 }
 0x93f   :  { %v2928_v12 = vpack.c.bf16 %v2894_v30, %v2891_v28 }
 0x941   :  { %5345 = vmatprep.mubr.bf16.mxu0 %v2928_v12 }
 0x942   :  { %5346 = vmatmul.mubr.bf16.gmra.mrb[172].mxu0 %v2929_v29 }
 0x9bd   :  { %v5303_v43 = vpop.f32.mrb[128].mxu0 }
 0x9be   :  { %v3044_v44 = vadd.f32 %v5303_v43, %v6693_v42  ;;  %v3035_v45 = vpop.f32.mrb[129].mxu0 }
 0x9bf   :  { %v3036_v46 = vadd.f32 %v6693_v42, %v3035_v45  ;;  %v5304_v47 = vpop.f32.mrb[130].mxu0 }
 0x9c0   :  { %v3047_v50 = vadd.f32 %v5304_v47, %v6693_v42  ;;  %v3038_v51 = vpop.f32.mrb[131].mxu0  ;;  %v3228_v52 = vmax.f32 %v3044_v44, 0.0 }
 0x9c1   :  { %v3039_v34 = vadd.f32 %v6693_v42, %v3038_v51  ;;  %v3226_v54 = vmax.f32 %v3036_v46, 0.0 }
 0x9c2   :  { %v3229_v53 = vmax.f32 %v3047_v50, 0.0 }
 0x9c3   :  { %v3227_v55 = vmax.f32 %v3039_v34, 0.0 }
 0x9c4   :  { %v3275_v33 = vpack.c.bf16 %v3229_v53, %v3228_v52 }
 0x9c5   :  { %v3274_v56 = vpack.c.bf16 %v3227_v55, %v3226_v54  ;;  %v5307_v57 = vpop.f32.mrb[132].mxu0 }
 0x9c6   :  { %v3060_v58 = vadd.f32 %v5307_v57, %v6693_v42  ;;  %v3051_v59 = vpop.f32.mrb[133].mxu0 }
 0x9c7   :  { %v3052_v61 = vadd.f32 %v6693_v42, %v3051_v59  ;;  %v5308_v0 = vpop.f32.mrb[134].mxu0  ;;  %5365 = vmatprep.mubr.bf16.mxu1 %v3274_v56 }
 0x9c8   :  { %v3063_v1 = vadd.f32 %v5308_v0, %v6693_v42  ;;  %v3054_v49 = vpop.f32.mrb[135].mxu0  ;;  %5366 = vmatmul.mubr.bf16.vlgmr.msra.gmra.mrb[128].mxu1 %v3275_v33  ;;  %v3232_v2 = vmax.f32 %v3060_v58, 0.0 }
 0x9c9   :  { %v3055_v60 = vadd.f32 %v6693_v42, %v3054_v49  ;;  %v3230_v4 = vmax.f32 %v3052_v61, 0.0 }
 0x9ca   :  { %v3233_v3 = vmax.f32 %v3063_v1, 0.0 }
 0x9cb   :  { %v3231_v5 = vmax.f32 %v3055_v60, 0.0 }
 0x9cc   :  { %v3277_v48 = vpack.c.bf16 %v3233_v3, %v3232_v2 }
 0x9cd   :  { %v3276_v6 = vpack.c.bf16 %v3231_v5, %v3230_v4  ;;  %v5311_v7 = vpop.f32.mrb[136].mxu0 }
 0x9ce   :  { %v3076_v8 = vadd.f32 %v5311_v7, %v6693_v42  ;;  %v3067_v9 = vpop.f32.mrb[137].mxu0 }
 0x9cf   :  { %v3068_v10 = vadd.f32 %v6693_v42, %v3067_v9  ;;  %v5312_v11 = vpop.f32.mrb[138].mxu0  ;;  %5369 = vmatprep.mubr.bf16.mxu1 %v3276_v6 }
 0x9d0   :  { %v3079_v14 = vadd.f32 %v5312_v11, %v6693_v42  ;;  %v3070_v21 = vpop.f32.mrb[139].mxu0  ;;  %5370 = vmatmul.mubr.bf16.gmra.mrb[132].mxu1 %v3277_v48  ;;  %v3236_v63 = vmax.f32 %v3076_v8, 0.0 }
 0x9d1   :  { %v3071_v15 = vadd.f32 %v6693_v42, %v3070_v21  ;;  %v3234_v17 = vmax.f32 %v3068_v10, 0.0 }
 0x9d2   :  { %v3237_v16 = vmax.f32 %v3079_v14, 0.0 }
 0x9d3   :  { %v3235_v18 = vmax.f32 %v3071_v15, 0.0 }
 0x9d4   :  { %v3279_v19 = vpack.c.bf16 %v3237_v16, %v3236_v63 }
 0x9d5   :  { %v3278_v62 = vpack.c.bf16 %v3235_v18, %v3234_v17  ;;  %v5315_v20 = vpop.f32.mrb[140].mxu0 }
 0x9d6   :  { %v3092_v22 = vadd.f32 %v5315_v20, %v6693_v42  ;;  %v3083_v23 = vpop.f32.mrb[141].mxu0 }
 0x9d7   :  { %v3084_v40 = vadd.f32 %v6693_v42, %v3083_v23  ;;  %v5316_v24 = vpop.f32.mrb[142].mxu0  ;;  %5373 = vmatprep.mubr.bf16.mxu1 %v3278_v62 }
 0x9d8   :  { %v3095_v25 = vadd.f32 %v5316_v24, %v6693_v42  ;;  %v3086_v26 = vpop.f32.mrb[143].mxu0  ;;  %5374 = vmatmul.mubr.bf16.gmra.mrb[136].mxu1 %v3279_v19  ;;  %v3240_v28 = vmax.f32 %v3092_v22, 0.0 }
 0x9d9   :  { %v3087_v27 = vadd.f32 %v6693_v42, %v3086_v26  ;;  %v3238_v29 = vmax.f32 %v3084_v40, 0.0 }
 0x9da   :  { %v3241_v13 = vmax.f32 %v3095_v25, 0.0 }
 0x9db   :  { %v3239_v30 = vmax.f32 %v3087_v27, 0.0 }
 0x9dc   :  { %v3281_v31 = vpack.c.bf16 %v3241_v13, %v3240_v28 }
 0x9dd   :  { %v3280_v12 = vpack.c.bf16 %v3239_v30, %v3238_v29  ;;  %v5319_v32 = vpop.f32.mrb[144].mxu0 }
 0x9de   :  { %v3108_v35 = vadd.f32 %v5319_v32, %v6693_v42  ;;  %v3099_v36 = vpop.f32.mrb[145].mxu0 }
 0x9df   :  { %v3100_v37 = vadd.f32 %v6693_v42, %v3099_v36  ;;  %v5320_v38 = vpop.f32.mrb[146].mxu0  ;;  %5377 = vmatprep.mubr.bf16.mxu1 %v3280_v12 }
 0x9e0   :  { %v3111_v39 = vadd.f32 %v5320_v38, %v6693_v42  ;;  %v3102_v41 = vpop.f32.mrb[147].mxu0  ;;  %5378 = vmatmul.mubr.bf16.gmra.mrb[140].mxu1 %v3281_v31  ;;  %v3244_v44 = vmax.f32 %v3108_v35, 0.0 }
 0x9e1   :  { %v3103_v43 = vadd.f32 %v6693_v42, %v3102_v41  ;;  %v3242_v46 = vmax.f32 %v3100_v37, 0.0 }
 0x9e2   :  { %v3245_v45 = vmax.f32 %v3111_v39, 0.0 }
 0x9e3   :  { %v3243_v47 = vmax.f32 %v3103_v43, 0.0 }
 0x9e4   :  { %v3283_v50 = vpack.c.bf16 %v3245_v45, %v3244_v44 }
 0x9e5   :  { %v3282_v51 = vpack.c.bf16 %v3243_v47, %v3242_v46  ;;  %v5323_v34 = vpop.f32.mrb[148].mxu0 }
 0x9e6   :  { %v3124_v52 = vadd.f32 %v5323_v34, %v6693_v42  ;;  %v3115_v53 = vpop.f32.mrb[149].mxu0 }
 0x9e7   :  { %v3116_v54 = vadd.f32 %v6693_v42, %v3115_v53  ;;  %v5324_v55 = vpop.f32.mrb[150].mxu0  ;;  %5381 = vmatprep.mubr.bf16.mxu1 %v3282_v51 }
 0x9e8   :  { %v3127_v33 = vadd.f32 %v5324_v55, %v6693_v42  ;;  %v3118_v56 = vpop.f32.mrb[151].mxu0  ;;  %5382 = vmatmul.mubr.bf16.gmra.mrb[144].mxu1 %v3283_v50  ;;  %v3248_v58 = vmax.f32 %v3124_v52, 0.0 }
 0x9e9   :  { %v3119_v57 = vadd.f32 %v6693_v42, %v3118_v56  ;;  %v3246_v61 = vmax.f32 %v3116_v54, 0.0 }
 0x9ea   :  { %v3249_v59 = vmax.f32 %v3127_v33, 0.0 }
 0x9eb   :  { %v3247_v0 = vmax.f32 %v3119_v57, 0.0 }
 0x9ec   :  { %v3285_v1 = vpack.c.bf16 %v3249_v59, %v3248_v58 }
 0x9ed   :  { %v3284_v49 = vpack.c.bf16 %v3247_v0, %v3246_v61  ;;  %v5327_v60 = vpop.f32.mrb[152].mxu0 }
 0x9ee   :  { %v3140_v2 = vadd.f32 %v5327_v60, %v6693_v42  ;;  %v3131_v3 = vpop.f32.mrb[153].mxu0 }
 0x9ef   :  { %v3132_v4 = vadd.f32 %v6693_v42, %v3131_v3  ;;  %v5328_v5 = vpop.f32.mrb[154].mxu0  ;;  %5385 = vmatprep.mubr.bf16.mxu1 %v3284_v49 }
 0x9f0   :  { %v3143_v48 = vadd.f32 %v5328_v5, %v6693_v42  ;;  %v3134_v6 = vpop.f32.mrb[155].mxu0  ;;  %5386 = vmatmul.mubr.bf16.gmra.mrb[148].mxu1 %v3285_v1  ;;  %v3252_v8 = vmax.f32 %v3140_v2, 0.0 }
 0x9f1   :  { %v3135_v7 = vadd.f32 %v6693_v42, %v3134_v6  ;;  %v3250_v10 = vmax.f32 %v3132_v4, 0.0 }
 0x9f2   :  { %v3253_v9 = vmax.f32 %v3143_v48, 0.0 }
 0x9f3   :  { %v3251_v11 = vmax.f32 %v3135_v7, 0.0 }
 0x9f4   :  { %v3287_v14 = vpack.c.bf16 %v3253_v9, %v3252_v8 }
 0x9f5   :  { %v3286_v21 = vpack.c.bf16 %v3251_v11, %v3250_v10  ;;  %v5331_v15 = vpop.f32.mrb[156].mxu0 }
 0x9f6   :  { %v3156_v63 = vadd.f32 %v5331_v15, %v6693_v42  ;;  %v3147_v16 = vpop.f32.mrb[157].mxu0 }
 0x9f7   :  { %v3148_v17 = vadd.f32 %v6693_v42, %v3147_v16  ;;  %v5332_v18 = vpop.f32.mrb[158].mxu0  ;;  %5389 = vmatprep.mubr.bf16.mxu1 %v3286_v21 }
 0x9f8   :  { %v3159_v19 = vadd.f32 %v5332_v18, %v6693_v42  ;;  %v3150_v62 = vpop.f32.mrb[159].mxu0  ;;  %5390 = vmatmul.mubr.bf16.gmra.mrb[152].mxu1 %v3287_v14  ;;  %v3256_v22 = vmax.f32 %v3156_v63, 0.0 }
 0x9f9   :  { %v3151_v20 = vadd.f32 %v6693_v42, %v3150_v62  ;;  %v3254_v40 = vmax.f32 %v3148_v17, 0.0  ;;  %v5732_v62 = vld [vmem:[#allocation27 + $0x30] sm:$0xff]  }
 0x9fa   :  { %v3257_v23 = vmax.f32 %v3159_v19, 0.0  ;;  %5425 = vmatprep.subr.bf16.mxu0 %v5732_v62 }
 0x9fb   :  { %v3255_v24 = vmax.f32 %v3151_v20, 0.0  ;;  %5426 = vmatpush3.bf16.msra.mxu0 %v5732_v62 }
 0x9fc   :  { %v3289_v25 = vpack.c.bf16 %v3257_v23, %v3256_v22  ;;  %v5733_v22 = vld [vmem:[#allocation27 + $0x38] sm:$0xff]  }
 0x9fd   :  { %v3288_v26 = vpack.c.bf16 %v3255_v24, %v3254_v40  ;;  %v5335_v27 = vpop.f32.mrb[160].mxu0  ;;  %5427 = vmatprep.subr.bf16.mxu0 %v5733_v22  ;;  %v5734_v23 = vld [vmem:[%s6983_s24] sm:$0xff]   ;;  %v5736_v40 = vld [vmem:[%s6983_s24 + $0x10] sm:$0xff]   ;;  %v5737_v24 = vld [vmem:[%s6983_s24 + $0x18] sm:$0xff]  }
 0x9fe   :  { %v3172_v28 = vadd.f32 %v5335_v27, %v6693_v42  ;;  %v3163_v13 = vpop.f32.mrb[161].mxu0  ;;  %5477 = vmatprep.subr.bf16.mxu1 %v5734_v23  ;;  %v6761_v27 = vld [vmem:[#allocation26] ss:$0 sm:$0xff] }
 0x9ff   :  { %v3164_v29 = vadd.f32 %v6693_v42, %v3163_v13  ;;  %v5336_v30 = vpop.f32.mrb[162].mxu0  ;;  %5393 = vmatprep.mubr.bf16.mxu1 %v3288_v26  ;;  %5428 = vmatpush3.bf16.msra.mxu0 %v5733_v22  ;;  %v5739_v26 = vld [vmem:[%s6983_s24 + $0x28] sm:$0xff]  }
 0xa00   :  { %v3175_v31 = vadd.f32 %v5336_v30, %v6693_v42  ;;  %v3166_v12 = vpop.f32.mrb[163].mxu0  ;;  %5394 = vmatmul.mubr.bf16.gmra.mrb[156].mxu1 %v3289_v25  ;;  %v3260_v35 = vmax.f32 %v3172_v28, 0.0  ;;  %v5738_v25 = vld [vmem:[%s6983_s24 + $0x20] sm:$0xff]  }
 0xa01   :  { %v3167_v32 = vadd.f32 %v6693_v42, %v3166_v12  ;;  %v3258_v37 = vmax.f32 %v3164_v29, 0.0  ;;  %5478 = vmatpush3.bf16.msra.mxu1 %v5734_v23 }
 0xa02   :  { %v3261_v36 = vmax.f32 %v3175_v31, 0.0 }
 0xa03   :  { %v3259_v38 = vmax.f32 %v3167_v32, 0.0 }
 0xa04   :  { %v3291_v39 = vpack.c.bf16 %v3261_v36, %v3260_v35 }
 0xa05   :  { %v3290_v41 = vpack.c.bf16 %v3259_v38, %v3258_v37  ;;  %v5339_v43 = vpop.f32.mrb[164].mxu0 }
 0xa06   :  { %v3188_v44 = vadd.f32 %v5339_v43, %v6693_v42  ;;  %v3179_v45 = vpop.f32.mrb[165].mxu0 }
 0xa07   :  { %v3180_v46 = vadd.f32 %v6693_v42, %v3179_v45  ;;  %v5340_v47 = vpop.f32.mrb[166].mxu0  ;;  %5397 = vmatprep.mubr.bf16.mxu1 %v3290_v41 }
 0xa08   :  { %v3191_v50 = vadd.f32 %v5340_v47, %v6693_v42  ;;  %v3182_v51 = vpop.f32.mrb[167].mxu0  ;;  %5398 = vmatmul.mubr.bf16.gmra.mrb[160].mxu1 %v3291_v39  ;;  %v3264_v52 = vmax.f32 %v3188_v44, 0.0 }
 0xa09   :  { %v3183_v34 = vadd.f32 %v6693_v42, %v3182_v51  ;;  %v3262_v54 = vmax.f32 %v3180_v46, 0.0 }
 0xa0a   :  { %v3265_v53 = vmax.f32 %v3191_v50, 0.0 }
 0xa0b   :  { %v3263_v55 = vmax.f32 %v3183_v34, 0.0 }
 0xa0c   :  { %v3293_v33 = vpack.c.bf16 %v3265_v53, %v3264_v52 }
 0xa0d   :  { %v3292_v56 = vpack.c.bf16 %v3263_v55, %v3262_v54  ;;  %v5343_v57 = vpop.f32.mrb[168].mxu0 }
 0xa0e   :  { %v3204_v58 = vadd.f32 %v5343_v57, %v6693_v42  ;;  %v3195_v59 = vpop.f32.mrb[169].mxu0 }
 0xa0f   :  { %v3196_v61 = vadd.f32 %v6693_v42, %v3195_v59  ;;  %v5344_v0 = vpop.f32.mrb[170].mxu0  ;;  %5401 = vmatprep.mubr.bf16.mxu1 %v3292_v56 }
 0xa10   :  { %v3207_v1 = vadd.f32 %v5344_v0, %v6693_v42  ;;  %v3198_v49 = vpop.f32.mrb[171].mxu0  ;;  %5402 = vmatmul.mubr.bf16.gmra.mrb[164].mxu1 %v3293_v33  ;;  %v3268_v2 = vmax.f32 %v3204_v58, 0.0 }
 0xa11   :  { %v3199_v60 = vadd.f32 %v6693_v42, %v3198_v49  ;;  %v3266_v4 = vmax.f32 %v3196_v61, 0.0 }
 0xa12   :  { %v3269_v3 = vmax.f32 %v3207_v1, 0.0 }
 0xa13   :  { %v3267_v5 = vmax.f32 %v3199_v60, 0.0 }
 0xa14   :  { %v3295_v48 = vpack.c.bf16 %v3269_v3, %v3268_v2 }
 0xa15   :  { %v3294_v6 = vpack.c.bf16 %v3267_v5, %v3266_v4  ;;  %v5347_v7 = vpop.f32.mrb[172].mxu0 }
 0xa16   :  { %v3220_v8 = vadd.f32 %v5347_v7, %v6693_v42  ;;  %v3211_v9 = vpop.f32.mrb[173].mxu0 }
 0xa17   :  { %v3212_v10 = vadd.f32 %v6693_v42, %v3211_v9  ;;  %v5348_v11 = vpop.f32.mrb[174].mxu0  ;;  %5405 = vmatprep.mubr.bf16.mxu1 %v3294_v6 }
 0xa18   :  { %v3223_v14 = vadd.f32 %v5348_v11, %v6693_v42  ;;  %v3214_v21 = vpop.f32.mrb[175].mxu0  ;;  %5406 = vmatmul.mubr.bf16.gmra.mrb[168].mxu1 %v3295_v48  ;;  %v3272_v63 = vmax.f32 %v3220_v8, 0.0 }
 0xa19   :  { %v3215_v15 = vadd.f32 %v6693_v42, %v3214_v21  ;;  %v3270_v17 = vmax.f32 %v3212_v10, 0.0  ;;  %v5735_v42 = vld [vmem:[%s6983_s24 + $0x8] sm:$0xff]  }
 0xa1a   :  { %v3273_v16 = vmax.f32 %v3223_v14, 0.0  ;;  %5479 = vmatprep.subr.bf16.mxu1 %v5735_v42 }
 0xa1b   :  { %v3271_v18 = vmax.f32 %v3215_v15, 0.0  ;;  %5480 = vmatpush3.bf16.msra.mxu1 %v5735_v42 }
 0xa1c   :  { %v3297_v19 = vpack.c.bf16 %v3273_v16, %v3272_v63  ;;  %5481 = vmatprep.subr.bf16.mxu1 %v5736_v40 }
 0xa1d   :  { %v3296_v20 = vpack.c.bf16 %v3271_v18, %v3270_v17 }
 0xa1f   :  { %5409 = vmatprep.mubr.bf16.mxu1 %v3296_v20  ;;  %5482 = vmatpush3.bf16.msra.mxu1 %v5736_v40 }
 0xa20   :  { %5410 = vmatmul.mubr.bf16.gmra.mrb[172].mxu1 %v3297_v19  ;;  %5483 = vmatprep.subr.bf16.mxu1 %v5737_v24 }
 0xa23   :  { %5484 = vmatpush3.bf16.msra.mxu1 %v5737_v24 }
 0xa24   :  { %5485 = vmatprep.subr.bf16.mxu1 %v5738_v25 }
 0xa27   :  { %5486 = vmatpush3.bf16.msra.mxu1 %v5738_v25 }
 0xa28   :  { %5487 = vmatprep.subr.bf16.mxu1 %v5739_v26 }
 0xa2b   :  { %5488 = vmatpush3.bf16.msra.mxu1 %v5739_v26 }
 0xa9b   :  { %v5367_v28 = vpop.f32.mrb[128].mxu1 }
 0xa9c   :  { %v3412_v13 = vadd.f32 %v5367_v28, %v6761_v27  ;;  %v3403_v29 = vpop.f32.mrb[129].mxu1 }
 0xa9d   :  { %v3404_v30 = vadd.f32 %v6761_v27, %v3403_v29  ;;  %v5368_v31 = vpop.f32.mrb[130].mxu1 }
 0xa9e   :  { %v3415_v12 = vadd.f32 %v5368_v31, %v6761_v27  ;;  %v3406_v32 = vpop.f32.mrb[131].mxu1  ;;  %v3596_v36 = vmax.f32 %v3412_v13, 0.0 }
 0xa9f   :  { %v3407_v35 = vadd.f32 %v6761_v27, %v3406_v32  ;;  %v3594_v38 = vmax.f32 %v3404_v30, 0.0 }
 0xaa0   :  { %v3597_v37 = vmax.f32 %v3415_v12, 0.0 }
 0xaa1   :  { %v3595_v39 = vmax.f32 %v3407_v35, 0.0 }
 0xaa2   :  { %v3643_v41 = vpack.c.bf16 %v3597_v37, %v3596_v36 }
 0xaa3   :  { %v3642_v43 = vpack.c.bf16 %v3595_v39, %v3594_v38  ;;  %v5371_v44 = vpop.f32.mrb[132].mxu1 }
 0xaa4   :  { %v3428_v45 = vadd.f32 %v5371_v44, %v6761_v27  ;;  %v3419_v46 = vpop.f32.mrb[133].mxu1 }
 0xaa5   :  { %v3420_v47 = vadd.f32 %v6761_v27, %v3419_v46  ;;  %v5372_v50 = vpop.f32.mrb[134].mxu1  ;;  %5429 = vmatprep.mubr.bf16.mxu0 %v3642_v43 }
 0xaa6   :  { %v3431_v51 = vadd.f32 %v5372_v50, %v6761_v27  ;;  %v3422_v34 = vpop.f32.mrb[135].mxu1  ;;  %5430 = vmatmul.mubr.bf16.vlgmr.msra.gmra.mrb[176].mxu0 %v3643_v41  ;;  %v3600_v53 = vmax.f32 %v3428_v45, 0.0 }
 0xaa7   :  { %v3423_v52 = vadd.f32 %v6761_v27, %v3422_v34  ;;  %v3598_v55 = vmax.f32 %v3420_v47, 0.0 }
 0xaa8   :  { %v3601_v54 = vmax.f32 %v3431_v51, 0.0 }
 0xaa9   :  { %v3599_v33 = vmax.f32 %v3423_v52, 0.0 }
 0xaaa   :  { %v3645_v56 = vpack.c.bf16 %v3601_v54, %v3600_v53 }
 0xaab   :  { %v3644_v57 = vpack.c.bf16 %v3599_v33, %v3598_v55  ;;  %v5375_v58 = vpop.f32.mrb[136].mxu1 }
 0xaac   :  { %v3444_v59 = vadd.f32 %v5375_v58, %v6761_v27  ;;  %v3435_v61 = vpop.f32.mrb[137].mxu1 }
 0xaad   :  { %v3436_v0 = vadd.f32 %v6761_v27, %v3435_v61  ;;  %v5376_v1 = vpop.f32.mrb[138].mxu1  ;;  %5433 = vmatprep.mubr.bf16.mxu0 %v3644_v57 }
 0xaae   :  { %v3447_v49 = vadd.f32 %v5376_v1, %v6761_v27  ;;  %v3438_v60 = vpop.f32.mrb[139].mxu1  ;;  %5434 = vmatmul.mubr.bf16.gmra.mrb[180].mxu0 %v3645_v56  ;;  %v3604_v3 = vmax.f32 %v3444_v59, 0.0 }
 0xaaf   :  { %v3439_v2 = vadd.f32 %v6761_v27, %v3438_v60  ;;  %v3602_v5 = vmax.f32 %v3436_v0, 0.0 }
 0xab0   :  { %v3605_v4 = vmax.f32 %v3447_v49, 0.0 }
 0xab1   :  { %v3603_v48 = vmax.f32 %v3439_v2, 0.0 }
 0xab2   :  { %v3647_v6 = vpack.c.bf16 %v3605_v4, %v3604_v3 }
 0xab3   :  { %v3646_v7 = vpack.c.bf16 %v3603_v48, %v3602_v5  ;;  %v5379_v8 = vpop.f32.mrb[140].mxu1 }
 0xab4   :  { %v3460_v9 = vadd.f32 %v5379_v8, %v6761_v27  ;;  %v3451_v10 = vpop.f32.mrb[141].mxu1 }
 0xab5   :  { %v3452_v11 = vadd.f32 %v6761_v27, %v3451_v10  ;;  %v5380_v14 = vpop.f32.mrb[142].mxu1  ;;  %5437 = vmatprep.mubr.bf16.mxu0 %v3646_v7 }
 0xab6   :  { %v3463_v21 = vadd.f32 %v5380_v14, %v6761_v27  ;;  %v3454_v15 = vpop.f32.mrb[143].mxu1  ;;  %5438 = vmatmul.mubr.bf16.gmra.mrb[184].mxu0 %v3647_v6  ;;  %v3608_v16 = vmax.f32 %v3460_v9, 0.0 }
 0xab7   :  { %v3455_v63 = vadd.f32 %v6761_v27, %v3454_v15  ;;  %v3606_v18 = vmax.f32 %v3452_v11, 0.0 }
 0xab8   :  { %v3609_v17 = vmax.f32 %v3463_v21, 0.0 }
 0xab9   :  { %v3607_v19 = vmax.f32 %v3455_v63, 0.0 }
 0xaba   :  { %v3649_v62 = vpack.c.bf16 %v3609_v17, %v3608_v16 }
 0xabb   :  { %v3648_v20 = vpack.c.bf16 %v3607_v19, %v3606_v18  ;;  %v5383_v22 = vpop.f32.mrb[144].mxu1 }
 0xabc   :  { %v3476_v23 = vadd.f32 %v5383_v22, %v6761_v27  ;;  %v3467_v42 = vpop.f32.mrb[145].mxu1 }
 0xabd   :  { %v3468_v40 = vadd.f32 %v6761_v27, %v3467_v42  ;;  %v5384_v24 = vpop.f32.mrb[146].mxu1  ;;  %5441 = vmatprep.mubr.bf16.mxu0 %v3648_v20 }
 0xabe   :  { %v3479_v25 = vadd.f32 %v5384_v24, %v6761_v27  ;;  %v3470_v26 = vpop.f32.mrb[147].mxu1  ;;  %5442 = vmatmul.mubr.bf16.gmra.mrb[188].mxu0 %v3649_v62  ;;  %v3612_v13 = vmax.f32 %v3476_v23, 0.0 }
 0xabf   :  { %v3471_v28 = vadd.f32 %v6761_v27, %v3470_v26  ;;  %v3610_v30 = vmax.f32 %v3468_v40, 0.0 }
 0xac0   :  { %v3613_v29 = vmax.f32 %v3479_v25, 0.0 }
 0xac1   :  { %v3611_v31 = vmax.f32 %v3471_v28, 0.0 }
 0xac2   :  { %v3651_v12 = vpack.c.bf16 %v3613_v29, %v3612_v13 }
 0xac3   :  { %v3650_v32 = vpack.c.bf16 %v3611_v31, %v3610_v30  ;;  %v5387_v35 = vpop.f32.mrb[148].mxu1 }
 0xac4   :  { %v3492_v36 = vadd.f32 %v5387_v35, %v6761_v27  ;;  %v3483_v37 = vpop.f32.mrb[149].mxu1 }
 0xac5   :  { %v3484_v38 = vadd.f32 %v6761_v27, %v3483_v37  ;;  %v5388_v39 = vpop.f32.mrb[150].mxu1  ;;  %5445 = vmatprep.mubr.bf16.mxu0 %v3650_v32 }
 0xac6   :  { %v3495_v41 = vadd.f32 %v5388_v39, %v6761_v27  ;;  %v3486_v43 = vpop.f32.mrb[151].mxu1  ;;  %5446 = vmatmul.mubr.bf16.gmra.mrb[192].mxu0 %v3651_v12  ;;  %v3616_v45 = vmax.f32 %v3492_v36, 0.0 }
 0xac7   :  { %v3487_v44 = vadd.f32 %v6761_v27, %v3486_v43  ;;  %v3614_v47 = vmax.f32 %v3484_v38, 0.0 }
 0xac8   :  { %v3617_v46 = vmax.f32 %v3495_v41, 0.0 }
 0xac9   :  { %v3615_v50 = vmax.f32 %v3487_v44, 0.0 }
 0xaca   :  { %v3653_v51 = vpack.c.bf16 %v3617_v46, %v3616_v45 }
 0xacb   :  { %v3652_v34 = vpack.c.bf16 %v3615_v50, %v3614_v47  ;;  %v5391_v52 = vpop.f32.mrb[152].mxu1 }
 0xacc   :  { %v3508_v53 = vadd.f32 %v5391_v52, %v6761_v27  ;;  %v3499_v54 = vpop.f32.mrb[153].mxu1 }
 0xacd   :  { %v3500_v55 = vadd.f32 %v6761_v27, %v3499_v54  ;;  %v5392_v33 = vpop.f32.mrb[154].mxu1  ;;  %5449 = vmatprep.mubr.bf16.mxu0 %v3652_v34 }
 0xace   :  { %v3511_v56 = vadd.f32 %v5392_v33, %v6761_v27  ;;  %v3502_v57 = vpop.f32.mrb[155].mxu1  ;;  %5450 = vmatmul.mubr.bf16.gmra.mrb[196].mxu0 %v3653_v51  ;;  %v3620_v59 = vmax.f32 %v3508_v53, 0.0 }
 0xacf   :  { %v3503_v58 = vadd.f32 %v6761_v27, %v3502_v57  ;;  %v3618_v0 = vmax.f32 %v3500_v55, 0.0 }
 0xad0   :  { %v3621_v61 = vmax.f32 %v3511_v56, 0.0 }
 0xad1   :  { %v3619_v1 = vmax.f32 %v3503_v58, 0.0 }
 0xad2   :  { %v3655_v49 = vpack.c.bf16 %v3621_v61, %v3620_v59 }
 0xad3   :  { %v3654_v60 = vpack.c.bf16 %v3619_v1, %v3618_v0  ;;  %v5395_v2 = vpop.f32.mrb[156].mxu1 }
 0xad4   :  { %v3524_v3 = vadd.f32 %v5395_v2, %v6761_v27  ;;  %v3515_v4 = vpop.f32.mrb[157].mxu1 }
 0xad5   :  { %v3516_v5 = vadd.f32 %v6761_v27, %v3515_v4  ;;  %v5396_v48 = vpop.f32.mrb[158].mxu1  ;;  %5453 = vmatprep.mubr.bf16.mxu0 %v3654_v60 }
 0xad6   :  { %v3527_v6 = vadd.f32 %v5396_v48, %v6761_v27  ;;  %v3518_v7 = vpop.f32.mrb[159].mxu1  ;;  %5454 = vmatmul.mubr.bf16.gmra.mrb[200].mxu0 %v3655_v49  ;;  %v3624_v9 = vmax.f32 %v3524_v3, 0.0 }
 0xad7   :  { %v3519_v8 = vadd.f32 %v6761_v27, %v3518_v7  ;;  %v3622_v11 = vmax.f32 %v3516_v5, 0.0  ;;  %v5740_v7 = vld [vmem:[%s6983_s24 + $0x30] sm:$0xff]  }
 0xad8   :  { %v3625_v10 = vmax.f32 %v3527_v6, 0.0  ;;  %5489 = vmatprep.subr.bf16.mxu1 %v5740_v7 }
 0xad9   :  { %v3623_v14 = vmax.f32 %v3519_v8, 0.0  ;;  %5490 = vmatpush3.bf16.msra.mxu1 %v5740_v7 }
 0xada   :  { %v3657_v21 = vpack.c.bf16 %v3625_v10, %v3624_v9  ;;  %v5741_v9 = vld [vmem:[%s6983_s24 + $0x38] sm:$0xff]  }
 0xadb   :  { %v3656_v15 = vpack.c.bf16 %v3623_v14, %v3622_v11  ;;  %v5399_v63 = vpop.f32.mrb[160].mxu1  ;;  %5491 = vmatprep.subr.bf16.mxu1 %v5741_v9 }
 0xadc   :  { %v3540_v16 = vadd.f32 %v5399_v63, %v6761_v27  ;;  %v3531_v17 = vpop.f32.mrb[161].mxu1 }
 0xadd   :  { %v3532_v18 = vadd.f32 %v6761_v27, %v3531_v17  ;;  %v5400_v19 = vpop.f32.mrb[162].mxu1  ;;  %5457 = vmatprep.mubr.bf16.mxu0 %v3656_v15  ;;  %5492 = vmatpush3.bf16.msra.mxu1 %v5741_v9 }
 0xade   :  { %v3543_v62 = vadd.f32 %v5400_v19, %v6761_v27  ;;  %v3534_v20 = vpop.f32.mrb[163].mxu1  ;;  %5458 = vmatmul.mubr.bf16.gmra.mrb[204].mxu0 %v3657_v21  ;;  %v3628_v23 = vmax.f32 %v3540_v16, 0.0 }
 0xadf   :  { %v3535_v22 = vadd.f32 %v6761_v27, %v3534_v20  ;;  %v3626_v40 = vmax.f32 %v3532_v18, 0.0 }
 0xae0   :  { %v3629_v42 = vmax.f32 %v3543_v62, 0.0 }
 0xae1   :  { %v3627_v24 = vmax.f32 %v3535_v22, 0.0 }
 0xae2   :  { %v3659_v25 = vpack.c.bf16 %v3629_v42, %v3628_v23 }
 0xae3   :  { %v3658_v26 = vpack.c.bf16 %v3627_v24, %v3626_v40  ;;  %v5403_v28 = vpop.f32.mrb[164].mxu1 }
 0xae4   :  { %v3556_v13 = vadd.f32 %v5403_v28, %v6761_v27  ;;  %v3547_v29 = vpop.f32.mrb[165].mxu1 }
 0xae5   :  { %v3548_v30 = vadd.f32 %v6761_v27, %v3547_v29  ;;  %v5404_v31 = vpop.f32.mrb[166].mxu1  ;;  %5461 = vmatprep.mubr.bf16.mxu0 %v3658_v26 }
 0xae6   :  { %v3559_v12 = vadd.f32 %v5404_v31, %v6761_v27  ;;  %v3550_v32 = vpop.f32.mrb[167].mxu1  ;;  %5462 = vmatmul.mubr.bf16.gmra.mrb[208].mxu0 %v3659_v25  ;;  %v3632_v36 = vmax.f32 %v3556_v13, 0.0 }
 0xae7   :  { %v3551_v35 = vadd.f32 %v6761_v27, %v3550_v32  ;;  %v3630_v38 = vmax.f32 %v3548_v30, 0.0 }
 0xae8   :  { %v3633_v37 = vmax.f32 %v3559_v12, 0.0 }
 0xae9   :  { %v3631_v39 = vmax.f32 %v3551_v35, 0.0 }
 0xaea   :  { %v3661_v41 = vpack.c.bf16 %v3633_v37, %v3632_v36 }
 0xaeb   :  { %v3660_v43 = vpack.c.bf16 %v3631_v39, %v3630_v38  ;;  %v5407_v44 = vpop.f32.mrb[168].mxu1 }
 0xaec   :  { %v3572_v45 = vadd.f32 %v5407_v44, %v6761_v27  ;;  %v3563_v46 = vpop.f32.mrb[169].mxu1 }
 0xaed   :  { %v3564_v47 = vadd.f32 %v6761_v27, %v3563_v46  ;;  %v5408_v50 = vpop.f32.mrb[170].mxu1  ;;  %5465 = vmatprep.mubr.bf16.mxu0 %v3660_v43 }
 0xaee   :  { %v3575_v51 = vadd.f32 %v5408_v50, %v6761_v27  ;;  %v3566_v34 = vpop.f32.mrb[171].mxu1  ;;  %5466 = vmatmul.mubr.bf16.gmra.mrb[212].mxu0 %v3661_v41  ;;  %v3636_v53 = vmax.f32 %v3572_v45, 0.0 }
 0xaef   :  { %v3567_v52 = vadd.f32 %v6761_v27, %v3566_v34  ;;  %v3634_v55 = vmax.f32 %v3564_v47, 0.0 }
 0xaf0   :  { %v3637_v54 = vmax.f32 %v3575_v51, 0.0 }
 0xaf1   :  { %v3635_v33 = vmax.f32 %v3567_v52, 0.0 }
 0xaf2   :  { %v3663_v56 = vpack.c.bf16 %v3637_v54, %v3636_v53 }
 0xaf3   :  { %v3662_v57 = vpack.c.bf16 %v3635_v33, %v3634_v55  ;;  %v5411_v58 = vpop.f32.mrb[172].mxu1 }
 0xaf4   :  { %v3588_v59 = vadd.f32 %v5411_v58, %v6761_v27  ;;  %v3579_v61 = vpop.f32.mrb[173].mxu1 }
 0xaf5   :  { %v3580_v0 = vadd.f32 %v6761_v27, %v3579_v61  ;;  %v5412_v1 = vpop.f32.mrb[174].mxu1  ;;  %5469 = vmatprep.mubr.bf16.mxu0 %v3662_v57 }
 0xaf6   :  { %v3591_v49 = vadd.f32 %v5412_v1, %v6761_v27  ;;  %v3582_v60 = vpop.f32.mrb[175].mxu1  ;;  %5470 = vmatmul.mubr.bf16.gmra.mrb[216].mxu0 %v3663_v56  ;;  %v3640_v3 = vmax.f32 %v3588_v59, 0.0 }
 0xaf7   :  { %v3583_v2 = vadd.f32 %v6761_v27, %v3582_v60  ;;  %v3638_v5 = vmax.f32 %v3580_v0, 0.0  ;;  %v6817_v27 = vld [vmem:[#allocation29] ss:$0 sm:$0xff] }
 0xaf8   :  { %v3641_v4 = vmax.f32 %v3591_v49, 0.0 }
 0xaf9   :  { %v3639_v48 = vmax.f32 %v3583_v2, 0.0 }
 0xafa   :  { %v3665_v6 = vpack.c.bf16 %v3641_v4, %v3640_v3 }
 0xafb   :  { %v3664_v8 = vpack.c.bf16 %v3639_v48, %v3638_v5 }
 0xafd   :  { %5473 = vmatprep.mubr.bf16.mxu0 %v3664_v8 }
 0xafe   :  { %5474 = vmatmul.mubr.bf16.gmra.mrb[220].mxu0 %v3665_v6 }
 0xb79   :  { %v5431_v10 = vpop.f32.mrb[176].mxu0 }
 0xb7a   :  { %v3780_v11 = vadd.f32 %v5431_v10, %v6817_v27  ;;  %v3771_v14 = vpop.f32.mrb[177].mxu0 }
 0xb7b   :  { %v3772_v21 = vadd.f32 %v6817_v27, %v3771_v14  ;;  %v5432_v15 = vpop.f32.mrb[178].mxu0 }
 0xb7c   :  { %v3783_v63 = vadd.f32 %v5432_v15, %v6817_v27  ;;  %v3774_v16 = vpop.f32.mrb[179].mxu0  ;;  %v3964_v18 = vmax.f32 %v3780_v11, 0.0 }
 0xb7d   :  { %v3775_v17 = vadd.f32 %v6817_v27, %v3774_v16  ;;  %v3962_v62 = vmax.f32 %v3772_v21, 0.0 }
 0xb7e   :  { %v3965_v19 = vmax.f32 %v3783_v63, 0.0 }
 0xb7f   :  { %v3963_v20 = vmax.f32 %v3775_v17, 0.0 }
 0xb80   :  { %v4011_v22 = vpack.c.bf16 %v3965_v19, %v3964_v18 }
 0xb81   :  { %v4010_v23 = vpack.c.bf16 %v3963_v20, %v3962_v62  ;;  %v5435_v42 = vpop.f32.mrb[180].mxu0 }
 0xb82   :  { %v3796_v40 = vadd.f32 %v5435_v42, %v6817_v27  ;;  %v3787_v24 = vpop.f32.mrb[181].mxu0 }
 0xb83   :  { %v3788_v25 = vadd.f32 %v6817_v27, %v3787_v24  ;;  %v5436_v26 = vpop.f32.mrb[182].mxu0  ;;  %5493 = vmatprep.mubr.bf16.mxu1 %v4010_v23 }
 0xb84   :  { %v3799_v28 = vadd.f32 %v5436_v26, %v6817_v27  ;;  %v3790_v13 = vpop.f32.mrb[183].mxu0  ;;  %5494 = vmatmul.mubr.bf16.vlgmr.msra.gmra.mrb[176].mxu1 %v4011_v22  ;;  %v3968_v30 = vmax.f32 %v3796_v40, 0.0 }
 0xb85   :  { %v3791_v29 = vadd.f32 %v6817_v27, %v3790_v13  ;;  %v3966_v12 = vmax.f32 %v3788_v25, 0.0 }
 0xb86   :  { %v3969_v31 = vmax.f32 %v3799_v28, 0.0 }
 0xb87   :  { %v3967_v32 = vmax.f32 %v3791_v29, 0.0 }
 0xb88   :  { %v4013_v35 = vpack.c.bf16 %v3969_v31, %v3968_v30 }
 0xb89   :  { %v4012_v36 = vpack.c.bf16 %v3967_v32, %v3966_v12  ;;  %v5439_v37 = vpop.f32.mrb[184].mxu0 }
 0xb8a   :  { %v3812_v38 = vadd.f32 %v5439_v37, %v6817_v27  ;;  %v3803_v39 = vpop.f32.mrb[185].mxu0 }
 0xb8b   :  { %v3804_v41 = vadd.f32 %v6817_v27, %v3803_v39  ;;  %v5440_v43 = vpop.f32.mrb[186].mxu0  ;;  %5497 = vmatprep.mubr.bf16.mxu1 %v4012_v36 }
 0xb8c   :  { %v3815_v44 = vadd.f32 %v5440_v43, %v6817_v27  ;;  %v3806_v45 = vpop.f32.mrb[187].mxu0  ;;  %5498 = vmatmul.mubr.bf16.gmra.mrb[180].mxu1 %v4013_v35  ;;  %v3972_v47 = vmax.f32 %v3812_v38, 0.0 }
 0xb8d   :  { %v3807_v46 = vadd.f32 %v6817_v27, %v3806_v45  ;;  %v3970_v51 = vmax.f32 %v3804_v41, 0.0 }
 0xb8e   :  { %v3973_v50 = vmax.f32 %v3815_v44, 0.0 }
 0xb8f   :  { %v3971_v34 = vmax.f32 %v3807_v46, 0.0 }
 0xb90   :  { %v4015_v52 = vpack.c.bf16 %v3973_v50, %v3972_v47 }
 0xb91   :  { %v4014_v53 = vpack.c.bf16 %v3971_v34, %v3970_v51  ;;  %v5443_v54 = vpop.f32.mrb[188].mxu0 }
 0xb92   :  { %v3828_v55 = vadd.f32 %v5443_v54, %v6817_v27  ;;  %v3819_v33 = vpop.f32.mrb[189].mxu0 }
 0xb93   :  { %v3820_v56 = vadd.f32 %v6817_v27, %v3819_v33  ;;  %v5444_v57 = vpop.f32.mrb[190].mxu0  ;;  %5501 = vmatprep.mubr.bf16.mxu1 %v4014_v53 }
 0xb94   :  { %v3831_v58 = vadd.f32 %v5444_v57, %v6817_v27  ;;  %v3822_v59 = vpop.f32.mrb[191].mxu0  ;;  %5502 = vmatmul.mubr.bf16.gmra.mrb[184].mxu1 %v4015_v52  ;;  %v3976_v0 = vmax.f32 %v3828_v55, 0.0 }
 0xb95   :  { %v3823_v61 = vadd.f32 %v6817_v27, %v3822_v59  ;;  %v3974_v49 = vmax.f32 %v3820_v56, 0.0 }
 0xb96   :  { %v3977_v1 = vmax.f32 %v3831_v58, 0.0 }
 0xb97   :  { %v3975_v60 = vmax.f32 %v3823_v61, 0.0 }
 0xb98   :  { %v4017_v2 = vpack.c.bf16 %v3977_v1, %v3976_v0 }
 0xb99   :  { %v4016_v3 = vpack.c.bf16 %v3975_v60, %v3974_v49  ;;  %v5447_v4 = vpop.f32.mrb[192].mxu0 }
 0xb9a   :  { %v3844_v5 = vadd.f32 %v5447_v4, %v6817_v27  ;;  %v3835_v48 = vpop.f32.mrb[193].mxu0 }
 0xb9b   :  { %v3836_v6 = vadd.f32 %v6817_v27, %v3835_v48  ;;  %v5448_v7 = vpop.f32.mrb[194].mxu0  ;;  %5505 = vmatprep.mubr.bf16.mxu1 %v4016_v3 }
 0xb9c   :  { %v3847_v8 = vadd.f32 %v5448_v7, %v6817_v27  ;;  %v3838_v9 = vpop.f32.mrb[195].mxu0  ;;  %5506 = vmatmul.mubr.bf16.gmra.mrb[188].mxu1 %v4017_v2  ;;  %v3980_v11 = vmax.f32 %v3844_v5, 0.0 }
 0xb9d   :  { %v3839_v10 = vadd.f32 %v6817_v27, %v3838_v9  ;;  %v3978_v21 = vmax.f32 %v3836_v6, 0.0 }
 0xb9e   :  { %v3981_v14 = vmax.f32 %v3847_v8, 0.0 }
 0xb9f   :  { %v3979_v15 = vmax.f32 %v3839_v10, 0.0 }
 0xba0   :  { %v4019_v63 = vpack.c.bf16 %v3981_v14, %v3980_v11 }
 0xba1   :  { %v4018_v16 = vpack.c.bf16 %v3979_v15, %v3978_v21  ;;  %v5451_v17 = vpop.f32.mrb[196].mxu0 }
 0xba2   :  { %v3860_v18 = vadd.f32 %v5451_v17, %v6817_v27  ;;  %v3851_v19 = vpop.f32.mrb[197].mxu0 }
 0xba3   :  { %v3852_v62 = vadd.f32 %v6817_v27, %v3851_v19  ;;  %v5452_v20 = vpop.f32.mrb[198].mxu0  ;;  %5509 = vmatprep.mubr.bf16.mxu1 %v4018_v16 }
 0xba4   :  { %v3863_v22 = vadd.f32 %v5452_v20, %v6817_v27  ;;  %v3854_v23 = vpop.f32.mrb[199].mxu0  ;;  %5510 = vmatmul.mubr.bf16.gmra.mrb[192].mxu1 %v4019_v63  ;;  %v3984_v40 = vmax.f32 %v3860_v18, 0.0 }
 0xba5   :  { %v3855_v42 = vadd.f32 %v6817_v27, %v3854_v23  ;;  %v3982_v25 = vmax.f32 %v3852_v62, 0.0 }
 0xba6   :  { %v3985_v24 = vmax.f32 %v3863_v22, 0.0 }
 0xba7   :  { %v3983_v26 = vmax.f32 %v3855_v42, 0.0 }
 0xba8   :  { %v4021_v28 = vpack.c.bf16 %v3985_v24, %v3984_v40 }
 0xba9   :  { %v4020_v13 = vpack.c.bf16 %v3983_v26, %v3982_v25  ;;  %v5455_v29 = vpop.f32.mrb[200].mxu0 }
 0xbaa   :  { %v3876_v30 = vadd.f32 %v5455_v29, %v6817_v27  ;;  %v3867_v31 = vpop.f32.mrb[201].mxu0 }
 0xbab   :  { %v3868_v12 = vadd.f32 %v6817_v27, %v3867_v31  ;;  %v5456_v32 = vpop.f32.mrb[202].mxu0  ;;  %5513 = vmatprep.mubr.bf16.mxu1 %v4020_v13 }
 0xbac   :  { %v3879_v35 = vadd.f32 %v5456_v32, %v6817_v27  ;;  %v3870_v36 = vpop.f32.mrb[203].mxu0  ;;  %5514 = vmatmul.mubr.bf16.gmra.mrb[196].mxu1 %v4021_v28  ;;  %v3988_v38 = vmax.f32 %v3876_v30, 0.0 }
 0xbad   :  { %v3871_v37 = vadd.f32 %v6817_v27, %v3870_v36  ;;  %v3986_v41 = vmax.f32 %v3868_v12, 0.0 }
 0xbae   :  { %v3989_v39 = vmax.f32 %v3879_v35, 0.0 }
 0xbaf   :  { %v3987_v43 = vmax.f32 %v3871_v37, 0.0 }
 0xbb0   :  { %v4023_v44 = vpack.c.bf16 %v3989_v39, %v3988_v38 }
 0xbb1   :  { %v4022_v45 = vpack.c.bf16 %v3987_v43, %v3986_v41  ;;  %v5459_v46 = vpop.f32.mrb[204].mxu0 }
 0xbb2   :  { %v3892_v47 = vadd.f32 %v5459_v46, %v6817_v27  ;;  %v3883_v50 = vpop.f32.mrb[205].mxu0 }
 0xbb3   :  { %v3884_v51 = vadd.f32 %v6817_v27, %v3883_v50  ;;  %v5460_v34 = vpop.f32.mrb[206].mxu0  ;;  %5517 = vmatprep.mubr.bf16.mxu1 %v4022_v45 }
 0xbb4   :  { %v3895_v52 = vadd.f32 %v5460_v34, %v6817_v27  ;;  %v3886_v53 = vpop.f32.mrb[207].mxu0  ;;  %5518 = vmatmul.mubr.bf16.gmra.mrb[200].mxu1 %v4023_v44  ;;  %v3992_v55 = vmax.f32 %v3892_v47, 0.0 }
 0xbb5   :  { %v3887_v54 = vadd.f32 %v6817_v27, %v3886_v53  ;;  %v3990_v56 = vmax.f32 %v3884_v51, 0.0 }
 0xbb6   :  { %v3993_v33 = vmax.f32 %v3895_v52, 0.0 }
 0xbb7   :  { %v3991_v57 = vmax.f32 %v3887_v54, 0.0  ;;  %v6870_v54 = vld [vmem:[%s6984_s18] ss:$0 sm:$0xff] }
 0xbb8   :  { %v4025_v58 = vpack.c.bf16 %v3993_v33, %v3992_v55 }
 0xbb9   :  { %v4024_v59 = vpack.c.bf16 %v3991_v57, %v3990_v56  ;;  %v5463_v61 = vpop.f32.mrb[208].mxu0 }
 0xbba   :  { %v3908_v0 = vadd.f32 %v5463_v61, %v6817_v27  ;;  %v3899_v1 = vpop.f32.mrb[209].mxu0 }
 0xbbb   :  { %v3900_v49 = vadd.f32 %v6817_v27, %v3899_v1  ;;  %v5464_v60 = vpop.f32.mrb[210].mxu0  ;;  %5521 = vmatprep.mubr.bf16.mxu1 %v4024_v59 }
 0xbbc   :  { %v3911_v2 = vadd.f32 %v5464_v60, %v6817_v27  ;;  %v3902_v3 = vpop.f32.mrb[211].mxu0  ;;  %5522 = vmatmul.mubr.bf16.gmra.mrb[204].mxu1 %v4025_v58  ;;  %v3996_v5 = vmax.f32 %v3908_v0, 0.0 }
 0xbbd   :  { %v3903_v4 = vadd.f32 %v6817_v27, %v3902_v3  ;;  %v3994_v6 = vmax.f32 %v3900_v49, 0.0 }
 0xbbe   :  { %v3997_v48 = vmax.f32 %v3911_v2, 0.0 }
 0xbbf   :  { %v3995_v7 = vmax.f32 %v3903_v4, 0.0 }
 0xbc0   :  { %v4027_v8 = vpack.c.bf16 %v3997_v48, %v3996_v5 }
 0xbc1   :  { %v4026_v9 = vpack.c.bf16 %v3995_v7, %v3994_v6  ;;  %v5467_v10 = vpop.f32.mrb[212].mxu0 }
 0xbc2   :  { %v3924_v11 = vadd.f32 %v5467_v10, %v6817_v27  ;;  %v3915_v14 = vpop.f32.mrb[213].mxu0 }
 0xbc3   :  { %v3916_v21 = vadd.f32 %v6817_v27, %v3915_v14  ;;  %v5468_v15 = vpop.f32.mrb[214].mxu0  ;;  %5525 = vmatprep.mubr.bf16.mxu1 %v4026_v9 }
 0xbc4   :  { %v3927_v63 = vadd.f32 %v5468_v15, %v6817_v27  ;;  %v3918_v16 = vpop.f32.mrb[215].mxu0  ;;  %5526 = vmatmul.mubr.bf16.gmra.mrb[208].mxu1 %v4027_v8  ;;  %v4000_v18 = vmax.f32 %v3924_v11, 0.0 }
 0xbc5   :  { %v3919_v17 = vadd.f32 %v6817_v27, %v3918_v16  ;;  %v3998_v62 = vmax.f32 %v3916_v21, 0.0 }
 0xbc6   :  { %v4001_v19 = vmax.f32 %v3927_v63, 0.0 }
 0xbc7   :  { %v3999_v20 = vmax.f32 %v3919_v17, 0.0 }
 0xbc8   :  { %v4029_v22 = vpack.c.bf16 %v4001_v19, %v4000_v18 }
 0xbc9   :  { %v4028_v23 = vpack.c.bf16 %v3999_v20, %v3998_v62  ;;  %v5471_v42 = vpop.f32.mrb[216].mxu0 }
 0xbca   :  { %v3940_v40 = vadd.f32 %v5471_v42, %v6817_v27  ;;  %v3931_v24 = vpop.f32.mrb[217].mxu0 }
 0xbcb   :  { %v3932_v25 = vadd.f32 %v6817_v27, %v3931_v24  ;;  %v5472_v26 = vpop.f32.mrb[218].mxu0  ;;  %5529 = vmatprep.mubr.bf16.mxu1 %v4028_v23 }
 0xbcc   :  { %v3943_v28 = vadd.f32 %v5472_v26, %v6817_v27  ;;  %v3934_v13 = vpop.f32.mrb[219].mxu0  ;;  %5530 = vmatmul.mubr.bf16.gmra.mrb[212].mxu1 %v4029_v22  ;;  %v4004_v30 = vmax.f32 %v3940_v40, 0.0 }
 0xbcd   :  { %v3935_v29 = vadd.f32 %v6817_v27, %v3934_v13  ;;  %v4002_v12 = vmax.f32 %v3932_v25, 0.0 }
 0xbce   :  { %v4005_v31 = vmax.f32 %v3943_v28, 0.0 }
 0xbcf   :  { %v4003_v32 = vmax.f32 %v3935_v29, 0.0 }
 0xbd0   :  { %v4031_v35 = vpack.c.bf16 %v4005_v31, %v4004_v30 }
 0xbd1   :  { %v4030_v36 = vpack.c.bf16 %v4003_v32, %v4002_v12  ;;  %v5475_v37 = vpop.f32.mrb[220].mxu0 }
 0xbd2   :  { %v3956_v38 = vadd.f32 %v5475_v37, %v6817_v27  ;;  %v3947_v39 = vpop.f32.mrb[221].mxu0 }
 0xbd3   :  { %v3948_v41 = vadd.f32 %v6817_v27, %v3947_v39  ;;  %v5476_v43 = vpop.f32.mrb[222].mxu0  ;;  %5533 = vmatprep.mubr.bf16.mxu1 %v4030_v36 }
 0xbd4   :  { %v3959_v44 = vadd.f32 %v5476_v43, %v6817_v27  ;;  %v3950_v45 = vpop.f32.mrb[223].mxu0  ;;  %5534 = vmatmul.mubr.bf16.gmra.mrb[216].mxu1 %v4031_v35  ;;  %v4008_v47 = vmax.f32 %v3956_v38, 0.0 }
 0xbd5   :  { %v3951_v46 = vadd.f32 %v6817_v27, %v3950_v45  ;;  %v4006_v51 = vmax.f32 %v3948_v41, 0.0 }
 0xbd6   :  { %v4009_v50 = vmax.f32 %v3959_v44, 0.0 }
 0xbd7   :  { %v4007_v34 = vmax.f32 %v3951_v46, 0.0 }
 0xbd8   :  { %v4033_v52 = vpack.c.bf16 %v4009_v50, %v4008_v47 }
 0xbd9   :  { %v4032_v53 = vpack.c.bf16 %v4007_v34, %v4006_v51 }
 0xbdb   :  { %5537 = vmatprep.mubr.bf16.mxu1 %v4032_v53 }
 0xbdc   :  { %5538 = vmatmul.mubr.bf16.gmra.mrb[220].mxu1 %v4033_v52 }
 0xc57   :  { %v5495_v55 = vpop.f32.mrb[176].mxu1 }
 0xc58   :  { %v4148_v33 = vadd.f32 %v5495_v55, %v6870_v54  ;;  %v4139_v56 = vpop.f32.mrb[177].mxu1 }
 0xc59   :  { %v4140_v57 = vadd.f32 %v6870_v54, %v4139_v56  ;;  %v5496_v27 = vpop.f32.mrb[178].mxu1 }
 0xc5a   :  { %4332 = vst [vmem:[#allocation30 + $0x10] sm:$0xff] %v4148_v33  ;;  %v4151_v58 = vadd.f32 %v5496_v27, %v6870_v54  ;;  %v4142_v59 = vpop.f32.mrb[179].mxu1 }
 0xc5b   :  { %4330 = vst [vmem:[#allocation30] sm:$0xff] %v4140_v57  ;;  %v4143_v61 = vadd.f32 %v6870_v54, %v4142_v59 }
 0xc5c   :  { %4333 = vst [vmem:[#allocation30 + $0x18] sm:$0xff] %v4151_v58 }
 0xc5d   :  { %4331 = vst [vmem:[#allocation30 + $0x8] sm:$0xff] %v4143_v61 }
 0xc5f   :  { %v5499_v0 = vpop.f32.mrb[180].mxu1 }
 0xc60   :  { %v4164_v1 = vadd.f32 %v5499_v0, %v6870_v54  ;;  %v4155_v49 = vpop.f32.mrb[181].mxu1 }
 0xc61   :  { %v4156_v60 = vadd.f32 %v6870_v54, %v4155_v49  ;;  %v5500_v2 = vpop.f32.mrb[182].mxu1 }
 0xc62   :  { %4336 = vst [vmem:[#allocation30 + $0x30] sm:$0xff] %v4164_v1  ;;  %v4167_v3 = vadd.f32 %v5500_v2, %v6870_v54  ;;  %v4158_v4 = vpop.f32.mrb[183].mxu1 }
 0xc63   :  { %4334 = vst [vmem:[#allocation30 + $0x20] sm:$0xff] %v4156_v60  ;;  %v4159_v5 = vadd.f32 %v6870_v54, %v4158_v4 }
 0xc64   :  { %4337 = vst [vmem:[#allocation30 + $0x38] sm:$0xff] %v4167_v3 }
 0xc65   :  { %4335 = vst [vmem:[#allocation30 + $0x28] sm:$0xff] %v4159_v5 }
 0xc67   :  { %v5503_v48 = vpop.f32.mrb[184].mxu1 }
 0xc68   :  { %v4180_v6 = vadd.f32 %v5503_v48, %v6870_v54  ;;  %v4171_v7 = vpop.f32.mrb[185].mxu1 }
 0xc69   :  { %v4172_v8 = vadd.f32 %v6870_v54, %v4171_v7  ;;  %v5504_v9 = vpop.f32.mrb[186].mxu1 }
 0xc6a   :  { %4340 = vst [vmem:[#allocation30 + $0x50] sm:$0xff] %v4180_v6  ;;  %v4183_v10 = vadd.f32 %v5504_v9, %v6870_v54  ;;  %v4174_v11 = vpop.f32.mrb[187].mxu1 }
 0xc6b   :  { %4338 = vst [vmem:[#allocation30 + $0x40] sm:$0xff] %v4172_v8  ;;  %v4175_v14 = vadd.f32 %v6870_v54, %v4174_v11 }
 0xc6c   :  { %4341 = vst [vmem:[#allocation30 + $0x58] sm:$0xff] %v4183_v10 }
 0xc6d   :  { %4339 = vst [vmem:[#allocation30 + $0x48] sm:$0xff] %v4175_v14 }
 0xc6f   :  { %v5507_v21 = vpop.f32.mrb[188].mxu1 }
 0xc70   :  { %v4196_v15 = vadd.f32 %v5507_v21, %v6870_v54  ;;  %v4187_v63 = vpop.f32.mrb[189].mxu1 }
 0xc71   :  { %v4188_v16 = vadd.f32 %v6870_v54, %v4187_v63  ;;  %v5508_v17 = vpop.f32.mrb[190].mxu1 }
 0xc72   :  { %4344 = vst [vmem:[#allocation30 + $0x70] sm:$0xff] %v4196_v15  ;;  %v4199_v18 = vadd.f32 %v5508_v17, %v6870_v54  ;;  %v4190_v19 = vpop.f32.mrb[191].mxu1 }
 0xc73   :  { %4342 = vst [vmem:[#allocation30 + $0x60] sm:$0xff] %v4188_v16  ;;  %v4191_v62 = vadd.f32 %v6870_v54, %v4190_v19 }
 0xc74   :  { %4345 = vst [vmem:[#allocation30 + $0x78] sm:$0xff] %v4199_v18 }
 0xc75   :  { %4343 = vst [vmem:[#allocation30 + $0x68] sm:$0xff] %v4191_v62 }
 0xc77   :  { %v5511_v20 = vpop.f32.mrb[192].mxu1 }
 0xc78   :  { %v4212_v22 = vadd.f32 %v5511_v20, %v6870_v54  ;;  %v4203_v23 = vpop.f32.mrb[193].mxu1 }
 0xc79   :  { %v4204_v42 = vadd.f32 %v6870_v54, %v4203_v23  ;;  %v5512_v40 = vpop.f32.mrb[194].mxu1 }
 0xc7a   :  { %4348 = vst [vmem:[#allocation30 + $0x90] sm:$0xff] %v4212_v22  ;;  %v4215_v24 = vadd.f32 %v5512_v40, %v6870_v54  ;;  %v4206_v25 = vpop.f32.mrb[195].mxu1 }
 0xc7b   :  { %4346 = vst [vmem:[#allocation30 + $0x80] sm:$0xff] %v4204_v42  ;;  %v4207_v26 = vadd.f32 %v6870_v54, %v4206_v25 }
 0xc7c   :  { %4349 = vst [vmem:[#allocation30 + $0x98] sm:$0xff] %v4215_v24 }
 0xc7d   :  { %4347 = vst [vmem:[#allocation30 + $0x88] sm:$0xff] %v4207_v26 }
 0xc7f   :  { %v5515_v28 = vpop.f32.mrb[196].mxu1 }
 0xc80   :  { %v4228_v13 = vadd.f32 %v5515_v28, %v6870_v54  ;;  %v4219_v29 = vpop.f32.mrb[197].mxu1 }
 0xc81   :  { %v4220_v30 = vadd.f32 %v6870_v54, %v4219_v29  ;;  %v5516_v31 = vpop.f32.mrb[198].mxu1 }
 0xc82   :  { %4352 = vst [vmem:[#allocation30 + $0xb0] sm:$0xff] %v4228_v13  ;;  %v4231_v12 = vadd.f32 %v5516_v31, %v6870_v54  ;;  %v4222_v32 = vpop.f32.mrb[199].mxu1 }
 0xc83   :  { %4350 = vst [vmem:[#allocation30 + $0xa0] sm:$0xff] %v4220_v30  ;;  %v4223_v35 = vadd.f32 %v6870_v54, %v4222_v32 }
 0xc84   :  { %4353 = vst [vmem:[#allocation30 + $0xb8] sm:$0xff] %v4231_v12 }
 0xc85   :  { %4351 = vst [vmem:[#allocation30 + $0xa8] sm:$0xff] %v4223_v35 }
 0xc87   :  { %v5519_v36 = vpop.f32.mrb[200].mxu1 }
 0xc88   :  { %v4244_v37 = vadd.f32 %v5519_v36, %v6870_v54  ;;  %v4235_v38 = vpop.f32.mrb[201].mxu1 }
 0xc89   :  { %v4236_v39 = vadd.f32 %v6870_v54, %v4235_v38  ;;  %v5520_v41 = vpop.f32.mrb[202].mxu1 }
 0xc8a   :  { %4356 = vst [vmem:[#allocation30 + $0xd0] sm:$0xff] %v4244_v37  ;;  %v4247_v43 = vadd.f32 %v5520_v41, %v6870_v54  ;;  %v4238_v44 = vpop.f32.mrb[203].mxu1 }
 0xc8b   :  { %4354 = vst [vmem:[#allocation30 + $0xc0] sm:$0xff] %v4236_v39  ;;  %v4239_v45 = vadd.f32 %v6870_v54, %v4238_v44 }
 0xc8c   :  { %4357 = vst [vmem:[#allocation30 + $0xd8] sm:$0xff] %v4247_v43 }
 0xc8d   :  { %4355 = vst [vmem:[#allocation30 + $0xc8] sm:$0xff] %v4239_v45 }
 0xc8f   :  { %v5523_v46 = vpop.f32.mrb[204].mxu1 }
 0xc90   :  { %v4260_v47 = vadd.f32 %v5523_v46, %v6870_v54  ;;  %v4251_v50 = vpop.f32.mrb[205].mxu1 }
 0xc91   :  { %v4252_v51 = vadd.f32 %v6870_v54, %v4251_v50  ;;  %v5524_v34 = vpop.f32.mrb[206].mxu1 }
 0xc92   :  { %4360 = vst [vmem:[#allocation30 + $0xf0] sm:$0xff] %v4260_v47  ;;  %v4263_v52 = vadd.f32 %v5524_v34, %v6870_v54  ;;  %v4254_v53 = vpop.f32.mrb[207].mxu1 }
 0xc93   :  { %4358 = vst [vmem:[#allocation30 + $0xe0] sm:$0xff] %v4252_v51  ;;  %v4255_v55 = vadd.f32 %v6870_v54, %v4254_v53 }
 0xc94   :  { %4361 = vst [vmem:[#allocation30 + $0xf8] sm:$0xff] %v4263_v52 }
 0xc95   :  { %4359 = vst [vmem:[#allocation30 + $0xe8] sm:$0xff] %v4255_v55 }
 0xc97   :  { %v5527_v33 = vpop.f32.mrb[208].mxu1 }
 0xc98   :  { %v4276_v56 = vadd.f32 %v5527_v33, %v6870_v54  ;;  %v4267_v57 = vpop.f32.mrb[209].mxu1 }
 0xc99   :  { %v4268_v27 = vadd.f32 %v6870_v54, %v4267_v57  ;;  %v5528_v58 = vpop.f32.mrb[210].mxu1 }
 0xc9a   :  { %4364 = vst [vmem:[#allocation30 + $0x110] sm:$0xff] %v4276_v56  ;;  %v4279_v59 = vadd.f32 %v5528_v58, %v6870_v54  ;;  %v4270_v61 = vpop.f32.mrb[211].mxu1 }
 0xc9b   :  { %4362 = vst [vmem:[#allocation30 + $0x100] sm:$0xff] %v4268_v27  ;;  %v4271_v0 = vadd.f32 %v6870_v54, %v4270_v61 }
 0xc9c   :  { %4365 = vst [vmem:[#allocation30 + $0x118] sm:$0xff] %v4279_v59 }
 0xc9d   :  { %4363 = vst [vmem:[#allocation30 + $0x108] sm:$0xff] %v4271_v0 }
 0xc9f   :  { %v5531_v1 = vpop.f32.mrb[212].mxu1 }
 0xca0   :  { %v4292_v49 = vadd.f32 %v5531_v1, %v6870_v54  ;;  %v4283_v60 = vpop.f32.mrb[213].mxu1 }
 0xca1   :  { %v4284_v2 = vadd.f32 %v6870_v54, %v4283_v60  ;;  %v5532_v3 = vpop.f32.mrb[214].mxu1 }
 0xca2   :  { %4368 = vst [vmem:[#allocation30 + $0x130] sm:$0xff] %v4292_v49  ;;  %v4295_v4 = vadd.f32 %v5532_v3, %v6870_v54  ;;  %v4286_v5 = vpop.f32.mrb[215].mxu1 }
 0xca3   :  { %4366 = vst [vmem:[#allocation30 + $0x120] sm:$0xff] %v4284_v2  ;;  %v4287_v48 = vadd.f32 %v6870_v54, %v4286_v5 }
 0xca4   :  { %4369 = vst [vmem:[#allocation30 + $0x138] sm:$0xff] %v4295_v4 }
 0xca5   :  { %4367 = vst [vmem:[#allocation30 + $0x128] sm:$0xff] %v4287_v48 }
 0xca7   :  { %v5535_v6 = vpop.f32.mrb[216].mxu1 }
 0xca8   :  { %v4308_v7 = vadd.f32 %v5535_v6, %v6870_v54  ;;  %v4299_v8 = vpop.f32.mrb[217].mxu1 }
 0xca9   :  { %v4300_v9 = vadd.f32 %v6870_v54, %v4299_v8  ;;  %v5536_v10 = vpop.f32.mrb[218].mxu1 }
 0xcaa   :  { %4372 = vst [vmem:[#allocation30 + $0x150] sm:$0xff] %v4308_v7  ;;  %v4311_v11 = vadd.f32 %v5536_v10, %v6870_v54  ;;  %v4302_v14 = vpop.f32.mrb[219].mxu1 }
 0xcab   :  { %4370 = vst [vmem:[#allocation30 + $0x140] sm:$0xff] %v4300_v9  ;;  %v4303_v21 = vadd.f32 %v6870_v54, %v4302_v14 }
 0xcac   :  { %4373 = vst [vmem:[#allocation30 + $0x158] sm:$0xff] %v4311_v11 }
 0xcad   :  { %4371 = vst [vmem:[#allocation30 + $0x148] sm:$0xff] %v4303_v21 }
 0xcaf   :  { %v5539_v15 = vpop.f32.mrb[220].mxu1 }
 0xcb0   :  { %v4324_v63 = vadd.f32 %v5539_v15, %v6870_v54  ;;  %v4315_v16 = vpop.f32.mrb[221].mxu1 }
 0xcb1   :  { %v4316_v17 = vadd.f32 %v6870_v54, %v4315_v16  ;;  %v5540_v18 = vpop.f32.mrb[222].mxu1 }
 0xcb2   :  { %4376 = vst [vmem:[#allocation30 + $0x170] sm:$0xff] %v4324_v63  ;;  %v4327_v19 = vadd.f32 %v5540_v18, %v6870_v54  ;;  %v4318_v62 = vpop.f32.mrb[223].mxu1 }
 0xcb3   :  { %4374 = vst [vmem:[#allocation30 + $0x160] sm:$0xff] %v4316_v17  ;;  %v4319_v20 = vadd.f32 %v6870_v54, %v4318_v62 }
 0xcb4   :  { %4377 = vst [vmem:[#allocation30 + $0x178] sm:$0xff] %v4327_v19 }
 0xcb5   :  { %4375 = vst [vmem:[#allocation30 + $0x168] sm:$0xff] %v4319_v20 }
 0xcb6   :  { %6127 = shalt.err (!%p6124_p0)
}
 0xcb7   :  { %s6985_s1 = sld [smem:[#allocation51_spill]] }
 0xcbd   :  { %s6128_s2 = scalar_lea.hbm %s6985_s1, 6144 }
 0xcbe   :  { %p6129_p1 = scmp.ne.s32.totalorder %s6985_s1, %s6128_s2  ;;  %p6132_p2 = scmp.lt.u32.totalorder %s6128_s2, %s6985_s1 }
 0xcc0   :  { %p6134_p3 = pnand %p6132_p2, %p6129_p1 }
 0xcc2   :  { %6137 = shalt.err (!%p6134_p3)
}
 0xcc3   :  { %s6180_s10 = smov 128   ;;  %s6181_s26 = smov 8  }
 0xcc4   :  { %4389 = dma.vmem_to_hbm [thread:$0]  %s4384_s20, 6144, %s6985_s1, [#allocation5], %s6180_s10, %s6180_s10, %s6181_s26  }
 0xcc5   :  { %6156 = dma.done.wait [#allocation5], 6144  }
 0xcc6   :  { %6157 = vsyncadd [#allocation5], 4294961152 }
 0xcc7   :  { %4393 = vsyncpa [#allocation4], 1 }
 0xcc8   :  { %4394 = vsyncpa [#allocation7], 1 }
 0xcc9   :  { %4395 = vsyncpa [#allocation10], 1 }
 0xcca   :  { %4396 = vsyncpa [#allocation13], 1 }
 0xccb   :  { %4397 = vsyncpa [#allocation16], 1 }
 0xccc   :  { %4398 = vsyncpa [#allocation19], 1 }
 0xccd   :  { %4399 = vsyncpa [#allocation22], 1 }
 0xcce   :  { %4400 = vsyncpa [#allocation25], 1 }
 0xccf   :  { %4401 = vsyncpa [#allocation28], 1 }
 0xcd0   :  { %4402 = vsyncpa [#allocation5], 1 }

</bundles_post_ra>
